<compile_context>
chip_gen: v7x
topology: tpu7x:2x2x1
jax: 0.10.0
libtpu: 0.0.40
codegen_flags: <defaults>
</compile_context>

<pallas_src>
import functools

import jax
import jax.numpy as jnp
from jax.experimental import pallas as pl
from jax.experimental.pallas import tpu as pltpu

LANES = 128


# ----------------------------------------------------------------------------
# Pallas kernels
# ----------------------------------------------------------------------------
def _conv_pool_relu_kernel(p_ref, w_ref, b_ref, o_ref):
    """Fused conv (as matmul) + bias + ReLU + 2x2 maxpool.

    p_ref: (4, TM, Kp)  im2col patches for the 4 corners of each pooling window
    w_ref: (Kp, Cp)     zero-padded weight
    b_ref: (1, Cp)      zero-padded bias
    o_ref: (TM, Cp)     pooled + ReLU'd output (lane-dense, Cp=128)
    """
    w = w_ref[...]
    y = jnp.dot(p_ref[0], w, preferred_element_type=jnp.float32)
    y = jnp.maximum(y, jnp.dot(p_ref[1], w, preferred_element_type=jnp.float32))
    y = jnp.maximum(y, jnp.dot(p_ref[2], w, preferred_element_type=jnp.float32))
    y = jnp.maximum(y, jnp.dot(p_ref[3], w, preferred_element_type=jnp.float32))
    # maxpool(relu(conv + b)) == relu(max_corners(conv) + b): bias is shared
    # across the window and ReLU is monotone.
    o_ref[...] = jnp.maximum(y + b_ref[...], 0.0)


def _fc_stack_kernel(x_ref, w1_ref, b1_ref, w2_ref, b2_ref, w3_ref, b3_ref,
                     o_ref, *, n_spatial):
    """Fused fc1+ReLU+fc2+ReLU+fc3; intermediates stay in VMEM.

    x_ref : (S, TB, Cp)   pooled conv2 activation, spatial-position major
    w1_ref: (S, Cp, Cp)   fc1 weight split per spatial position (flatten fused)
    w2_ref/w3_ref: (Cp, Cp), biases: (1, Cp); o_ref: (TB, Cp)
    """
    acc = jnp.dot(x_ref[0], w1_ref[0], preferred_element_type=jnp.float32)
    for s in range(1, n_spatial):
        acc = acc + jnp.dot(x_ref[s], w1_ref[s],
                            preferred_element_type=jnp.float32)
    h1 = jnp.maximum(acc + b1_ref[...], 0.0)
    h2 = jnp.dot(h1, w2_ref[...], preferred_element_type=jnp.float32)
    h2 = jnp.maximum(h2 + b2_ref[...], 0.0)
    o_ref[...] = (jnp.dot(h2, w3_ref[...], preferred_element_type=jnp.float32)
                  + b3_ref[...])


# ----------------------------------------------------------------------------
# Pallas wrappers
# ----------------------------------------------------------------------------
def conv_pool_relu(patches4, w_pad, b_pad, *, tm=512):
    """patches4: [4, M, Kp] -> pooled ReLU(conv) activation [M, Cp]."""
    _, M, Kp = patches4.shape
    Cp = w_pad.shape[1]
    tm = min(tm, M)          # block == full dim when small; 512-row tiles else
    return pl.pallas_call(
        _conv_pool_relu_kernel,
        out_shape=jax.ShapeDtypeStruct((M, Cp), jnp.float32),
        grid=(pl.cdiv(M, tm),),
        in_specs=[
            pl.BlockSpec((4, tm, Kp), lambda i: (0, i, 0)),
            pl.BlockSpec((Kp, Cp), lambda i: (0, 0)),
            pl.BlockSpec((1, Cp), lambda i: (0, 0)),
        ],
        out_specs=pl.BlockSpec((tm, Cp), lambda i: (i, 0)),
        compiler_params=pltpu.CompilerParams(
            dimension_semantics=("parallel",)),
    )(patches4, w_pad, b_pad)


def fc_stack(x3, w1e, b1, w2, b2, w3, b3, *, tb=128):
    """x3: [S, N, Cp] -> logits [N, Cp] (first 10 lanes valid)."""
    S, N, Cp = x3.shape
    tb = min(tb, N)
    return pl.pallas_call(
        functools.partial(_fc_stack_kernel, n_spatial=S),
        out_shape=jax.ShapeDtypeStruct((N, Cp), jnp.float32),
        grid=(pl.cdiv(N, tb),),
        in_specs=[
            pl.BlockSpec((S, tb, Cp), lambda i: (0, i, 0)),
            pl.BlockSpec((S, Cp, Cp), lambda i: (0, 0, 0)),
            pl.BlockSpec((1, Cp), lambda i: (0, 0)),
            pl.BlockSpec((Cp, Cp), lambda i: (0, 0)),
            pl.BlockSpec((1, Cp), lambda i: (0, 0)),
            pl.BlockSpec((Cp, Cp), lambda i: (0, 0)),
            pl.BlockSpec((1, Cp), lambda i: (0, 0)),
        ],
        out_specs=pl.BlockSpec((tb, Cp), lambda i: (i, 0)),
        compiler_params=pltpu.CompilerParams(
            dimension_semantics=("parallel",)),
    )(x3, w1e, b1, w2, b2, w3, b3)


# ----------------------------------------------------------------------------
# Glue: channels-last im2col + pooling-corner split (coalesced, one-shot ops)
# ----------------------------------------------------------------------------
def _im2col_nhwc(x, kh, kw, kpad):
    """x: [N,H,W,C] -> patches [N,Ho,Wo,kpad], features ordered (kh, kw, c)."""
    N, H, W, C = x.shape
    Ho, Wo = H - kh + 1, W - kw + 1
    cols = [x[:, i:i + Ho, j:j + Wo, :] for i in range(kh) for j in range(kw)]
    k = kh * kw * C
    if kpad > k:
        cols.append(jnp.zeros((N, Ho, Wo, kpad - k), x.dtype))
    return jnp.concatenate(cols, axis=-1), Ho, Wo


def _corner_split(patches, row_order):
    """[N,Ho,Wo,Kp] -> [4, M, Kp]: the 4 corners of each 2x2 pooling window."""
    N, Ho, Wo, Kp = patches.shape
    assert Ho % 2 == 0 and Wo % 2 == 0
    Ho2, Wo2 = Ho // 2, Wo // 2
    p = patches.reshape(N, Ho2, 2, Wo2, 2, Kp)   # (n, ph, dh, pw, dw, k)
    if row_order == "nhw":                       # rows = (n, ph, pw)
        p = p.transpose(2, 4, 0, 1, 3, 5)
    else:                                        # rows = (ph, pw, n)
        p = p.transpose(2, 4, 1, 3, 0, 5)
    return p.reshape(4, N * Ho2 * Wo2, Kp), Ho2, Wo2


# ----------------------------------------------------------------------------
# Parameters (shapes from Net.__init__) + one-time padding/permutation prep
# ----------------------------------------------------------------------------
def init_params(key):
    ks = jax.random.split(key, 10)
    scale = 0.1
    return {
        "w1": scale * jax.random.normal(ks[0], (6, 3, 5, 5), jnp.float32),
        "b1": scale * jax.random.normal(ks[1], (6,), jnp.float32),
        "w2": scale * jax.random.normal(ks[2], (16, 6, 5, 5), jnp.float32),
        "b2": scale * jax.random.normal(ks[3], (16,), jnp.float32),
        "wf1": scale * jax.random.normal(ks[4], (400, 120), jnp.float32),
        "bf1": scale * jax.random.normal(ks[5], (120,), jnp.float32),
        "wf2": scale * jax.random.normal(ks[6], (120, 84), jnp.float32),
        "bf2": scale * jax.random.normal(ks[7], (84,), jnp.float32),
        "wf3": scale * jax.random.normal(ks[8], (84, 10), jnp.float32),
        "bf3": scale * jax.random.normal(ks[9], (10,), jnp.float32),
    }


def prepare_params(p):
    """Pad all weights to 128-lane tiles; fold flatten-order permutation in."""
    CP = LANES
    # conv weights: (Cout, Cin, kh, kw) -> rows ordered (kh, kw, Cin)
    w1m = p["w1"].transpose(2, 3, 1, 0).reshape(75, 6)
    w2m = p["w2"].transpose(2, 3, 1, 0).reshape(150, 16)
    w1p = jnp.zeros((CP, CP), jnp.float32).at[:75, :6].set(w1m)
    w2p = jnp.zeros((2 * CP, CP), jnp.float32).at[:150, :16].set(w2m)
    b1p = jnp.zeros((1, CP), jnp.float32).at[0, :6].set(p["b1"])
    b2p = jnp.zeros((1, CP), jnp.float32).at[0, :16].set(p["b2"])
    # fc1: PyTorch flatten is (c, h, w); our activation is (h, w)-major with
    # channels in lanes -> split wf1 per spatial position s = h*5+w.
    wf1_r = p["wf1"].reshape(16, 5, 5, 120).transpose(1, 2, 0, 3)  # (h,w,c,o)
    w1e = (jnp.zeros((25, CP, CP), jnp.float32)
           .at[:, :16, :120].set(wf1_r.reshape(25, 16, 120)))
    bf1p = jnp.zeros((1, CP), jnp.float32).at[0, :120].set(p["bf1"])
    wf2p = jnp.zeros((CP, CP), jnp.float32).at[:120, :84].set(p["wf2"])
    bf2p = jnp.zeros((1, CP), jnp.float32).at[0, :84].set(p["bf2"])
    wf3p = jnp.zeros((CP, CP), jnp.float32).at[:84, :10].set(p["wf3"])
    bf3p = jnp.zeros((1, CP), jnp.float32).at[0, :10].set(p["bf3"])
    return dict(w1p=w1p, b1p=b1p, w2p=w2p, b2p=b2p, w1e=w1e, bf1p=bf1p,
                wf2p=wf2p, bf2p=bf2p, wf3p=wf3p, bf3p=bf3p)


# ----------------------------------------------------------------------------
# Forward pass (mirrors Net.forward)
# ----------------------------------------------------------------------------
def net_forward(x_nchw, pp):
    # x: [N, 3, 32, 32]  (CIFAR-10 size required by fc1 = 16*5*5)
    N = x_nchw.shape[0]
    x = jnp.transpose(x_nchw, (0, 2, 3, 1))               # one-time NCHW->NHWC

    # conv1 + ReLU + pool (fused kernel)
    pat1, _, _ = _im2col_nhwc(x, 5, 5, LANES)              # [N, 28, 28, 128]
    p41, hp1, wp1 = _corner_split(pat1, "nhw")             # [4, N*14*14, 128]
    a1 = conv_pool_relu(p41, pp["w1p"], pp["b1p"])         # [N*196, 128]
    a1 = a1.reshape(N, hp1, wp1, LANES)[..., :6]           # [N, 14, 14, 6]

    # conv2 + ReLU + pool (fused kernel)
    pat2, _, _ = _im2col_nhwc(a1, 5, 5, 2 * LANES)         # [N, 10, 10, 256]
    p42, hp2, wp2 = _corner_split(pat2, "hwn")             # [4, 25*N, 256]
    a2 = conv_pool_relu(p42, pp["w2p"], pp["b2p"])         # [25*N, 128]
    a2 = a2.reshape(hp2 * wp2, N, LANES)                   # [25, N, 128] (free)

    # fc1 + fc2 + fc3 fused (flatten absorbed into w1e)
    out = fc_stack(a2, pp["w1e"], pp["bf1p"], pp["wf2p"], pp["bf2p"],
                   pp["wf3p"], pp["bf3p"])                 # [N, 128]
    return out[:, :10]


# Pure-jnp reference (same math, no Pallas) for a sanity check.
def net_forward_ref(x, p):
    def conv(x, w, b):
        y = jax.lax.conv_general_dilated(
            x, w, window_strides=(1, 1), padding="VALID",
            dimension_numbers=("NCHW", "OIHW", "NCHW"))
        return jax.nn.relu(y + b[None, :, None, None])

    def pool(x):
        return jax.lax.reduce_window(
            x, -jnp.inf, jax.lax.max, (1, 1, 2, 2), (1, 1, 2, 2), "VALID")

    x = pool(conv(x, p["w1"], p["b1"]))
    x = pool(conv(x, p["w2"], p["b2"]))
    x = x.reshape(x.shape[0], 400)
    x = jax.nn.relu(x @ p["wf1"] + p["bf1"])
    x = jax.nn.relu(x @ p["wf2"] + p["bf2"])
    return x @ p["wf3"] + p["bf3"]


if __name__ == "__main__":
    key = jax.random.PRNGKey(0)
    k_x, k_p = jax.random.split(key)
    # Spatial size must be 32x32 so that flatten == 16*5*5 = 400 (as in Net).
    x = jax.random.normal(k_x, (2, 3, 32, 32), jnp.float32)
    params = init_params(k_p)
    pp = prepare_params(params)

    fwd = jax.jit(net_forward)
    out = jax.block_until_ready(fwd(x, pp))
    assert out.shape == (2, 10), out.shape

    ref = jax.block_until_ready(net_forward_ref(x, params))
    assert jnp.allclose(out, ref, atol=1e-4, rtol=1e-4), (
        float(jnp.max(jnp.abs(out - ref))))

    print("KERNEL_OK")
</pallas_src>

<mosaic_0001>
module attributes {stable_mosaic.version = 11 : i64} {
  func.func @_conv_pool_relu_kernel(%arg0: i32, %arg1: memref<4x392x128xf32, #tpu.memory_space<vmem>>, %arg2: memref<128x128xf32, #tpu.memory_space<vmem>>, %arg3: memref<1x128xf32, #tpu.memory_space<vmem>>, %arg4: memref<392x128xf32, #tpu.memory_space<vmem>>) attributes {dimension_semantics = [#tpu.dimension_semantics<parallel>], iteration_bounds = array<i64: 1>, scalar_prefetch = 0 : i64, scratch_operands = 0 : i64, tpu.core_type = #tpu.core_type<tc>, window_params = [{transform_indices = @transform_0, window_bounds = array<i64: 4, 392, 128>}, {pipeline_mode = #tpu.pipeline_mode<synchronous>, transform_indices = @transform_1, window_bounds = array<i64: 128, 128>}, {pipeline_mode = #tpu.pipeline_mode<synchronous>, transform_indices = @transform_2, window_bounds = array<i64: 1, 128>}, {transform_indices = @transform_3, window_bounds = array<i64: 392, 128>}]} {
    %c0 = arith.constant 0 : index
    %c0_0 = arith.constant 0 : index
    %0 = vector.load %arg2[%c0, %c0_0] : memref<128x128xf32, #tpu.memory_space<vmem>>, vector<128x128xf32>
    %c0_1 = arith.constant 0 : index
    %c0_2 = arith.constant 0 : index
    %c0_3 = arith.constant 0 : index
    %1 = vector.load %arg1[%c0_1, %c0_2, %c0_3] : memref<4x392x128xf32, #tpu.memory_space<vmem>>, vector<1x392x128xf32>
    %2 = vector.shape_cast %1 : vector<1x392x128xf32> to vector<392x128xf32>
    %cst = arith.constant dense<0.000000e+00> : vector<392x128xf32>
    %3 = tpu.matmul %2, %0, %cst {dimension_numbers = #tpu.dot_dimension_numbers<[1], [0], [0], [1], [0, 0, 1, 1], [], []>} : vector<392x128xf32>, vector<128x128xf32>, vector<392x128xf32> -> vector<392x128xf32>
    %c1 = arith.constant 1 : index
    %c0_4 = arith.constant 0 : index
    %c0_5 = arith.constant 0 : index
    %4 = vector.load %arg1[%c1, %c0_4, %c0_5] : memref<4x392x128xf32, #tpu.memory_space<vmem>>, vector<1x392x128xf32>
    %5 = vector.shape_cast %4 : vector<1x392x128xf32> to vector<392x128xf32>
    %cst_6 = arith.constant dense<0.000000e+00> : vector<392x128xf32>
    %6 = tpu.matmul %5, %0, %cst_6 {dimension_numbers = #tpu.dot_dimension_numbers<[1], [0], [0], [1], [0, 0, 1, 1], [], []>} : vector<392x128xf32>, vector<128x128xf32>, vector<392x128xf32> -> vector<392x128xf32>
    %7 = arith.maximumf %3, %6 : vector<392x128xf32>
    %c2 = arith.constant 2 : index
    %c0_7 = arith.constant 0 : index
    %c0_8 = arith.constant 0 : index
    %8 = vector.load %arg1[%c2, %c0_7, %c0_8] : memref<4x392x128xf32, #tpu.memory_space<vmem>>, vector<1x392x128xf32>
    %9 = vector.shape_cast %8 : vector<1x392x128xf32> to vector<392x128xf32>
    %cst_9 = arith.constant dense<0.000000e+00> : vector<392x128xf32>
    %10 = tpu.matmul %9, %0, %cst_9 {dimension_numbers = #tpu.dot_dimension_numbers<[1], [0], [0], [1], [0, 0, 1, 1], [], []>} : vector<392x128xf32>, vector<128x128xf32>, vector<392x128xf32> -> vector<392x128xf32>
    %11 = arith.maximumf %7, %10 : vector<392x128xf32>
    %c3 = arith.constant 3 : index
    %c0_10 = arith.constant 0 : index
    %c0_11 = arith.constant 0 : index
    %12 = vector.load %arg1[%c3, %c0_10, %c0_11] : memref<4x392x128xf32, #tpu.memory_space<vmem>>, vector<1x392x128xf32>
    %13 = vector.shape_cast %12 : vector<1x392x128xf32> to vector<392x128xf32>
    %cst_12 = arith.constant dense<0.000000e+00> : vector<392x128xf32>
    %14 = tpu.matmul %13, %0, %cst_12 {dimension_numbers = #tpu.dot_dimension_numbers<[1], [0], [0], [1], [0, 0, 1, 1], [], []>} : vector<392x128xf32>, vector<128x128xf32>, vector<392x128xf32> -> vector<392x128xf32>
    %15 = arith.maximumf %11, %14 : vector<392x128xf32>
    %c0_13 = arith.constant 0 : index
    %c0_14 = arith.constant 0 : index
    %16 = vector.load %arg3[%c0_13, %c0_14] : memref<1x128xf32, #tpu.memory_space<vmem>>, vector<1x128xf32>
    %17 = vector.broadcast %16 : vector<1x128xf32> to vector<392x128xf32>
    %18 = arith.addf %15, %17 : vector<392x128xf32>
    %cst_15 = arith.constant 0.000000e+00 : f32
    %19 = vector.broadcast %cst_15 : f32 to vector<392x128xf32>
    %20 = arith.maximumf %18, %19 : vector<392x128xf32>
    %c0_16 = arith.constant 0 : index
    %c0_17 = arith.constant 0 : index
    %21 = vector.load %arg4[%c0_16, %c0_17] : memref<392x128xf32, #tpu.memory_space<vmem>>, vector<392x128xf32>
    tpu.vector_store %arg4[%c0_16, %c0_17], %20 {strides = array<i32>} : memref<392x128xf32, #tpu.memory_space<vmem>>, vector<392x128xf32>,
    return
  }
  func.func @transform_0(%arg0: i32) -> (i32, i32, i32) {
    %c0_i32 = arith.constant 0 : i32
    %c0_i32_0 = arith.constant 0 : i32
    %c0_i32_1 = arith.constant 0 : i32
    return %c0_i32, %arg0, %c0_i32_0 : i32, i32, i32
  }
  func.func @transform_1(%arg0: i32) -> (i32, i32) {
    %c0_i32 = arith.constant 0 : i32
    %c0_i32_0 = arith.constant 0 : i32
    %c0_i32_1 = arith.constant 0 : i32
    return %c0_i32, %c0_i32_0 : i32, i32
  }
  func.func @transform_2(%arg0: i32) -> (i32, i32) {
    %c0_i32 = arith.constant 0 : i32
    %c0_i32_0 = arith.constant 0 : i32
    %c0_i32_1 = arith.constant 0 : i32
    return %c0_i32, %c0_i32_0 : i32, i32
  }
  func.func @transform_3(%arg0: i32) -> (i32, i32) {
    %c0_i32 = arith.constant 0 : i32
    %c0_i32_0 = arith.constant 0 : i32
    return %arg0, %c0_i32 : i32, i32
  }
}

module attributes {stable_mosaic.version = 11 : i64} {
  func.func @_conv_pool_relu_kernel(%arg0: i32, %arg1: memref<4x50x256xf32, #tpu.memory_space<vmem>>, %arg2: memref<256x128xf32, #tpu.memory_space<vmem>>, %arg3: memref<1x128xf32, #tpu.memory_space<vmem>>, %arg4: memref<50x128xf32, #tpu.memory_space<vmem>>) attributes {dimension_semantics = [#tpu.dimension_semantics<parallel>], iteration_bounds = array<i64: 1>, scalar_prefetch = 0 : i64, scratch_operands = 0 : i64, tpu.core_type = #tpu.core_type<tc>, window_params = [{transform_indices = @transform_0, window_bounds = array<i64: 4, 50, 256>}, {pipeline_mode = #tpu.pipeline_mode<synchronous>, transform_indices = @transform_1, window_bounds = array<i64: 256, 128>}, {pipeline_mode = #tpu.pipeline_mode<synchronous>, transform_indices = @transform_2, window_bounds = array<i64: 1, 128>}, {transform_indices = @transform_3, window_bounds = array<i64: 50, 128>}]} {
    %c0 = arith.constant 0 : index
    %c0_0 = arith.constant 0 : index
    %0 = vector.load %arg2[%c0, %c0_0] : memref<256x128xf32, #tpu.memory_space<vmem>>, vector<256x128xf32>
    %c0_1 = arith.constant 0 : index
    %c0_2 = arith.constant 0 : index
    %c0_3 = arith.constant 0 : index
    %1 = vector.load %arg1[%c0_1, %c0_2, %c0_3] : memref<4x50x256xf32, #tpu.memory_space<vmem>>, vector<1x50x256xf32>
    %2 = vector.shape_cast %1 : vector<1x50x256xf32> to vector<50x256xf32>
    %cst = arith.constant dense<0.000000e+00> : vector<50x128xf32>
    %3 = tpu.matmul %2, %0, %cst {dimension_numbers = #tpu.dot_dimension_numbers<[1], [0], [0], [1], [0, 0, 1, 1], [], []>} : vector<50x256xf32>, vector<256x128xf32>, vector<50x128xf32> -> vector<50x128xf32>
    %c1 = arith.constant 1 : index
    %c0_4 = arith.constant 0 : index
    %c0_5 = arith.constant 0 : index
    %4 = vector.load %arg1[%c1, %c0_4, %c0_5] : memref<4x50x256xf32, #tpu.memory_space<vmem>>, vector<1x50x256xf32>
    %5 = vector.shape_cast %4 : vector<1x50x256xf32> to vector<50x256xf32>
    %cst_6 = arith.constant dense<0.000000e+00> : vector<50x128xf32>
    %6 = tpu.matmul %5, %0, %cst_6 {dimension_numbers = #tpu.dot_dimension_numbers<[1], [0], [0], [1], [0, 0, 1, 1], [], []>} : vector<50x256xf32>, vector<256x128xf32>, vector<50x128xf32> -> vector<50x128xf32>
    %7 = arith.maximumf %3, %6 : vector<50x128xf32>
    %c2 = arith.constant 2 : index
    %c0_7 = arith.constant 0 : index
    %c0_8 = arith.constant 0 : index
    %8 = vector.load %arg1[%c2, %c0_7, %c0_8] : memref<4x50x256xf32, #tpu.memory_space<vmem>>, vector<1x50x256xf32>
    %9 = vector.shape_cast %8 : vector<1x50x256xf32> to vector<50x256xf32>
    %cst_9 = arith.constant dense<0.000000e+00> : vector<50x128xf32>
    %10 = tpu.matmul %9, %0, %cst_9 {dimension_numbers = #tpu.dot_dimension_numbers<[1], [0], [0], [1], [0, 0, 1, 1], [], []>} : vector<50x256xf32>, vector<256x128xf32>, vector<50x128xf32> -> vector<50x128xf32>
    %11 = arith.maximumf %7, %10 : vector<50x128xf32>
    %c3 = arith.constant 3 : index
    %c0_10 = arith.constant 0 : index
    %c0_11 = arith.constant 0 : index
    %12 = vector.load %arg1[%c3, %c0_10, %c0_11] : memref<4x50x256xf32, #tpu.memory_space<vmem>>, vector<1x50x256xf32>
    %13 = vector.shape_cast %12 : vector<1x50x256xf32> to vector<50x256xf32>
    %cst_12 = arith.constant dense<0.000000e+00> : vector<50x128xf32>
    %14 = tpu.matmul %13, %0, %cst_12 {dimension_numbers = #tpu.dot_dimension_numbers<[1], [0], [0], [1], [0, 0, 1, 1], [], []>} : vector<50x256xf32>, vector<256x128xf32>, vector<50x128xf32> -> vector<50x128xf32>
    %15 = arith.maximumf %11, %14 : vector<50x128xf32>
    %c0_13 = arith.constant 0 : index
    %c0_14 = arith.constant 0 : index
    %16 = vector.load %arg3[%c0_13, %c0_14] : memref<1x128xf32, #tpu.memory_space<vmem>>, vector<1x128xf32>
    %17 = vector.broadcast %16 : vector<1x128xf32> to vector<50x128xf32>
    %18 = arith.addf %15, %17 : vector<50x128xf32>
    %cst_15 = arith.constant 0.000000e+00 : f32
    %19 = vector.broadcast %cst_15 : f32 to vector<50x128xf32>
    %20 = arith.maximumf %18, %19 : vector<50x128xf32>
    %c0_16 = arith.constant 0 : index
    %c0_17 = arith.constant 0 : index
    %21 = vector.load %arg4[%c0_16, %c0_17] : memref<50x128xf32, #tpu.memory_space<vmem>>, vector<50x128xf32>
    tpu.vector_store %arg4[%c0_16, %c0_17], %20 {strides = array<i32>} : memref<50x128xf32, #tpu.memory_space<vmem>>, vector<50x128xf32>,
    return
  }
  func.func @transform_0(%arg0: i32) -> (i32, i32, i32) {
    %c0_i32 = arith.constant 0 : i32
    %c0_i32_0 = arith.constant 0 : i32
    %c0_i32_1 = arith.constant 0 : i32
    return %c0_i32, %arg0, %c0_i32_0 : i32, i32, i32
  }
  func.func @transform_1(%arg0: i32) -> (i32, i32) {
    %c0_i32 = arith.constant 0 : i32
    %c0_i32_0 = arith.constant 0 : i32
    %c0_i32_1 = arith.constant 0 : i32
    return %c0_i32, %c0_i32_0 : i32, i32
  }
  func.func @transform_2(%arg0: i32) -> (i32, i32) {
    %c0_i32 = arith.constant 0 : i32
    %c0_i32_0 = arith.constant 0 : i32
    %c0_i32_1 = arith.constant 0 : i32
    return %c0_i32, %c0_i32_0 : i32, i32
  }
  func.func @transform_3(%arg0: i32) -> (i32, i32) {
    %c0_i32 = arith.constant 0 : i32
    %c0_i32_0 = arith.constant 0 : i32
    return %arg0, %c0_i32 : i32, i32
  }
}

module attributes {stable_mosaic.version = 11 : i64} {
  func.func @_fc_stack_kernel(%arg0: i32, %arg1: memref<25x2x128xf32, #tpu.memory_space<vmem>>, %arg2: memref<25x128x128xf32, #tpu.memory_space<vmem>>, %arg3: memref<1x128xf32, #tpu.memory_space<vmem>>, %arg4: memref<128x128xf32, #tpu.memory_space<vmem>>, %arg5: memref<1x128xf32, #tpu.memory_space<vmem>>, %arg6: memref<128x128xf32, #tpu.memory_space<vmem>>, %arg7: memref<1x128xf32, #tpu.memory_space<vmem>>, %arg8: memref<2x128xf32, #tpu.memory_space<vmem>>) attributes {dimension_semantics = [#tpu.dimension_semantics<parallel>], iteration_bounds = array<i64: 1>, scalar_prefetch = 0 : i64, scratch_operands = 0 : i64, tpu.core_type = #tpu.core_type<tc>, window_params = [{transform_indices = @transform_0, window_bounds = array<i64: 25, 2, 128>}, {pipeline_mode = #tpu.pipeline_mode<synchronous>, transform_indices = @transform_1, window_bounds = array<i64: 25, 128, 128>}, {pipeline_mode = #tpu.pipeline_mode<synchronous>, transform_indices = @transform_2, window_bounds = array<i64: 1, 128>}, {pipeline_mode = #tpu.pipeline_mode<synchronous>, transform_indices = @transform_3, window_bounds = array<i64: 128, 128>}, {pipeline_mode = #tpu.pipeline_mode<synchronous>, transform_indices = @transform_4, window_bounds = array<i64: 1, 128>}, {pipeline_mode = #tpu.pipeline_mode<synchronous>, transform_indices = @transform_5, window_bounds = array<i64: 128, 128>}, {pipeline_mode = #tpu.pipeline_mode<synchronous>, transform_indices = @transform_6, window_bounds = array<i64: 1, 128>}, {transform_indices = @transform_7, window_bounds = array<i64: 2, 128>}]} {
    %c0 = arith.constant 0 : index
    %c0_0 = arith.constant 0 : index
    %c0_1 = arith.constant 0 : index
    %0 = vector.load %arg1[%c0, %c0_0, %c0_1] : memref<25x2x128xf32, #tpu.memory_space<vmem>>, vector<1x2x128xf32>
    %1 = vector.shape_cast %0 : vector<1x2x128xf32> to vector<2x128xf32>
    %c0_2 = arith.constant 0 : index
    %c0_3 = arith.constant 0 : index
    %c0_4 = arith.constant 0 : index
    %2 = vector.load %arg2[%c0_2, %c0_3, %c0_4] : memref<25x128x128xf32, #tpu.memory_space<vmem>>, vector<1x128x128xf32>
    %3 = vector.shape_cast %2 : vector<1x128x128xf32> to vector<128x128xf32>
    %cst = arith.constant dense<0.000000e+00> : vector<2x128xf32>
    %4 = tpu.matmul %1, %3, %cst {dimension_numbers = #tpu.dot_dimension_numbers<[1], [0], [0], [1], [0, 0, 1, 1], [], []>} : vector<2x128xf32>, vector<128x128xf32>, vector<2x128xf32> -> vector<2x128xf32>
    %c1 = arith.constant 1 : index
    %c0_5 = arith.constant 0 : index
    %c0_6 = arith.constant 0 : index
    %5 = vector.load %arg1[%c1, %c0_5, %c0_6] : memref<25x2x128xf32, #tpu.memory_space<vmem>>, vector<1x2x128xf32>
    %6 = vector.shape_cast %5 : vector<1x2x128xf32> to vector<2x128xf32>
    %c1_7 = arith.constant 1 : index
    %c0_8 = arith.constant 0 : index
    %c0_9 = arith.constant 0 : index
    %7 = vector.load %arg2[%c1_7, %c0_8, %c0_9] : memref<25x128x128xf32, #tpu.memory_space<vmem>>, vector<1x128x128xf32>
    %8 = vector.shape_cast %7 : vector<1x128x128xf32> to vector<128x128xf32>
    %cst_10 = arith.constant dense<0.000000e+00> : vector<2x128xf32>
    %9 = tpu.matmul %6, %8, %cst_10 {dimension_numbers = #tpu.dot_dimension_numbers<[1], [0], [0], [1], [0, 0, 1, 1], [], []>} : vector<2x128xf32>, vector<128x128xf32>, vector<2x128xf32> -> vector<2x128xf32>
    %10 = arith.addf %4, %9 : vector<2x128xf32>
    %c2 = arith.constant 2 : index
    %c0_11 = arith.constant 0 : index
    %c0_12 = arith.constant 0 : index
    %11 = vector.load %arg1[%c2, %c0_11, %c0_12] : memref<25x2x128xf32, #tpu.memory_space<vmem>>, vector<1x2x128xf32>
    %12 = vector.shape_cast %11 : vector<1x2x128xf32> to vector<2x128xf32>
    %c2_13 = arith.constant 2 : index
    %c0_14 = arith.constant 0 : index
    %c0_15 = arith.constant 0 : index
    %13 = vector.load %arg2[%c2_13, %c0_14, %c0_15] : memref<25x128x128xf32, #tpu.memory_space<vmem>>, vector<1x128x128xf32>
    %14 = vector.shape_cast %13 : vector<1x128x128xf32> to vector<128x128xf32>
    %cst_16 = arith.constant dense<0.000000e+00> : vector<2x128xf32>
    %15 = tpu.matmul %12, %14, %cst_16 {dimension_numbers = #tpu.dot_dimension_numbers<[1], [0], [0], [1], [0, 0, 1, 1], [], []>} : vector<2x128xf32>, vector<128x128xf32>, vector<2x128xf32> -> vector<2x128xf32>
    %16 = arith.addf %10, %15 : vector<2x128xf32>
    %c3 = arith.constant 3 : index
    %c0_17 = arith.constant 0 : index
    %c0_18 = arith.constant 0 : index
    %17 = vector.load %arg1[%c3, %c0_17, %c0_18] : memref<25x2x128xf32, #tpu.memory_space<vmem>>, vector<1x2x128xf32>
    %18 = vector.shape_cast %17 : vector<1x2x128xf32> to vector<2x128xf32>
    %c3_19 = arith.constant 3 : index
    %c0_20 = arith.constant 0 : index
    %c0_21 = arith.constant 0 : index
    %19 = vector.load %arg2[%c3_19, %c0_20, %c0_21] : memref<25x128x128xf32, #tpu.memory_space<vmem>>, vector<1x128x128xf32>
    %20 = vector.shape_cast %19 : vector<1x128x128xf32> to vector<128x128xf32>
    %cst_22 = arith.constant dense<0.000000e+00> : vector<2x128xf32>
    %21 = tpu.matmul %18, %20, %cst_22 {dimension_numbers = #tpu.dot_dimension_numbers<[1], [0], [0], [1], [0, 0, 1, 1], [], []>} : vector<2x128xf32>, vector<128x128xf32>, vector<2x128xf32> -> vector<2x128xf32>
    %22 = arith.addf %16, %21 : vector<2x128xf32>
    %c4 = arith.constant 4 : index
    %c0_23 = arith.constant 0 : index
    %c0_24 = arith.constant 0 : index
    %23 = vector.load %arg1[%c4, %c0_23, %c0_24] : memref<25x2x128xf32, #tpu.memory_space<vmem>>, vector<1x2x128xf32>
    %24 = vector.shape_cast %23 : vector<1x2x128xf32> to vector<2x128xf32>
    %c4_25 = arith.constant 4 : index
    %c0_26 = arith.constant 0 : index
    %c0_27 = arith.constant 0 : index
    %25 = vector.load %arg2[%c4_25, %c0_26, %c0_27] : memref<25x128x128xf32, #tpu.memory_space<vmem>>, vector<1x128x128xf32>
    %26 = vector.shape_cast %25 : vector<1x128x128xf32> to vector<128x128xf32>
    %cst_28 = arith.constant dense<0.000000e+00> : vector<2x128xf32>
    %27 = tpu.matmul %24, %26, %cst_28 {dimension_numbers = #tpu.dot_dimension_numbers<[1], [0], [0], [1], [0, 0, 1, 1], [], []>} : vector<2x128xf32>, vector<128x128xf32>, vector<2x128xf32> -> vector<2x128xf32>
    %28 = arith.addf %22, %27 : vector<2x128xf32>
    %c5 = arith.constant 5 : index
    %c0_29 = arith.constant 0 : index
    %c0_30 = arith.constant 0 : index
    %29 = vector.load %arg1[%c5, %c0_29, %c0_30] : memref<25x2x128xf32, #tpu.memory_space<vmem>>, vector<1x2x128xf32>
    %30 = vector.shape_cast %29 : vector<1x2x128xf32> to vector<2x128xf32>
    %c5_31 = arith.constant 5 : index
    %c0_32 = arith.constant 0 : index
    %c0_33 = arith.constant 0 : index
    %31 = vector.load %arg2[%c5_31, %c0_32, %c0_33] : memref<25x128x128xf32, #tpu.memory_space<vmem>>, vector<1x128x128xf32>
    %32 = vector.shape_cast %31 : vector<1x128x128xf32> to vector<128x128xf32>
    %cst_34 = arith.constant dense<0.000000e+00> : vector<2x128xf32>
    %33 = tpu.matmul %30, %32, %cst_34 {dimension_numbers = #tpu.dot_dimension_numbers<[1], [0], [0], [1], [0, 0, 1, 1], [], []>} : vector<2x128xf32>, vector<128x128xf32>, vector<2x128xf32> -> vector<2x128xf32>
    %34 = arith.addf %28, %33 : vector<2x128xf32>
    %c6 = arith.constant 6 : index
    %c0_35 = arith.constant 0 : index
    %c0_36 = arith.constant 0 : index
    %35 = vector.load %arg1[%c6, %c0_35, %c0_36] : memref<25x2x128xf32, #tpu.memory_space<vmem>>, vector<1x2x128xf32>
    %36 = vector.shape_cast %35 : vector<1x2x128xf32> to vector<2x128xf32>
    %c6_37 = arith.constant 6 : index
    %c0_38 = arith.constant 0 : index
    %c0_39 = arith.constant 0 : index
    %37 = vector.load %arg2[%c6_37, %c0_38, %c0_39] : memref<25x128x128xf32, #tpu.memory_space<vmem>>, vector<1x128x128xf32>
    %38 = vector.shape_cast %37 : vector<1x128x128xf32> to vector<128x128xf32>
    %cst_40 = arith.constant dense<0.000000e+00> : vector<2x128xf32>
    %39 = tpu.matmul %36, %38, %cst_40 {dimension_numbers = #tpu.dot_dimension_numbers<[1], [0], [0], [1], [0, 0, 1, 1], [], []>} : vector<2x128xf32>, vector<128x128xf32>, vector<2x128xf32> -> vector<2x128xf32>
    %40 = arith.addf %34, %39 : vector<2x128xf32>
    %c7 = arith.constant 7 : index
    %c0_41 = arith.constant 0 : index
    %c0_42 = arith.constant 0 : index
    %41 = vector.load %arg1[%c7, %c0_41, %c0_42] : memref<25x2x128xf32, #tpu.memory_space<vmem>>, vector<1x2x128xf32>
    %42 = vector.shape_cast %41 : vector<1x2x128xf32> to vector<2x128xf32>
    %c7_43 = arith.constant 7 : index
    %c0_44 = arith.constant 0 : index
    %c0_45 = arith.constant 0 : index
    %43 = vector.load %arg2[%c7_43, %c0_44, %c0_45] : memref<25x128x128xf32, #tpu.memory_space<vmem>>, vector<1x128x128xf32>
    %44 = vector.shape_cast %43 : vector<1x128x128xf32> to vector<128x128xf32>
    %cst_46 = arith.constant dense<0.000000e+00> : vector<2x128xf32>
    %45 = tpu.matmul %42, %44, %cst_46 {dimension_numbers = #tpu.dot_dimension_numbers<[1], [0], [0], [1], [0, 0, 1, 1], [], []>} : vector<2x128xf32>, vector<128x128xf32>, vector<2x128xf32> -> vector<2x128xf32>
    %46 = arith.addf %40, %45 : vector<2x128xf32>
    %c8 = arith.constant 8 : index
    %c0_47 = arith.constant 0 : index
    %c0_48 = arith.constant 0 : index
    %47 = vector.load %arg1[%c8, %c0_47, %c0_48] : memref<25x2x128xf32, #tpu.memory_space<vmem>>, vector<1x2x128xf32>
    %48 = vector.shape_cast %47 : vector<1x2x128xf32> to vector<2x128xf32>
    %c8_49 = arith.constant 8 : index
    %c0_50 = arith.constant 0 : index
    %c0_51 = arith.constant 0 : index
    %49 = vector.load %arg2[%c8_49, %c0_50, %c0_51] : memref<25x128x128xf32, #tpu.memory_space<vmem>>, vector<1x128x128xf32>
    %50 = vector.shape_cast %49 : vector<1x128x128xf32> to vector<128x128xf32>
    %cst_52 = arith.constant dense<0.000000e+00> : vector<2x128xf32>
    %51 = tpu.matmul %48, %50, %cst_52 {dimension_numbers = #tpu.dot_dimension_numbers<[1], [0], [0], [1], [0, 0, 1, 1], [], []>} : vector<2x128xf32>, vector<128x128xf32>, vector<2x128xf32> -> vector<2x128xf32>
    %52 = arith.addf %46, %51 : vector<2x128xf32>
    %c9 = arith.constant 9 : index
    %c0_53 = arith.constant 0 : index
    %c0_54 = arith.constant 0 : index
    %53 = vector.load %arg1[%c9, %c0_53, %c0_54] : memref<25x2x128xf32, #tpu.memory_space<vmem>>, vector<1x2x128xf32>
    %54 = vector.shape_cast %53 : vector<1x2x128xf32> to vector<2x128xf32>
    %c9_55 = arith.constant 9 : index
    %c0_56 = arith.constant 0 : index
    %c0_57 = arith.constant 0 : index
    %55 = vector.load %arg2[%c9_55, %c0_56, %c0_57] : memref<25x128x128xf32, #tpu.memory_space<vmem>>, vector<1x128x128xf32>
    %56 = vector.shape_cast %55 : vector<1x128x128xf32> to vector<128x128xf32>
    %cst_58 = arith.constant dense<0.000000e+00> : vector<2x128xf32>
    %57 = tpu.matmul %54, %56, %cst_58 {dimension_numbers = #tpu.dot_dimension_numbers<[1], [0], [0], [1], [0, 0, 1, 1], [], []>} : vector<2x128xf32>, vector<128x128xf32>, vector<2x128xf32> -> vector<2x128xf32>
    %58 = arith.addf %52, %57 : vector<2x128xf32>
    %c10 = arith.constant 10 : index
    %c0_59 = arith.constant 0 : index
    %c0_60 = arith.constant 0 : index
    %59 = vector.load %arg1[%c10, %c0_59, %c0_60] : memref<25x2x128xf32, #tpu.memory_space<vmem>>, vector<1x2x128xf32>
    %60 = vector.shape_cast %59 : vector<1x2x128xf32> to vector<2x128xf32>
    %c10_61 = arith.constant 10 : index
    %c0_62 = arith.constant 0 : index
    %c0_63 = arith.constant 0 : index
    %61 = vector.load %arg2[%c10_61, %c0_62, %c0_63] : memref<25x128x128xf32, #tpu.memory_space<vmem>>, vector<1x128x128xf32>
    %62 = vector.shape_cast %61 : vector<1x128x128xf32> to vector<128x128xf32>
    %cst_64 = arith.constant dense<0.000000e+00> : vector<2x128xf32>
    %63 = tpu.matmul %60, %62, %cst_64 {dimension_numbers = #tpu.dot_dimension_numbers<[1], [0], [0], [1], [0, 0, 1, 1], [], []>} : vector<2x128xf32>, vector<128x128xf32>, vector<2x128xf32> -> vector<2x128xf32>
    %64 = arith.addf %58, %63 : vector<2x128xf32>
    %c11 = arith.constant 11 : index
    %c0_65 = arith.constant 0 : index
    %c0_66 = arith.constant 0 : index
    %65 = vector.load %arg1[%c11, %c0_65, %c0_66] : memref<25x2x128xf32, #tpu.memory_space<vmem>>, vector<1x2x128xf32>
    %66 = vector.shape_cast %65 : vector<1x2x128xf32> to vector<2x128xf32>
    %c11_67 = arith.constant 11 : index
    %c0_68 = arith.constant 0 : index
    %c0_69 = arith.constant 0 : index
    %67 = vector.load %arg2[%c11_67, %c0_68, %c0_69] : memref<25x128x128xf32, #tpu.memory_space<vmem>>, vector<1x128x128xf32>
    %68 = vector.shape_cast %67 : vector<1x128x128xf32> to vector<128x128xf32>
    %cst_70 = arith.constant dense<0.000000e+00> : vector<2x128xf32>
    %69 = tpu.matmul %66, %68, %cst_70 {dimension_numbers = #tpu.dot_dimension_numbers<[1], [0], [0], [1], [0, 0, 1, 1], [], []>} : vector<2x128xf32>, vector<128x128xf32>, vector<2x128xf32> -> vector<2x128xf32>
    %70 = arith.addf %64, %69 : vector<2x128xf32>
    %c12 = arith.constant 12 : index
    %c0_71 = arith.constant 0 : index
    %c0_72 = arith.constant 0 : index
    %71 = vector.load %arg1[%c12, %c0_71, %c0_72] : memref<25x2x128xf32, #tpu.memory_space<vmem>>, vector<1x2x128xf32>
    %72 = vector.shape_cast %71 : vector<1x2x128xf32> to vector<2x128xf32>
    %c12_73 = arith.constant 12 : index
    %c0_74 = arith.constant 0 : index
    %c0_75 = arith.constant 0 : index
    %73 = vector.load %arg2[%c12_73, %c0_74, %c0_75] : memref<25x128x128xf32, #tpu.memory_space<vmem>>, vector<1x128x128xf32>
    %74 = vector.shape_cast %73 : vector<1x128x128xf32> to vector<128x128xf32>
    %cst_76 = arith.constant dense<0.000000e+00> : vector<2x128xf32>
    %75 = tpu.matmul %72, %74, %cst_76 {dimension_numbers = #tpu.dot_dimension_numbers<[1], [0], [0], [1], [0, 0, 1, 1], [], []>} : vector<2x128xf32>, vector<128x128xf32>, vector<2x128xf32> -> vector<2x128xf32>
    %76 = arith.addf %70, %75 : vector<2x128xf32>
    %c13 = arith.constant 13 : index
    %c0_77 = arith.constant 0 : index
    %c0_78 = arith.constant 0 : index
    %77 = vector.load %arg1[%c13, %c0_77, %c0_78] : memref<25x2x128xf32, #tpu.memory_space<vmem>>, vector<1x2x128xf32>
    %78 = vector.shape_cast %77 : vector<1x2x128xf32> to vector<2x128xf32>
    %c13_79 = arith.constant 13 : index
    %c0_80 = arith.constant 0 : index
    %c0_81 = arith.constant 0 : index
    %79 = vector.load %arg2[%c13_79, %c0_80, %c0_81] : memref<25x128x128xf32, #tpu.memory_space<vmem>>, vector<1x128x128xf32>
    %80 = vector.shape_cast %79 : vector<1x128x128xf32> to vector<128x128xf32>
    %cst_82 = arith.constant dense<0.000000e+00> : vector<2x128xf32>
    %81 = tpu.matmul %78, %80, %cst_82 {dimension_numbers = #tpu.dot_dimension_numbers<[1], [0], [0], [1], [0, 0, 1, 1], [], []>} : vector<2x128xf32>, vector<128x128xf32>, vector<2x128xf32> -> vector<2x128xf32>
    %82 = arith.addf %76, %81 : vector<2x128xf32>
    %c14 = arith.constant 14 : index
    %c0_83 = arith.constant 0 : index
    %c0_84 = arith.constant 0 : index
    %83 = vector.load %arg1[%c14, %c0_83, %c0_84] : memref<25x2x128xf32, #tpu.memory_space<vmem>>, vector<1x2x128xf32>
    %84 = vector.shape_cast %83 : vector<1x2x128xf32> to vector<2x128xf32>
    %c14_85 = arith.constant 14 : index
    %c0_86 = arith.constant 0 : index
    %c0_87 = arith.constant 0 : index
    %85 = vector.load %arg2[%c14_85, %c0_86, %c0_87] : memref<25x128x128xf32, #tpu.memory_space<vmem>>, vector<1x128x128xf32>
    %86 = vector.shape_cast %85 : vector<1x128x128xf32> to vector<128x128xf32>
    %cst_88 = arith.constant dense<0.000000e+00> : vector<2x128xf32>
    %87 = tpu.matmul %84, %86, %cst_88 {dimension_numbers = #tpu.dot_dimension_numbers<[1], [0], [0], [1], [0, 0, 1, 1], [], []>} : vector<2x128xf32>, vector<128x128xf32>, vector<2x128xf32> -> vector<2x128xf32>
    %88 = arith.addf %82, %87 : vector<2x128xf32>
    %c15 = arith.constant 15 : index
    %c0_89 = arith.constant 0 : index
    %c0_90 = arith.constant 0 : index
    %89 = vector.load %arg1[%c15, %c0_89, %c0_90] : memref<25x2x128xf32, #tpu.memory_space<vmem>>, vector<1x2x128xf32>
    %90 = vector.shape_cast %89 : vector<1x2x128xf32> to vector<2x128xf32>
    %c15_91 = arith.constant 15 : index
    %c0_92 = arith.constant 0 : index
    %c0_93 = arith.constant 0 : index
    %91 = vector.load %arg2[%c15_91, %c0_92, %c0_93] : memref<25x128x128xf32, #tpu.memory_space<vmem>>, vector<1x128x128xf32>
    %92 = vector.shape_cast %91 : vector<1x128x128xf32> to vector<128x128xf32>
    %cst_94 = arith.constant dense<0.000000e+00> : vector<2x128xf32>
    %93 = tpu.matmul %90, %92, %cst_94 {dimension_numbers = #tpu.dot_dimension_numbers<[1], [0], [0], [1], [0, 0, 1, 1], [], []>} : vector<2x128xf32>, vector<128x128xf32>, vector<2x128xf32> -> vector<2x128xf32>
    %94 = arith.addf %88, %93 : vector<2x128xf32>
    %c16 = arith.constant 16 : index
    %c0_95 = arith.constant 0 : index
    %c0_96 = arith.constant 0 : index
    %95 = vector.load %arg1[%c16, %c0_95, %c0_96] : memref<25x2x128xf32, #tpu.memory_space<vmem>>, vector<1x2x128xf32>
    %96 = vector.shape_cast %95 : vector<1x2x128xf32> to vector<2x128xf32>
    %c16_97 = arith.constant 16 : index
    %c0_98 = arith.constant 0 : index
    %c0_99 = arith.constant 0 : index
    %97 = vector.load %arg2[%c16_97, %c0_98, %c0_99] : memref<25x128x128xf32, #tpu.memory_space<vmem>>, vector<1x128x128xf32>
    %98 = vector.shape_cast %97 : vector<1x128x128xf32> to vector<128x128xf32>
    %cst_100 = arith.constant dense<0.000000e+00> : vector<2x128xf32>
    %99 = tpu.matmul %96, %98, %cst_100 {dimension_numbers = #tpu.dot_dimension_numbers<[1], [0], [0], [1], [0, 0, 1, 1], [], []>} : vector<2x128xf32>, vector<128x128xf32>, vector<2x128xf32> -> vector<2x128xf32>
    %100 = arith.addf %94, %99 : vector<2x128xf32>
    %c17 = arith.constant 17 : index
    %c0_101 = arith.constant 0 : index
    %c0_102 = arith.constant 0 : index
    %101 = vector.load %arg1[%c17, %c0_101, %c0_102] : memref<25x2x128xf32, #tpu.memory_space<vmem>>, vector<1x2x128xf32>
    %102 = vector.shape_cast %101 : vector<1x2x128xf32> to vector<2x128xf32>
    %c17_103 = arith.constant 17 : index
    %c0_104 = arith.constant 0 : index
    %c0_105 = arith.constant 0 : index
    %103 = vector.load %arg2[%c17_103, %c0_104, %c0_105] : memref<25x128x128xf32, #tpu.memory_space<vmem>>, vector<1x128x128xf32>
    %104 = vector.shape_cast %103 : vector<1x128x128xf32> to vector<128x128xf32>
    %cst_106 = arith.constant dense<0.000000e+00> : vector<2x128xf32>
    %105 = tpu.matmul %102, %104, %cst_106 {dimension_numbers = #tpu.dot_dimension_numbers<[1], [0], [0], [1], [0, 0, 1, 1], [], []>} : vector<2x128xf32>, vector<128x128xf32>, vector<2x128xf32> -> vector<2x128xf32>
    %106 = arith.addf %100, %105 : vector<2x128xf32>
    %c18 = arith.constant 18 : index
    %c0_107 = arith.constant 0 : index
    %c0_108 = arith.constant 0 : index
    %107 = vector.load %arg1[%c18, %c0_107, %c0_108] : memref<25x2x128xf32, #tpu.memory_space<vmem>>, vector<1x2x128xf32>
    %108 = vector.shape_cast %107 : vector<1x2x128xf32> to vector<2x128xf32>
    %c18_109 = arith.constant 18 : index
    %c0_110 = arith.constant 0 : index
    %c0_111 = arith.constant 0 : index
    %109 = vector.load %arg2[%c18_109, %c0_110, %c0_111] : memref<25x128x128xf32, #tpu.memory_space<vmem>>, vector<1x128x128xf32>
    %110 = vector.shape_cast %109 : vector<1x128x128xf32> to vector<128x128xf32>
    %cst_112 = arith.constant dense<0.000000e+00> : vector<2x128xf32>
    %111 = tpu.matmul %108, %110, %cst_112 {dimension_numbers = #tpu.dot_dimension_numbers<[1], [0], [0], [1], [0, 0, 1, 1], [], []>} : vector<2x128xf32>, vector<128x128xf32>, vector<2x128xf32> -> vector<2x128xf32>
    %112 = arith.addf %106, %111 : vector<2x128xf32>
    %c19 = arith.constant 19 : index
    %c0_113 = arith.constant 0 : index
    %c0_114 = arith.constant 0 : index
    %113 = vector.load %arg1[%c19, %c0_113, %c0_114] : memref<25x2x128xf32, #tpu.memory_space<vmem>>, vector<1x2x128xf32>
    %114 = vector.shape_cast %113 : vector<1x2x128xf32> to vector<2x128xf32>
    %c19_115 = arith.constant 19 : index
    %c0_116 = arith.constant 0 : index
    %c0_117 = arith.constant 0 : index
    %115 = vector.load %arg2[%c19_115, %c0_116, %c0_117] : memref<25x128x128xf32, #tpu.memory_space<vmem>>, vector<1x128x128xf32>
    %116 = vector.shape_cast %115 : vector<1x128x128xf32> to vector<128x128xf32>
    %cst_118 = arith.constant dense<0.000000e+00> : vector<2x128xf32>
    %117 = tpu.matmul %114, %116, %cst_118 {dimension_numbers = #tpu.dot_dimension_numbers<[1], [0], [0], [1], [0, 0, 1, 1], [], []>} : vector<2x128xf32>, vector<128x128xf32>, vector<2x128xf32> -> vector<2x128xf32>
    %118 = arith.addf %112, %117 : vector<2x128xf32>
    %c20 = arith.constant 20 : index
    %c0_119 = arith.constant 0 : index
    %c0_120 = arith.constant 0 : index
    %119 = vector.load %arg1[%c20, %c0_119, %c0_120] : memref<25x2x128xf32, #tpu.memory_space<vmem>>, vector<1x2x128xf32>
    %120 = vector.shape_cast %119 : vector<1x2x128xf32> to vector<2x128xf32>
    %c20_121 = arith.constant 20 : index
    %c0_122 = arith.constant 0 : index
    %c0_123 = arith.constant 0 : index
    %121 = vector.load %arg2[%c20_121, %c0_122, %c0_123] : memref<25x128x128xf32, #tpu.memory_space<vmem>>, vector<1x128x128xf32>
    %122 = vector.shape_cast %121 : vector<1x128x128xf32> to vector<128x128xf32>
    %cst_124 = arith.constant dense<0.000000e+00> : vector<2x128xf32>
    %123 = tpu.matmul %120, %122, %cst_124 {dimension_numbers = #tpu.dot_dimension_numbers<[1], [0], [0], [1], [0, 0, 1, 1], [], []>} : vector<2x128xf32>, vector<128x128xf32>, vector<2x128xf32> -> vector<2x128xf32>
    %124 = arith.addf %118, %123 : vector<2x128xf32>
    %c21 = arith.constant 21 : index
    %c0_125 = arith.constant 0 : index
    %c0_126 = arith.constant 0 : index
    %125 = vector.load %arg1[%c21, %c0_125, %c0_126] : memref<25x2x128xf32, #tpu.memory_space<vmem>>, vector<1x2x128xf32>
    %126 = vector.shape_cast %125 : vector<1x2x128xf32> to vector<2x128xf32>
    %c21_127 = arith.constant 21 : index
    %c0_128 = arith.constant 0 : index
    %c0_129 = arith.constant 0 : index
    %127 = vector.load %arg2[%c21_127, %c0_128, %c0_129] : memref<25x128x128xf32, #tpu.memory_space<vmem>>, vector<1x128x128xf32>
    %128 = vector.shape_cast %127 : vector<1x128x128xf32> to vector<128x128xf32>
    %cst_130 = arith.constant dense<0.000000e+00> : vector<2x128xf32>
    %129 = tpu.matmul %126, %128, %cst_130 {dimension_numbers = #tpu.dot_dimension_numbers<[1], [0], [0], [1], [0, 0, 1, 1], [], []>} : vector<2x128xf32>, vector<128x128xf32>, vector<2x128xf32> -> vector<2x128xf32>
    %130 = arith.addf %124, %129 : vector<2x128xf32>
    %c22 = arith.constant 22 : index
    %c0_131 = arith.constant 0 : index
    %c0_132 = arith.constant 0 : index
    %131 = vector.load %arg1[%c22, %c0_131, %c0_132] : memref<25x2x128xf32, #tpu.memory_space<vmem>>, vector<1x2x128xf32>
    %132 = vector.shape_cast %131 : vector<1x2x128xf32> to vector<2x128xf32>
    %c22_133 = arith.constant 22 : index
    %c0_134 = arith.constant 0 : index
    %c0_135 = arith.constant 0 : index
    %133 = vector.load %arg2[%c22_133, %c0_134, %c0_135] : memref<25x128x128xf32, #tpu.memory_space<vmem>>, vector<1x128x128xf32>
    %134 = vector.shape_cast %133 : vector<1x128x128xf32> to vector<128x128xf32>
    %cst_136 = arith.constant dense<0.000000e+00> : vector<2x128xf32>
    %135 = tpu.matmul %132, %134, %cst_136 {dimension_numbers = #tpu.dot_dimension_numbers<[1], [0], [0], [1], [0, 0, 1, 1], [], []>} : vector<2x128xf32>, vector<128x128xf32>, vector<2x128xf32> -> vector<2x128xf32>
    %136 = arith.addf %130, %135 : vector<2x128xf32>
    %c23 = arith.constant 23 : index
    %c0_137 = arith.constant 0 : index
    %c0_138 = arith.constant 0 : index
    %137 = vector.load %arg1[%c23, %c0_137, %c0_138] : memref<25x2x128xf32, #tpu.memory_space<vmem>>, vector<1x2x128xf32>
    %138 = vector.shape_cast %137 : vector<1x2x128xf32> to vector<2x128xf32>
    %c23_139 = arith.constant 23 : index
    %c0_140 = arith.constant 0 : index
    %c0_141 = arith.constant 0 : index
    %139 = vector.load %arg2[%c23_139, %c0_140, %c0_141] : memref<25x128x128xf32, #tpu.memory_space<vmem>>, vector<1x128x128xf32>
    %140 = vector.shape_cast %139 : vector<1x128x128xf32> to vector<128x128xf32>
    %cst_142 = arith.constant dense<0.000000e+00> : vector<2x128xf32>
    %141 = tpu.matmul %138, %140, %cst_142 {dimension_numbers = #tpu.dot_dimension_numbers<[1], [0], [0], [1], [0, 0, 1, 1], [], []>} : vector<2x128xf32>, vector<128x128xf32>, vector<2x128xf32> -> vector<2x128xf32>
    %142 = arith.addf %136, %141 : vector<2x128xf32>
    %c24 = arith.constant 24 : index
    %c0_143 = arith.constant 0 : index
    %c0_144 = arith.constant 0 : index
    %143 = vector.load %arg1[%c24, %c0_143, %c0_144] : memref<25x2x128xf32, #tpu.memory_space<vmem>>, vector<1x2x128xf32>
    %144 = vector.shape_cast %143 : vector<1x2x128xf32> to vector<2x128xf32>
    %c24_145 = arith.constant 24 : index
    %c0_146 = arith.constant 0 : index
    %c0_147 = arith.constant 0 : index
    %145 = vector.load %arg2[%c24_145, %c0_146, %c0_147] : memref<25x128x128xf32, #tpu.memory_space<vmem>>, vector<1x128x128xf32>
    %146 = vector.shape_cast %145 : vector<1x128x128xf32> to vector<128x128xf32>
    %cst_148 = arith.constant dense<0.000000e+00> : vector<2x128xf32>
    %147 = tpu.matmul %144, %146, %cst_148 {dimension_numbers = #tpu.dot_dimension_numbers<[1], [0], [0], [1], [0, 0, 1, 1], [], []>} : vector<2x128xf32>, vector<128x128xf32>, vector<2x128xf32> -> vector<2x128xf32>
    %148 = arith.addf %142, %147 : vector<2x128xf32>
    %c0_149 = arith.constant 0 : index
    %c0_150 = arith.constant 0 : index
    %149 = vector.load %arg3[%c0_149, %c0_150] : memref<1x128xf32, #tpu.memory_space<vmem>>, vector<1x128xf32>
    %150 = vector.broadcast %149 : vector<1x128xf32> to vector<2x128xf32>
    %151 = arith.addf %148, %150 : vector<2x128xf32>
    %cst_151 = arith.constant 0.000000e+00 : f32
    %152 = vector.broadcast %cst_151 : f32 to vector<2x128xf32>
    %153 = arith.maximumf %151, %152 : vector<2x128xf32>
    %c0_152 = arith.constant 0 : index
    %c0_153 = arith.constant 0 : index
    %154 = vector.load %arg4[%c0_152, %c0_153] : memref<128x128xf32, #tpu.memory_space<vmem>>, vector<128x128xf32>
    %cst_154 = arith.constant dense<0.000000e+00> : vector<2x128xf32>
    %155 = tpu.matmul %153, %154, %cst_154 {dimension_numbers = #tpu.dot_dimension_numbers<[1], [0], [0], [1], [0, 0, 1, 1], [], []>} : vector<2x128xf32>, vector<128x128xf32>, vector<2x128xf32> -> vector<2x128xf32>
    %c0_155 = arith.constant 0 : index
    %c0_156 = arith.constant 0 : index
    %156 = vector.load %arg5[%c0_155, %c0_156] : memref<1x128xf32, #tpu.memory_space<vmem>>, vector<1x128xf32>
    %157 = vector.broadcast %156 : vector<1x128xf32> to vector<2x128xf32>
    %158 = arith.addf %155, %157 : vector<2x128xf32>
    %cst_157 = arith.constant 0.000000e+00 : f32
    %159 = vector.broadcast %cst_157 : f32 to vector<2x128xf32>
    %160 = arith.maximumf %158, %159 : vector<2x128xf32>
    %c0_158 = arith.constant 0 : index
    %c0_159 = arith.constant 0 : index
    %161 = vector.load %arg6[%c0_158, %c0_159] : memref<128x128xf32, #tpu.memory_space<vmem>>, vector<128x128xf32>
    %cst_160 = arith.constant dense<0.000000e+00> : vector<2x128xf32>
    %162 = tpu.matmul %160, %161, %cst_160 {dimension_numbers = #tpu.dot_dimension_numbers<[1], [0], [0], [1], [0, 0, 1, 1], [], []>} : vector<2x128xf32>, vector<128x128xf32>, vector<2x128xf32> -> vector<2x128xf32>
    %c0_161 = arith.constant 0 : index
    %c0_162 = arith.constant 0 : index
    %163 = vector.load %arg7[%c0_161, %c0_162] : memref<1x128xf32, #tpu.memory_space<vmem>>, vector<1x128xf32>
    %164 = vector.broadcast %163 : vector<1x128xf32> to vector<2x128xf32>
    %165 = arith.addf %162, %164 : vector<2x128xf32>
    %c0_163 = arith.constant 0 : index
    %c0_164 = arith.constant 0 : index
    %166 = vector.load %arg8[%c0_163, %c0_164] : memref<2x128xf32, #tpu.memory_space<vmem>>, vector<2x128xf32>
    tpu.vector_store %arg8[%c0_163, %c0_164], %165 {strides = array<i32>} : memref<2x128xf32, #tpu.memory_space<vmem>>, vector<2x128xf32>,
    return
  }
  func.func @transform_0(%arg0: i32) -> (i32, i32, i32) {
    %c0_i32 = arith.constant 0 : i32
    %c0_i32_0 = arith.constant 0 : i32
    %c0_i32_1 = arith.constant 0 : i32
    return %c0_i32, %arg0, %c0_i32_0 : i32, i32, i32
  }
  func.func @transform_1(%arg0: i32) -> (i32, i32, i32) {
    %c0_i32 = arith.constant 0 : i32
    %c0_i32_0 = arith.constant 0 : i32
    %c0_i32_1 = arith.constant 0 : i32
    %c0_i32_2 = arith.constant 0 : i32
    return %c0_i32, %c0_i32_0, %c0_i32_1 : i32, i32, i32
  }
  func.func @transform_2(%arg0: i32) -> (i32, i32) {
    %c0_i32 = arith.constant 0 : i32
    %c0_i32_0 = arith.constant 0 : i32
    %c0_i32_1 = arith.constant 0 : i32
    return %c0_i32, %c0_i32_0 : i32, i32
  }
  func.func @transform_3(%arg0: i32) -> (i32, i32) {
    %c0_i32 = arith.constant 0 : i32
    %c0_i32_0 = arith.constant 0 : i32
    %c0_i32_1 = arith.constant 0 : i32
    return %c0_i32, %c0_i32_0 : i32, i32
  }
  func.func @transform_4(%arg0: i32) -> (i32, i32) {
    %c0_i32 = arith.constant 0 : i32
    %c0_i32_0 = arith.constant 0 : i32
    %c0_i32_1 = arith.constant 0 : i32
    return %c0_i32, %c0_i32_0 : i32, i32
  }
  func.func @transform_5(%arg0: i32) -> (i32, i32) {
    %c0_i32 = arith.constant 0 : i32
    %c0_i32_0 = arith.constant 0 : i32
    %c0_i32_1 = arith.constant 0 : i32
    return %c0_i32, %c0_i32_0 : i32, i32
  }
  func.func @transform_6(%arg0: i32) -> (i32, i32) {
    %c0_i32 = arith.constant 0 : i32
    %c0_i32_0 = arith.constant 0 : i32
    %c0_i32_1 = arith.constant 0 : i32
    return %c0_i32, %c0_i32_0 : i32, i32
  }
  func.func @transform_7(%arg0: i32) -> (i32, i32) {
    %c0_i32 = arith.constant 0 : i32
    %c0_i32_0 = arith.constant 0 : i32
    return %arg0, %c0_i32 : i32, i32
  }
}

</mosaic_0001>

<bundles_post_ra>
// kernel: net_forward.3
= control target key start
LH: loop header
LB: loop body
LE: loop exit
PB: predicated region body
PF: predicated region fallthrough
CT: control target
= control target key end

     0   :  { %v2997_v0 = vmov 0.0|0.0   ;;  %vm2998_vm0 = vmmov 0   ;;  %v2999_v6 = vmov 0.0   ;;  %s4770_s1 = inlined_call_operand.vmem [shape: f32[128,128], index: 1, kind: input, shape index: {}]   ;;  %s4771_s0 = inlined_call_operand.vmem [shape: f32[4,392,128], index: 0, kind: input, shape index: {}]   ;;  %s4772_s2 = inlined_call_operand.vmem [shape: f32[1,128], index: 2, kind: input, shape index: {}]   ;;  %s4773_s3 = inlined_call_operand.vmem [shape: f32[392,128], index: 3, kind: output, shape index: {}]  }
   0x1   :  { %2898 = vmatprep.subr.bf16.mxu0 %v2997_v0  ;;  %v14_v1 = vld [vmem:[%s4770_s1] sm:$0xff]  ;;  %v15_v2 = vld [vmem:[%s4770_s1 + $0x8] sm:$0xff]  ;;  %2922 = vmatprep.subr.bf16.mxu1 %v2997_v0  ;;  %v16_v3 = vld [vmem:[%s4770_s1 + $0x10] sm:$0xff] }
   0x2   :  { %v3031_v4 = vpack.c.bf16 %v15_v2, %v14_v1  ;;  %v17_v5 = vld [vmem:[%s4770_s1 + $0x18] sm:$0xff]  ;;  %2214 = vmatprep.mubr.msk.f32.mxu0 %vm2998_vm0, %v2999_v6  ;;  %2393 = vmatprep.mubr.msk.f32.mxu1 %vm2998_vm0, %v2999_v6  ;;  %v18_v8 = vld [vmem:[%s4770_s1 + $0x20] sm:$0xff]  ;;  %v19_v9 = vld [vmem:[%s4770_s1 + $0x28] sm:$0xff] }
   0x3   :  { %v3042_v7 = vpack.c.bf16 %v17_v5, %v16_v3  ;;  %v3054_v10 = vpack.c.bf16 %v19_v9, %v18_v8  ;;  %v20_v11 = vld [vmem:[%s4770_s1 + $0x30] sm:$0xff]  ;;  %v21_v12 = vld [vmem:[%s4770_s1 + $0x38] sm:$0xff]  ;;  %v22_v14 = vld [vmem:[%s4770_s1 + $0x40] sm:$0xff] }
   0x4   :  { %2900 = vmatpush3.bf16.msra.mxu0 %v3031_v4  ;;  %2924 = vmatpush3.bf16.msra.mxu1 %v3031_v4  ;;  %v3066_v13 = vpack.c.bf16 %v21_v12, %v20_v11  ;;  %v23_v15 = vld [vmem:[%s4770_s1 + $0x48] sm:$0xff]  ;;  %v24_v17 = vld [vmem:[%s4770_s1 + $0x50] sm:$0xff]  ;;  %v25_v18 = vld [vmem:[%s4770_s1 + $0x58] sm:$0xff] }
   0x5   :  { %2901 = vmatprep.subr.bf16.mxu0 %v2997_v0  ;;  %2925 = vmatprep.subr.bf16.mxu1 %v2997_v0  ;;  %v3078_v16 = vpack.c.bf16 %v23_v15, %v22_v14  ;;  %v3090_v19 = vpack.c.bf16 %v25_v18, %v24_v17  ;;  %v26_v20 = vld [vmem:[%s4770_s1 + $0x60] sm:$0xff]  ;;  %v27_v21 = vld [vmem:[%s4770_s1 + $0x68] sm:$0xff]  ;;  %v28_v23 = vld [vmem:[%s4770_s1 + $0x70] sm:$0xff] }
   0x6   :  { %v3102_v22 = vpack.c.bf16 %v27_v21, %v26_v20  ;;  %v29_v24 = vld [vmem:[%s4770_s1 + $0x78] sm:$0xff]  ;;  %v30_v26 = vld [vmem:[%s4771_s0] sm:$0xff]  ;;  %v1774_v27 = vld [vmem:[%s4771_s0 + $0x188] sm:$0xff] }
   0x7   :  { %v3114_v25 = vpack.c.bf16 %v29_v24, %v28_v23  ;;  %v31_v28 = vld [vmem:[%s4771_s0 + $0x8] sm:$0xff]  ;;  %v1775_v29 = vld [vmem:[%s4771_s0 + $0x190] sm:$0xff]  ;;  %v1776_v31 = vld [vmem:[%s4771_s0 + $0x198] sm:$0xff] }
   0x8   :  { %2903 = vmatpush3.bf16.msra.mxu0 %v3042_v7  ;;  %2927 = vmatpush3.bf16.msra.mxu1 %v3042_v7  ;;  %v32_v30 = vld [vmem:[%s4771_s0 + $0x10] sm:$0xff]  ;;  %v33_v32 = vld [vmem:[%s4771_s0 + $0x18] sm:$0xff]  ;;  %v1777_v33 = vld [vmem:[%s4771_s0 + $0x1a0] sm:$0xff] }
   0x9   :  { %2904 = vmatprep.subr.bf16.mxu0 %v2997_v0  ;;  %2928 = vmatprep.subr.bf16.mxu1 %v2997_v0  ;;  %v34_v34 = vld [vmem:[%s4771_s0 + $0x20] sm:$0xff]  ;;  %v1778_v35 = vld [vmem:[%s4771_s0 + $0x1a8] sm:$0xff]  ;;  %v1779_v37 = vld [vmem:[%s4771_s0 + $0x1b0] sm:$0xff] }
   0xa   :  { %v35_v36 = vld [vmem:[%s4771_s0 + $0x28] sm:$0xff]  ;;  %v36_v38 = vld [vmem:[%s4771_s0 + $0x30] sm:$0xff]  ;;  %v1780_v39 = vld [vmem:[%s4771_s0 + $0x1b8] sm:$0xff] }
   0xb   :  { %v37_v40 = vld [vmem:[%s4771_s0 + $0x38] sm:$0xff]  ;;  %v1781_v41 = vld [vmem:[%s4771_s0 + $0x1c0] sm:$0xff]  ;;  %v1782_v43 = vld [vmem:[%s4771_s0 + $0x1c8] sm:$0xff] }
   0xc   :  { %2906 = vmatpush3.bf16.msra.mxu0 %v3054_v10  ;;  %2930 = vmatpush3.bf16.msra.mxu1 %v3054_v10  ;;  %v38_v42 = vld [vmem:[%s4771_s0 + $0x40] sm:$0xff]  ;;  %v39_v44 = vld [vmem:[%s4771_s0 + $0x48] sm:$0xff]  ;;  %v1783_v45 = vld [vmem:[%s4771_s0 + $0x1d0] sm:$0xff] }
   0xd   :  { %2907 = vmatprep.subr.bf16.mxu0 %v2997_v0  ;;  %2931 = vmatprep.subr.bf16.mxu1 %v2997_v0  ;;  %v40_v46 = vld [vmem:[%s4771_s0 + $0x50] sm:$0xff]  ;;  %v1784_v47 = vld [vmem:[%s4771_s0 + $0x1d8] sm:$0xff]  ;;  %v1785_v49 = vld [vmem:[%s4771_s0 + $0x1e0] sm:$0xff] }
   0xe   :  { %v41_v48 = vld [vmem:[%s4771_s0 + $0x58] sm:$0xff]  ;;  %v42_v50 = vld [vmem:[%s4771_s0 + $0x60] sm:$0xff]  ;;  %v1786_v51 = vld [vmem:[%s4771_s0 + $0x1e8] sm:$0xff] }
   0xf   :  { %v43_v52 = vld [vmem:[%s4771_s0 + $0x68] sm:$0xff]  ;;  %v1787_v53 = vld [vmem:[%s4771_s0 + $0x1f0] sm:$0xff]  ;;  %v1788_v55 = vld [vmem:[%s4771_s0 + $0x1f8] sm:$0xff] }
  0x10   :  { %2909 = vmatpush3.bf16.msra.mxu0 %v3066_v13  ;;  %2933 = vmatpush3.bf16.msra.mxu1 %v3066_v13  ;;  %v44_v54 = vld [vmem:[%s4771_s0 + $0x70] sm:$0xff]  ;;  %v45_v56 = vld [vmem:[%s4771_s0 + $0x78] sm:$0xff]  ;;  %v1789_v57 = vld [vmem:[%s4771_s0 + $0x200] sm:$0xff] }
  0x11   :  { %2910 = vmatprep.subr.bf16.mxu0 %v2997_v0  ;;  %2934 = vmatprep.subr.bf16.mxu1 %v2997_v0  ;;  %v46_v58 = vld [vmem:[%s4771_s0 + $0x80] sm:$0xff]  ;;  %v1790_v59 = vld [vmem:[%s4771_s0 + $0x208] sm:$0xff]  ;;  %v1791_v61 = vld [vmem:[%s4771_s0 + $0x210] sm:$0xff] }
  0x12   :  { %v47_v60 = vld [vmem:[%s4771_s0 + $0x88] sm:$0xff]  ;;  %v48_v62 = vld [vmem:[%s4771_s0 + $0x90] sm:$0xff]  ;;  %v1792_v63 = vld [vmem:[%s4771_s0 + $0x218] sm:$0xff] }
  0x13   :  { %v1793_v1 = vld [vmem:[%s4771_s0 + $0x220] sm:$0xff]  ;;  %v1794_v3 = vld [vmem:[%s4771_s0 + $0x228] sm:$0xff]  ;;  %v1795_v5 = vld [vmem:[%s4771_s0 + $0x230] sm:$0xff] }
  0x14   :  { %2912 = vmatpush3.bf16.msra.mxu0 %v3078_v16  ;;  %2936 = vmatpush3.bf16.msra.mxu1 %v3078_v16  ;;  %v50_v2 = vld [vmem:[%s4771_s0 + $0xa0] sm:$0xff]  ;;  %v1796_v8 = vld [vmem:[%s4771_s0 + $0x238] sm:$0xff]  ;;  %v1798_v12 = vld [vmem:[%s4771_s0 + $0x248] sm:$0xff] }
  0x15   :  { %2913 = vmatprep.subr.bf16.mxu0 %v2997_v0  ;;  %2937 = vmatprep.subr.bf16.mxu1 %v2997_v0  ;;  %v53_v9 = vld [vmem:[%s4771_s0 + $0xb8] sm:$0xff]  ;;  %v54_v11 = vld [vmem:[%s4771_s0 + $0xc0] sm:$0xff]  ;;  %v1799_v14 = vld [vmem:[%s4771_s0 + $0x250] sm:$0xff] }
  0x16   :  { %v56_v15 = vld [vmem:[%s4771_s0 + $0xd0] sm:$0xff]  ;;  %v57_v17 = vld [vmem:[%s4771_s0 + $0xd8] sm:$0xff]  ;;  %v1801_v18 = vld [vmem:[%s4771_s0 + $0x260] sm:$0xff] }
  0x17   :  { %v1802_v20 = vld [vmem:[%s4771_s0 + $0x268] sm:$0xff]  ;;  %v60_v23 = vld [vmem:[%s4771_s0 + $0xf0] sm:$0xff]  ;;  %v1804_v24 = vld [vmem:[%s4771_s0 + $0x278] sm:$0xff] }
  0x18   :  { %2915 = vmatpush3.bf16.msra.mxu0 %v3090_v19  ;;  %2939 = vmatpush3.bf16.msra.mxu1 %v3090_v19  ;;  %v59_v21 = vld [vmem:[%s4771_s0 + $0xe8] sm:$0xff] }
  0x19   :  { %2916 = vmatprep.subr.bf16.mxu0 %v2997_v0  ;;  %2940 = vmatprep.subr.bf16.mxu1 %v2997_v0 }
  0x1c   :  { %2918 = vmatpush3.bf16.msra.mxu0 %v3102_v22  ;;  %2942 = vmatpush3.bf16.msra.mxu1 %v3102_v22 }
  0x1d   :  { %2919 = vmatprep.subr.bf16.mxu0 %v2997_v0  ;;  %2943 = vmatprep.subr.bf16.mxu1 %v2997_v0 }
  0x20   :  { %2921 = vmatpush3.bf16.msra.mxu0 %v3114_v25  ;;  %2945 = vmatpush3.bf16.msra.mxu1 %v3114_v25 }
  0x21   :  { %2946 = vmatprep.subr.bf16.mxu0 %v2997_v0  ;;  %2970 = vmatprep.subr.bf16.mxu1 %v2997_v0 }
  0x23   :  { %2215 = vmatmul.mubr.f32.vlgmr.msra.gmra.mrb[0].mxu0 %v30_v26  ;;  %2394 = vmatmul.mubr.f32.vlgmr.msra.gmra.mrb[0].mxu1 %v1774_v27  ;;  %v1805_v26 = vld [vmem:[%s4771_s0 + $0x280] sm:$0xff] }
  0x24   :  { %2948 = vmatpush3.bf16.msra.mxu0 %v3031_v4  ;;  %2217 = vmatprep.mubr.msk.f32.mxu0 %vm2998_vm0, %v2999_v6  ;;  %v62_v27 = vld [vmem:[%s4771_s0 + $0x100] sm:$0xff] }
  0x25   :  { %2972 = vmatpush3.bf16.msra.mxu1 %v3031_v4  ;;  %2396 = vmatprep.mubr.msk.f32.mxu1 %vm2998_vm0, %v2999_v6  ;;  %v51_v4 = vld [vmem:[%s4771_s0 + $0xa8] sm:$0xff] }
  0x26   :  { %2949 = vmatprep.subr.bf16.mxu0 %v2997_v0  ;;  %2973 = vmatprep.subr.bf16.mxu1 %v2997_v0 }
  0x27   :  { %2218 = vmatmul.mubr.f32.gmra.mrb[2].mxu0 %v31_v28  ;;  %2397 = vmatmul.mubr.f32.gmra.mrb[2].mxu1 %v1775_v29  ;;  %v1806_v28 = vld [vmem:[%s4771_s0 + $0x288] sm:$0xff] }
  0x28   :  { %2220 = vmatprep.mubr.msk.f32.mxu0 %vm2998_vm0, %v2999_v6  ;;  %2399 = vmatprep.mubr.msk.f32.mxu1 %vm2998_vm0, %v2999_v6  ;;  %v63_v29 = vld [vmem:[%s4771_s0 + $0x108] sm:$0xff] }
  0x29   :  { %2951 = vmatpush3.bf16.msra.mxu0 %v3042_v7  ;;  %2975 = vmatpush3.bf16.msra.mxu1 %v3042_v7  ;;  %v52_v7 = vld [vmem:[%s4771_s0 + $0xb0] sm:$0xff] }
  0x2a   :  { %2952 = vmatprep.subr.bf16.mxu0 %v2997_v0  ;;  %2976 = vmatprep.subr.bf16.mxu1 %v2997_v0 }
  0x2b   :  { %2221 = vmatmul.mubr.f32.gmra.mrb[4].mxu0 %v32_v30  ;;  %2400 = vmatmul.mubr.f32.gmra.mrb[4].mxu1 %v1776_v31  ;;  %v1807_v30 = vld [vmem:[%s4771_s0 + $0x290] sm:$0xff] }
  0x2c   :  { %2223 = vmatprep.mubr.msk.f32.mxu0 %vm2998_vm0, %v2999_v6  ;;  %2402 = vmatprep.mubr.msk.f32.mxu1 %vm2998_vm0, %v2999_v6  ;;  %v64_v31 = vld [vmem:[%s4771_s0 + $0x110] sm:$0xff] }
  0x2d   :  { %2954 = vmatpush3.bf16.msra.mxu0 %v3054_v10  ;;  %2978 = vmatpush3.bf16.msra.mxu1 %v3054_v10  ;;  %v1797_v10 = vld [vmem:[%s4771_s0 + $0x240] sm:$0xff] }
  0x2e   :  { %2955 = vmatprep.subr.bf16.mxu0 %v2997_v0  ;;  %2979 = vmatprep.subr.bf16.mxu1 %v2997_v0 }
  0x2f   :  { %2224 = vmatmul.mubr.f32.gmra.mrb[6].mxu0 %v33_v32  ;;  %2403 = vmatmul.mubr.f32.gmra.mrb[6].mxu1 %v1777_v33  ;;  %v1808_v32 = vld [vmem:[%s4771_s0 + $0x298] sm:$0xff] }
  0x30   :  { %2226 = vmatprep.mubr.msk.f32.mxu0 %vm2998_vm0, %v2999_v6  ;;  %2405 = vmatprep.mubr.msk.f32.mxu1 %vm2998_vm0, %v2999_v6  ;;  %v65_v33 = vld [vmem:[%s4771_s0 + $0x118] sm:$0xff] }
  0x31   :  { %2957 = vmatpush3.bf16.msra.mxu0 %v3066_v13  ;;  %2981 = vmatpush3.bf16.msra.mxu1 %v3066_v13  ;;  %v55_v13 = vld [vmem:[%s4771_s0 + $0xc8] sm:$0xff] }
  0x32   :  { %2958 = vmatprep.subr.bf16.mxu0 %v2997_v0  ;;  %2982 = vmatprep.subr.bf16.mxu1 %v2997_v0 }
  0x33   :  { %2227 = vmatmul.mubr.f32.gmra.mrb[8].mxu0 %v34_v34  ;;  %2406 = vmatmul.mubr.f32.gmra.mrb[8].mxu1 %v1778_v35  ;;  %v1809_v34 = vld [vmem:[%s4771_s0 + $0x2a0] sm:$0xff] }
  0x34   :  { %2229 = vmatprep.mubr.msk.f32.mxu0 %vm2998_vm0, %v2999_v6  ;;  %2408 = vmatprep.mubr.msk.f32.mxu1 %vm2998_vm0, %v2999_v6  ;;  %v66_v35 = vld [vmem:[%s4771_s0 + $0x120] sm:$0xff] }
  0x35   :  { %2960 = vmatpush3.bf16.msra.mxu0 %v3078_v16  ;;  %2984 = vmatpush3.bf16.msra.mxu1 %v3078_v16  ;;  %v1800_v16 = vld [vmem:[%s4771_s0 + $0x258] sm:$0xff] }
  0x36   :  { %2961 = vmatprep.subr.bf16.mxu0 %v2997_v0  ;;  %2985 = vmatprep.subr.bf16.mxu1 %v2997_v0 }
  0x37   :  { %2230 = vmatmul.mubr.f32.gmra.mrb[10].mxu0 %v35_v36  ;;  %2409 = vmatmul.mubr.f32.gmra.mrb[10].mxu1 %v1779_v37  ;;  %v1810_v36 = vld [vmem:[%s4771_s0 + $0x2a8] sm:$0xff] }
  0x38   :  { %2232 = vmatprep.mubr.msk.f32.mxu0 %vm2998_vm0, %v2999_v6  ;;  %2411 = vmatprep.mubr.msk.f32.mxu1 %vm2998_vm0, %v2999_v6  ;;  %v67_v37 = vld [vmem:[%s4771_s0 + $0x128] sm:$0xff] }
  0x39   :  { %2963 = vmatpush3.bf16.msra.mxu0 %v3090_v19  ;;  %2987 = vmatpush3.bf16.msra.mxu1 %v3090_v19  ;;  %v58_v19 = vld [vmem:[%s4771_s0 + $0xe0] sm:$0xff] }
  0x3a   :  { %2964 = vmatprep.subr.bf16.mxu0 %v2997_v0  ;;  %2988 = vmatprep.subr.bf16.mxu1 %v2997_v0 }
  0x3b   :  { %2233 = vmatmul.mubr.f32.gmra.mrb[12].mxu0 %v36_v38  ;;  %2412 = vmatmul.mubr.f32.gmra.mrb[12].mxu1 %v1780_v39  ;;  %v1811_v38 = vld [vmem:[%s4771_s0 + $0x2b0] sm:$0xff] }
  0x3c   :  { %2235 = vmatprep.mubr.msk.f32.mxu0 %vm2998_vm0, %v2999_v6  ;;  %2414 = vmatprep.mubr.msk.f32.mxu1 %vm2998_vm0, %v2999_v6  ;;  %v68_v39 = vld [vmem:[%s4771_s0 + $0x130] sm:$0xff] }
  0x3d   :  { %2966 = vmatpush3.bf16.msra.mxu0 %v3102_v22  ;;  %2990 = vmatpush3.bf16.msra.mxu1 %v3102_v22  ;;  %v1803_v22 = vld [vmem:[%s4771_s0 + $0x270] sm:$0xff] }
  0x3e   :  { %2967 = vmatprep.subr.bf16.mxu0 %v2997_v0  ;;  %2991 = vmatprep.subr.bf16.mxu1 %v2997_v0  ;;  %v49_v0 = vld [vmem:[%s4771_s0 + $0x98] sm:$0xff] }
  0x3f   :  { %2236 = vmatmul.mubr.f32.gmra.mrb[14].mxu0 %v37_v40  ;;  %2415 = vmatmul.mubr.f32.gmra.mrb[14].mxu1 %v1781_v41  ;;  %v1812_v40 = vld [vmem:[%s4771_s0 + $0x2b8] sm:$0xff] }
  0x40   :  { %2238 = vmatprep.mubr.msk.f32.mxu0 %vm2998_vm0, %v2999_v6  ;;  %2417 = vmatprep.mubr.msk.f32.mxu1 %vm2998_vm0, %v2999_v6  ;;  %v69_v41 = vld [vmem:[%s4771_s0 + $0x138] sm:$0xff] }
  0x41   :  { %2969 = vmatpush3.bf16.msra.mxu0 %v3114_v25  ;;  %2993 = vmatpush3.bf16.msra.mxu1 %v3114_v25  ;;  %v61_v25 = vld [vmem:[%s4771_s0 + $0xf8] sm:$0xff] }
  0x43   :  { %2239 = vmatmul.mubr.f32.gmra.mrb[16].mxu0 %v38_v42  ;;  %2418 = vmatmul.mubr.f32.gmra.mrb[16].mxu1 %v1782_v43  ;;  %v1813_v42 = vld [vmem:[%s4771_s0 + $0x2c0] sm:$0xff] }
  0x44   :  { %2241 = vmatprep.mubr.msk.f32.mxu0 %vm2998_vm0, %v2999_v6  ;;  %2420 = vmatprep.mubr.msk.f32.mxu1 %vm2998_vm0, %v2999_v6  ;;  %v70_v43 = vld [vmem:[%s4771_s0 + $0x140] sm:$0xff] }
  0x47   :  { %2242 = vmatmul.mubr.f32.gmra.mrb[18].mxu0 %v39_v44  ;;  %2421 = vmatmul.mubr.f32.gmra.mrb[18].mxu1 %v1783_v45  ;;  %v1814_v44 = vld [vmem:[%s4771_s0 + $0x2c8] sm:$0xff] }
  0x48   :  { %2244 = vmatprep.mubr.msk.f32.mxu0 %vm2998_vm0, %v2999_v6  ;;  %2423 = vmatprep.mubr.msk.f32.mxu1 %vm2998_vm0, %v2999_v6  ;;  %v71_v45 = vld [vmem:[%s4771_s0 + $0x148] sm:$0xff] }
  0x4b   :  { %2245 = vmatmul.mubr.f32.gmra.mrb[20].mxu0 %v40_v46  ;;  %2424 = vmatmul.mubr.f32.gmra.mrb[20].mxu1 %v1784_v47  ;;  %v1815_v46 = vld [vmem:[%s4771_s0 + $0x2d0] sm:$0xff] }
  0x4c   :  { %2247 = vmatprep.mubr.msk.f32.mxu0 %vm2998_vm0, %v2999_v6  ;;  %2426 = vmatprep.mubr.msk.f32.mxu1 %vm2998_vm0, %v2999_v6  ;;  %v72_v47 = vld [vmem:[%s4771_s0 + $0x150] sm:$0xff] }
  0x4f   :  { %2248 = vmatmul.mubr.f32.gmra.mrb[22].mxu0 %v41_v48  ;;  %2427 = vmatmul.mubr.f32.gmra.mrb[22].mxu1 %v1785_v49  ;;  %v1816_v48 = vld [vmem:[%s4771_s0 + $0x2d8] sm:$0xff] }
  0x50   :  { %2250 = vmatprep.mubr.msk.f32.mxu0 %vm2998_vm0, %v2999_v6  ;;  %2429 = vmatprep.mubr.msk.f32.mxu1 %vm2998_vm0, %v2999_v6  ;;  %v73_v49 = vld [vmem:[%s4771_s0 + $0x158] sm:$0xff] }
  0x53   :  { %2251 = vmatmul.mubr.f32.gmra.mrb[24].mxu0 %v42_v50  ;;  %2430 = vmatmul.mubr.f32.gmra.mrb[24].mxu1 %v1786_v51  ;;  %v1817_v50 = vld [vmem:[%s4771_s0 + $0x2e0] sm:$0xff] }
  0x54   :  { %2253 = vmatprep.mubr.msk.f32.mxu0 %vm2998_vm0, %v2999_v6  ;;  %2432 = vmatprep.mubr.msk.f32.mxu1 %vm2998_vm0, %v2999_v6  ;;  %v74_v51 = vld [vmem:[%s4771_s0 + $0x160] sm:$0xff] }
  0x57   :  { %2254 = vmatmul.mubr.f32.gmra.mrb[26].mxu0 %v43_v52  ;;  %2433 = vmatmul.mubr.f32.gmra.mrb[26].mxu1 %v1787_v53  ;;  %v1818_v52 = vld [vmem:[%s4771_s0 + $0x2e8] sm:$0xff] }
  0x58   :  { %2256 = vmatprep.mubr.msk.f32.mxu0 %vm2998_vm0, %v2999_v6  ;;  %2435 = vmatprep.mubr.msk.f32.mxu1 %vm2998_vm0, %v2999_v6  ;;  %v75_v53 = vld [vmem:[%s4771_s0 + $0x168] sm:$0xff] }
  0x5b   :  { %2257 = vmatmul.mubr.f32.gmra.mrb[28].mxu0 %v44_v54  ;;  %2436 = vmatmul.mubr.f32.gmra.mrb[28].mxu1 %v1788_v55  ;;  %v1819_v54 = vld [vmem:[%s4771_s0 + $0x2f0] sm:$0xff] }
  0x5c   :  { %2259 = vmatprep.mubr.msk.f32.mxu0 %vm2998_vm0, %v2999_v6  ;;  %2438 = vmatprep.mubr.msk.f32.mxu1 %vm2998_vm0, %v2999_v6  ;;  %v76_v55 = vld [vmem:[%s4771_s0 + $0x170] sm:$0xff] }
  0x5f   :  { %2260 = vmatmul.mubr.f32.gmra.mrb[30].mxu0 %v45_v56  ;;  %2439 = vmatmul.mubr.f32.gmra.mrb[30].mxu1 %v1789_v57  ;;  %v1820_v56 = vld [vmem:[%s4771_s0 + $0x2f8] sm:$0xff] }
  0x60   :  { %2262 = vmatprep.mubr.msk.f32.mxu0 %vm2998_vm0, %v2999_v6  ;;  %2441 = vmatprep.mubr.msk.f32.mxu1 %vm2998_vm0, %v2999_v6  ;;  %v77_v57 = vld [vmem:[%s4771_s0 + $0x178] sm:$0xff] }
  0x63   :  { %2263 = vmatmul.mubr.f32.gmra.mrb[32].mxu0 %v46_v58  ;;  %2442 = vmatmul.mubr.f32.gmra.mrb[32].mxu1 %v1790_v59  ;;  %v1821_v58 = vld [vmem:[%s4771_s0 + $0x300] sm:$0xff] }
  0x64   :  { %2265 = vmatprep.mubr.msk.f32.mxu0 %vm2998_vm0, %v2999_v6  ;;  %2444 = vmatprep.mubr.msk.f32.mxu1 %vm2998_vm0, %v2999_v6  ;;  %v78_v59 = vld [vmem:[%s4771_s0 + $0x180] sm:$0xff] }
  0x67   :  { %2266 = vmatmul.mubr.f32.gmra.mrb[34].mxu0 %v47_v60  ;;  %2445 = vmatmul.mubr.f32.gmra.mrb[34].mxu1 %v1791_v61  ;;  %v1822_v60 = vld [vmem:[%s4771_s0 + $0x308] sm:$0xff]  ;;  %v1823_v61 = vld [vmem:[%s4771_s0 + $0x310] sm:$0xff] }
  0x68   :  { %2268 = vmatprep.mubr.msk.f32.mxu0 %vm2998_vm0, %v2999_v6  ;;  %2447 = vmatprep.mubr.msk.f32.mxu1 %vm2998_vm0, %v2999_v6 }
  0x6b   :  { %2269 = vmatmul.mubr.f32.gmra.mrb[36].mxu0 %v48_v62  ;;  %2448 = vmatmul.mubr.f32.gmra.mrb[36].mxu1 %v1792_v63  ;;  %v1872_v62 = vld [vmem:[%s4771_s0 + $0x498] sm:$0xff] }
  0x6c   :  { %2271 = vmatprep.mubr.msk.f32.mxu0 %vm2998_vm0, %v2999_v6  ;;  %2450 = vmatprep.mubr.msk.f32.mxu1 %vm2998_vm0, %v2999_v6  ;;  %v1824_v63 = vld [vmem:[%s4771_s0 + $0x318] sm:$0xff] }
  0x6f   :  { %2272 = vmatmul.mubr.f32.gmra.mrb[38].mxu0 %v49_v0  ;;  %2451 = vmatmul.mubr.f32.gmra.mrb[38].mxu1 %v1793_v1  ;;  %v1873_v0 = vld [vmem:[%s4771_s0 + $0x4a0] sm:$0xff] }
  0x70   :  { %2274 = vmatprep.mubr.msk.f32.mxu0 %vm2998_vm0, %v2999_v6  ;;  %2453 = vmatprep.mubr.msk.f32.mxu1 %vm2998_vm0, %v2999_v6  ;;  %v1825_v1 = vld [vmem:[%s4771_s0 + $0x320] sm:$0xff] }
  0x73   :  { %2275 = vmatmul.mubr.f32.gmra.mrb[40].mxu0 %v50_v2  ;;  %2454 = vmatmul.mubr.f32.gmra.mrb[40].mxu1 %v1794_v3  ;;  %v1874_v2 = vld [vmem:[%s4771_s0 + $0x4a8] sm:$0xff] }
  0x74   :  { %2277 = vmatprep.mubr.msk.f32.mxu0 %vm2998_vm0, %v2999_v6  ;;  %2456 = vmatprep.mubr.msk.f32.mxu1 %vm2998_vm0, %v2999_v6  ;;  %v1826_v3 = vld [vmem:[%s4771_s0 + $0x328] sm:$0xff] }
  0x77   :  { %2278 = vmatmul.mubr.f32.gmra.mrb[42].mxu0 %v51_v4  ;;  %2457 = vmatmul.mubr.f32.gmra.mrb[42].mxu1 %v1795_v5  ;;  %v1875_v4 = vld [vmem:[%s4771_s0 + $0x4b0] sm:$0xff] }
  0x78   :  { %2280 = vmatprep.mubr.msk.f32.mxu0 %vm2998_vm0, %v2999_v6  ;;  %2459 = vmatprep.mubr.msk.f32.mxu1 %vm2998_vm0, %v2999_v6  ;;  %v1827_v5 = vld [vmem:[%s4771_s0 + $0x330] sm:$0xff] }
  0x7b   :  { %2281 = vmatmul.mubr.f32.gmra.mrb[44].mxu0 %v52_v7  ;;  %2460 = vmatmul.mubr.f32.gmra.mrb[44].mxu1 %v1796_v8  ;;  %v1876_v7 = vld [vmem:[%s4771_s0 + $0x4b8] sm:$0xff] }
  0x7c   :  { %2283 = vmatprep.mubr.msk.f32.mxu0 %vm2998_vm0, %v2999_v6  ;;  %2462 = vmatprep.mubr.msk.f32.mxu1 %vm2998_vm0, %v2999_v6 }
  0x7f   :  { %2284 = vmatmul.mubr.f32.gmra.mrb[46].mxu0 %v53_v9  ;;  %2463 = vmatmul.mubr.f32.gmra.mrb[46].mxu1 %v1797_v10 }
  0x80   :  { %2286 = vmatprep.mubr.msk.f32.mxu0 %vm2998_vm0, %v2999_v6  ;;  %2465 = vmatprep.mubr.msk.f32.mxu1 %vm2998_vm0, %v2999_v6 }
  0x83   :  { %2287 = vmatmul.mubr.f32.gmra.mrb[48].mxu0 %v54_v11  ;;  %2466 = vmatmul.mubr.f32.gmra.mrb[48].mxu1 %v1798_v12 }
  0x84   :  { %2289 = vmatprep.mubr.msk.f32.mxu0 %vm2998_vm0, %v2999_v6  ;;  %2468 = vmatprep.mubr.msk.f32.mxu1 %vm2998_vm0, %v2999_v6 }
  0x87   :  { %2290 = vmatmul.mubr.f32.gmra.mrb[50].mxu0 %v55_v13  ;;  %2469 = vmatmul.mubr.f32.gmra.mrb[50].mxu1 %v1799_v14  ;;  %v1828_v13 = vld [vmem:[%s4771_s0 + $0x338] sm:$0xff]  ;;  %v1877_v14 = vld [vmem:[%s4771_s0 + $0x4c0] sm:$0xff] }
  0x88   :  { %2292 = vmatprep.mubr.msk.f32.mxu0 %vm2998_vm0, %v2999_v6  ;;  %2471 = vmatprep.mubr.msk.f32.mxu1 %vm2998_vm0, %v2999_v6 }
  0x8b   :  { %2293 = vmatmul.mubr.f32.gmra.mrb[52].mxu0 %v56_v15  ;;  %2472 = vmatmul.mubr.f32.gmra.mrb[52].mxu1 %v1800_v16 }
  0x8c   :  { %2295 = vmatprep.mubr.msk.f32.mxu0 %vm2998_vm0, %v2999_v6  ;;  %2474 = vmatprep.mubr.msk.f32.mxu1 %vm2998_vm0, %v2999_v6 }
  0x8f   :  { %2296 = vmatmul.mubr.f32.gmra.mrb[54].mxu0 %v57_v17  ;;  %2475 = vmatmul.mubr.f32.gmra.mrb[54].mxu1 %v1801_v18  ;;  %v1855_v18 = vld [vmem:[%s4771_s0 + $0x410] sm:$0xff] }
  0x90   :  { %2298 = vmatprep.mubr.msk.f32.mxu0 %vm2998_vm0, %v2999_v6  ;;  %2477 = vmatprep.mubr.msk.f32.mxu1 %vm2998_vm0, %v2999_v6 }
  0x93   :  { %2299 = vmatmul.mubr.f32.gmra.mrb[56].mxu0 %v58_v19  ;;  %2478 = vmatmul.mubr.f32.gmra.mrb[56].mxu1 %v1802_v20  ;;  %v1829_v20 = vld [vmem:[%s4771_s0 + $0x340] sm:$0xff] }
  0x94   :  { %2301 = vmatprep.mubr.msk.f32.mxu0 %vm2998_vm0, %v2999_v6  ;;  %2480 = vmatprep.mubr.msk.f32.mxu1 %vm2998_vm0, %v2999_v6 }
  0x97   :  { %2302 = vmatmul.mubr.f32.gmra.mrb[58].mxu0 %v59_v21  ;;  %2481 = vmatmul.mubr.f32.gmra.mrb[58].mxu1 %v1803_v22  ;;  %v1878_v21 = vld [vmem:[%s4771_s0 + $0x4c8] sm:$0xff] }
  0x98   :  { %2304 = vmatprep.mubr.msk.f32.mxu0 %vm2998_vm0, %v2999_v6  ;;  %2483 = vmatprep.mubr.msk.f32.mxu1 %vm2998_vm0, %v2999_v6 }
  0x9b   :  { %2305 = vmatmul.mubr.f32.gmra.mrb[60].mxu0 %v60_v23  ;;  %2484 = vmatmul.mubr.f32.gmra.mrb[60].mxu1 %v1804_v24 }
  0x9c   :  { %2307 = vmatprep.mubr.msk.f32.mxu0 %vm2998_vm0, %v2999_v6  ;;  %2486 = vmatprep.mubr.msk.f32.mxu1 %vm2998_vm0, %v2999_v6 }
  0x9f   :  { %2308 = vmatmul.mubr.f32.gmra.mrb[62].mxu0 %v61_v25  ;;  %2487 = vmatmul.mubr.f32.gmra.mrb[62].mxu1 %v1805_v26 }
  0xa0   :  { %2310 = vmatprep.mubr.msk.f32.mxu0 %vm2998_vm0, %v2999_v6  ;;  %2489 = vmatprep.mubr.msk.f32.mxu1 %vm2998_vm0, %v2999_v6 }
  0xa3   :  { %2311 = vmatmul.mubr.f32.gmra.mrb[64].mxu0 %v62_v27  ;;  %2490 = vmatmul.mubr.f32.gmra.mrb[64].mxu1 %v1806_v28  ;;  %v1830_v27 = vld [vmem:[%s4771_s0 + $0x348] sm:$0xff]  ;;  %v1879_v28 = vld [vmem:[%s4771_s0 + $0x4d0] sm:$0xff] }
  0xa4   :  { %2313 = vmatprep.mubr.msk.f32.mxu0 %vm2998_vm0, %v2999_v6  ;;  %2492 = vmatprep.mubr.msk.f32.mxu1 %vm2998_vm0, %v2999_v6 }
  0xa7   :  { %2314 = vmatmul.mubr.f32.gmra.mrb[66].mxu0 %v63_v29  ;;  %2493 = vmatmul.mubr.f32.gmra.mrb[66].mxu1 %v1807_v30 }
  0xa8   :  { %2316 = vmatprep.mubr.msk.f32.mxu0 %vm2998_vm0, %v2999_v6  ;;  %2495 = vmatprep.mubr.msk.f32.mxu1 %vm2998_vm0, %v2999_v6 }
  0xab   :  { %2317 = vmatmul.mubr.f32.gmra.mrb[68].mxu0 %v64_v31  ;;  %2496 = vmatmul.mubr.f32.gmra.mrb[68].mxu1 %v1808_v32  ;;  %v1854_v32 = vld [vmem:[%s4771_s0 + $0x408] sm:$0xff] }
  0xac   :  { %2319 = vmatprep.mubr.msk.f32.mxu0 %vm2998_vm0, %v2999_v6  ;;  %2498 = vmatprep.mubr.msk.f32.mxu1 %vm2998_vm0, %v2999_v6 }
  0xaf   :  { %2320 = vmatmul.mubr.f32.gmra.mrb[70].mxu0 %v65_v33  ;;  %2499 = vmatmul.mubr.f32.gmra.mrb[70].mxu1 %v1809_v34  ;;  %v1831_v34 = vld [vmem:[%s4771_s0 + $0x350] sm:$0xff] }
  0xb0   :  { %2322 = vmatprep.mubr.msk.f32.mxu0 %vm2998_vm0, %v2999_v6  ;;  %2501 = vmatprep.mubr.msk.f32.mxu1 %vm2998_vm0, %v2999_v6 }
  0xb3   :  { %2323 = vmatmul.mubr.f32.gmra.mrb[72].mxu0 %v66_v35  ;;  %2502 = vmatmul.mubr.f32.gmra.mrb[72].mxu1 %v1810_v36  ;;  %v1880_v35 = vld [vmem:[%s4771_s0 + $0x4d8] sm:$0xff] }
  0xb4   :  { %2325 = vmatprep.mubr.msk.f32.mxu0 %vm2998_vm0, %v2999_v6  ;;  %2504 = vmatprep.mubr.msk.f32.mxu1 %vm2998_vm0, %v2999_v6 }
  0xb7   :  { %2326 = vmatmul.mubr.f32.gmra.mrb[74].mxu0 %v67_v37  ;;  %2505 = vmatmul.mubr.f32.gmra.mrb[74].mxu1 %v1811_v38 }
  0xb8   :  { %2328 = vmatprep.mubr.msk.f32.mxu0 %vm2998_vm0, %v2999_v6  ;;  %2507 = vmatprep.mubr.msk.f32.mxu1 %vm2998_vm0, %v2999_v6 }
  0xbb   :  { %2329 = vmatmul.mubr.f32.gmra.mrb[76].mxu0 %v68_v39  ;;  %2508 = vmatmul.mubr.f32.gmra.mrb[76].mxu1 %v1812_v40 }
  0xbc   :  { %2331 = vmatprep.mubr.msk.f32.mxu0 %vm2998_vm0, %v2999_v6  ;;  %2510 = vmatprep.mubr.msk.f32.mxu1 %vm2998_vm0, %v2999_v6 }
  0xbf   :  { %2332 = vmatmul.mubr.f32.gmra.mrb[78].mxu0 %v69_v41  ;;  %2511 = vmatmul.mubr.f32.gmra.mrb[78].mxu1 %v1813_v42  ;;  %v1832_v41 = vld [vmem:[%s4771_s0 + $0x358] sm:$0xff]  ;;  %v1881_v42 = vld [vmem:[%s4771_s0 + $0x4e0] sm:$0xff] }
  0xc0   :  { %2334 = vmatprep.mubr.msk.f32.mxu0 %vm2998_vm0, %v2999_v6  ;;  %2513 = vmatprep.mubr.msk.f32.mxu1 %vm2998_vm0, %v2999_v6 }
  0xc3   :  { %2335 = vmatmul.mubr.f32.gmra.mrb[80].mxu0 %v70_v43  ;;  %2514 = vmatmul.mubr.f32.gmra.mrb[80].mxu1 %v1814_v44 }
  0xc4   :  { %2337 = vmatprep.mubr.msk.f32.mxu0 %vm2998_vm0, %v2999_v6  ;;  %2516 = vmatprep.mubr.msk.f32.mxu1 %vm2998_vm0, %v2999_v6 }
  0xc7   :  { %2338 = vmatmul.mubr.f32.gmra.mrb[82].mxu0 %v71_v45  ;;  %2517 = vmatmul.mubr.f32.gmra.mrb[82].mxu1 %v1815_v46  ;;  %v1853_v46 = vld [vmem:[%s4771_s0 + $0x400] sm:$0xff] }
  0xc8   :  { %2340 = vmatprep.mubr.msk.f32.mxu0 %vm2998_vm0, %v2999_v6  ;;  %2519 = vmatprep.mubr.msk.f32.mxu1 %vm2998_vm0, %v2999_v6 }
  0xcb   :  { %2341 = vmatmul.mubr.f32.gmra.mrb[84].mxu0 %v72_v47  ;;  %2520 = vmatmul.mubr.f32.gmra.mrb[84].mxu1 %v1816_v48  ;;  %v1833_v48 = vld [vmem:[%s4771_s0 + $0x360] sm:$0xff] }
  0xcc   :  { %2343 = vmatprep.mubr.msk.f32.mxu0 %vm2998_vm0, %v2999_v6  ;;  %2522 = vmatprep.mubr.msk.f32.mxu1 %vm2998_vm0, %v2999_v6 }
  0xcf   :  { %2344 = vmatmul.mubr.f32.gmra.mrb[86].mxu0 %v73_v49  ;;  %2523 = vmatmul.mubr.f32.gmra.mrb[86].mxu1 %v1817_v50  ;;  %v1882_v49 = vld [vmem:[%s4771_s0 + $0x4e8] sm:$0xff] }
  0xd0   :  { %2346 = vmatprep.mubr.msk.f32.mxu0 %vm2998_vm0, %v2999_v6  ;;  %2525 = vmatprep.mubr.msk.f32.mxu1 %vm2998_vm0, %v2999_v6 }
  0xd3   :  { %2347 = vmatmul.mubr.f32.gmra.mrb[88].mxu0 %v74_v51  ;;  %2526 = vmatmul.mubr.f32.gmra.mrb[88].mxu1 %v1818_v52 }
  0xd4   :  { %2349 = vmatprep.mubr.msk.f32.mxu0 %vm2998_vm0, %v2999_v6  ;;  %2528 = vmatprep.mubr.msk.f32.mxu1 %vm2998_vm0, %v2999_v6 }
  0xd7   :  { %2350 = vmatmul.mubr.f32.gmra.mrb[90].mxu0 %v75_v53  ;;  %2529 = vmatmul.mubr.f32.gmra.mrb[90].mxu1 %v1819_v54 }
  0xd8   :  { %2352 = vmatprep.mubr.msk.f32.mxu0 %vm2998_vm0, %v2999_v6  ;;  %2531 = vmatprep.mubr.msk.f32.mxu1 %vm2998_vm0, %v2999_v6 }
  0xdb   :  { %2353 = vmatmul.mubr.f32.gmra.mrb[92].mxu0 %v76_v55  ;;  %2532 = vmatmul.mubr.f32.gmra.mrb[92].mxu1 %v1820_v56  ;;  %v1834_v55 = vld [vmem:[%s4771_s0 + $0x368] sm:$0xff]  ;;  %v1883_v56 = vld [vmem:[%s4771_s0 + $0x4f0] sm:$0xff] }
  0xdc   :  { %2355 = vmatprep.mubr.msk.f32.mxu0 %vm2998_vm0, %v2999_v6  ;;  %2534 = vmatprep.mubr.msk.f32.mxu1 %vm2998_vm0, %v2999_v6 }
  0xdf   :  { %2356 = vmatmul.mubr.f32.gmra.mrb[94].mxu0 %v77_v57  ;;  %2535 = vmatmul.mubr.f32.gmra.mrb[94].mxu1 %v1821_v58 }
  0xe0   :  { %2358 = vmatprep.mubr.msk.f32.mxu0 %vm2998_vm0, %v2999_v6  ;;  %2537 = vmatprep.mubr.msk.f32.mxu1 %vm2998_vm0, %v2999_v6 }
  0xe3   :  { %2359 = vmatmul.mubr.f32.gmra.mrb[96].mxu0 %v78_v59  ;;  %2538 = vmatmul.mubr.f32.gmra.mrb[96].mxu1 %v1822_v60  ;;  %v1852_v60 = vld [vmem:[%s4771_s0 + $0x3f8] sm:$0xff] }
  0xe4   :  { %2572 = vmatprep.mubr.msk.f32.mxu0 %vm2998_vm0, %v2999_v6  ;;  %2751 = vmatprep.mubr.msk.f32.mxu1 %vm2998_vm0, %v2999_v6 }
  0xe7   :  { %2573 = vmatmul.mubr.f32.vlgmr.msra.gmra.mrb[98].mxu0 %v1823_v61  ;;  %2752 = vmatmul.mubr.f32.vlgmr.msra.gmra.mrb[98].mxu1 %v1872_v62  ;;  %v1835_v62 = vld [vmem:[%s4771_s0 + $0x370] sm:$0xff] }
  0xe8   :  { %2575 = vmatprep.mubr.msk.f32.mxu0 %vm2998_vm0, %v2999_v6  ;;  %2754 = vmatprep.mubr.msk.f32.mxu1 %vm2998_vm0, %v2999_v6 }
  0xeb   :  { %2576 = vmatmul.mubr.f32.gmra.mrb[100].mxu0 %v1824_v63  ;;  %2755 = vmatmul.mubr.f32.gmra.mrb[100].mxu1 %v1873_v0  ;;  %v1884_v63 = vld [vmem:[%s4771_s0 + $0x4f8] sm:$0xff] }
  0xec   :  { %2578 = vmatprep.mubr.msk.f32.mxu0 %vm2998_vm0, %v2999_v6  ;;  %2757 = vmatprep.mubr.msk.f32.mxu1 %vm2998_vm0, %v2999_v6 }
  0xef   :  { %2579 = vmatmul.mubr.f32.gmra.mrb[102].mxu0 %v1825_v1  ;;  %2758 = vmatmul.mubr.f32.gmra.mrb[102].mxu1 %v1874_v2 }
  0xf0   :  { %2581 = vmatprep.mubr.msk.f32.mxu0 %vm2998_vm0, %v2999_v6  ;;  %2760 = vmatprep.mubr.msk.f32.mxu1 %vm2998_vm0, %v2999_v6 }
  0xf3   :  { %2582 = vmatmul.mubr.f32.gmra.mrb[104].mxu0 %v1826_v3  ;;  %2761 = vmatmul.mubr.f32.gmra.mrb[104].mxu1 %v1875_v4 }
  0xf4   :  { %2584 = vmatprep.mubr.msk.f32.mxu0 %vm2998_vm0, %v2999_v6  ;;  %2763 = vmatprep.mubr.msk.f32.mxu1 %vm2998_vm0, %v2999_v6 }
  0xf6   :  { %v3688_v8 = vpop.f32.mrb[0].mxu0  ;;  %v3690_v9 = vpop.f32.mrb[0].mxu1 }
  0xf7   :  { %v2216_v10 = vpop.f32.mrb[1].mxu0  ;;  %2585 = vmatmul.mubr.f32.gmra.mrb[106].mxu0 %v1827_v5  ;;  %v2395_v12 = vpop.f32.mrb[1].mxu1  ;;  %2764 = vmatmul.mubr.f32.gmra.mrb[106].mxu1 %v1876_v7  ;;  %v1836_v5 = vld [vmem:[%s4771_s0 + $0x378] sm:$0xff]  ;;  %v1885_v7 = vld [vmem:[%s4771_s0 + $0x500] sm:$0xff] }
  0xf8   :  { %2587 = vmatprep.mubr.msk.f32.mxu0 %vm2998_vm0, %v2999_v6  ;;  %2766 = vmatprep.mubr.msk.f32.mxu1 %vm2998_vm0, %v2999_v6 }
  0xfa   :  { %v3704_v15 = vpop.f32.mrb[2].mxu0  ;;  %v3706_v16 = vpop.f32.mrb[2].mxu1 }
  0xfb   :  { %v2219_v17 = vpop.f32.mrb[3].mxu0  ;;  %2588 = vmatmul.mubr.f32.gmra.mrb[108].mxu0 %v1828_v13  ;;  %v2398_v19 = vpop.f32.mrb[3].mxu1  ;;  %2767 = vmatmul.mubr.f32.gmra.mrb[108].mxu1 %v1877_v14  ;;  %v1851_v14 = vld [vmem:[%s4771_s0 + $0x3f0] sm:$0xff] }
  0xfc   :  { %2590 = vmatprep.mubr.msk.f32.mxu0 %vm2998_vm0, %v2999_v6  ;;  %2769 = vmatprep.mubr.msk.f32.mxu1 %vm2998_vm0, %v2999_v6  ;;  %v1837_v19 = vld [vmem:[%s4771_s0 + $0x380] sm:$0xff] }
  0xfe   :  { %v3720_v22 = vpop.f32.mrb[4].mxu0  ;;  %v3722_v23 = vpop.f32.mrb[4].mxu1 }
  0xff   :  { %v2222_v24 = vpop.f32.mrb[5].mxu0  ;;  %2591 = vmatmul.mubr.f32.gmra.mrb[110].mxu0 %v1829_v20  ;;  %v2401_v26 = vpop.f32.mrb[5].mxu1  ;;  %2770 = vmatmul.mubr.f32.gmra.mrb[110].mxu1 %v1878_v21  ;;  %v1886_v20 = vld [vmem:[%s4771_s0 + $0x508] sm:$0xff] }
 0x100   :  { %2593 = vmatprep.mubr.msk.f32.mxu0 %vm2998_vm0, %v2999_v6  ;;  %2772 = vmatprep.mubr.msk.f32.mxu1 %vm2998_vm0, %v2999_v6 }
 0x102   :  { %v3736_v29 = vpop.f32.mrb[6].mxu0  ;;  %v3738_v30 = vpop.f32.mrb[6].mxu1 }
 0x103   :  { %v2225_v31 = vpop.f32.mrb[7].mxu0  ;;  %2594 = vmatmul.mubr.f32.gmra.mrb[112].mxu0 %v1830_v27  ;;  %v2404_v33 = vpop.f32.mrb[7].mxu1  ;;  %2773 = vmatmul.mubr.f32.gmra.mrb[112].mxu1 %v1879_v28 }
 0x104   :  { %2596 = vmatprep.mubr.msk.f32.mxu0 %vm2998_vm0, %v2999_v6  ;;  %2775 = vmatprep.mubr.msk.f32.mxu1 %vm2998_vm0, %v2999_v6  ;;  %v1838_v31 = vld [vmem:[%s4771_s0 + $0x388] sm:$0xff]  ;;  %v1887_v33 = vld [vmem:[%s4771_s0 + $0x510] sm:$0xff] }
 0x106   :  { %v3752_v36 = vpop.f32.mrb[8].mxu0  ;;  %v3754_v37 = vpop.f32.mrb[8].mxu1 }
 0x107   :  { %v2228_v38 = vpop.f32.mrb[9].mxu0  ;;  %2597 = vmatmul.mubr.f32.gmra.mrb[114].mxu0 %v1831_v34  ;;  %v2407_v40 = vpop.f32.mrb[9].mxu1  ;;  %2776 = vmatmul.mubr.f32.gmra.mrb[114].mxu1 %v1880_v35 }
 0x108   :  { %2599 = vmatprep.mubr.msk.f32.mxu0 %vm2998_vm0, %v2999_v6  ;;  %2778 = vmatprep.mubr.msk.f32.mxu1 %vm2998_vm0, %v2999_v6  ;;  %v1850_v40 = vld [vmem:[%s4771_s0 + $0x3e8] sm:$0xff] }
 0x10a   :  { %v3768_v43 = vpop.f32.mrb[10].mxu0  ;;  %v3770_v44 = vpop.f32.mrb[10].mxu1 }
 0x10b   :  { %v2231_v45 = vpop.f32.mrb[11].mxu0  ;;  %2600 = vmatmul.mubr.f32.gmra.mrb[116].mxu0 %v1832_v41  ;;  %v2410_v47 = vpop.f32.mrb[11].mxu1  ;;  %2779 = vmatmul.mubr.f32.gmra.mrb[116].mxu1 %v1881_v42  ;;  %v1839_v42 = vld [vmem:[%s4771_s0 + $0x390] sm:$0xff] }
 0x10c   :  { %2602 = vmatprep.mubr.msk.f32.mxu0 %vm2998_vm0, %v2999_v6  ;;  %2781 = vmatprep.mubr.msk.f32.mxu1 %vm2998_vm0, %v2999_v6  ;;  %v1888_v45 = vld [vmem:[%s4771_s0 + $0x518] sm:$0xff] }
 0x10e   :  { %v3784_v50 = vpop.f32.mrb[12].mxu0  ;;  %v3786_v51 = vpop.f32.mrb[12].mxu1 }
 0x10f   :  { %v2234_v52 = vpop.f32.mrb[13].mxu0  ;;  %2603 = vmatmul.mubr.f32.gmra.mrb[118].mxu0 %v1833_v48  ;;  %v2413_v54 = vpop.f32.mrb[13].mxu1  ;;  %2782 = vmatmul.mubr.f32.gmra.mrb[118].mxu1 %v1882_v49 }
 0x110   :  { %2605 = vmatprep.mubr.msk.f32.mxu0 %vm2998_vm0, %v2999_v6  ;;  %2784 = vmatprep.mubr.msk.f32.mxu1 %vm2998_vm0, %v2999_v6 }
 0x112   :  { %v3800_v57 = vpop.f32.mrb[14].mxu0  ;;  %v3802_v58 = vpop.f32.mrb[14].mxu1 }
 0x113   :  { %v2237_v59 = vpop.f32.mrb[15].mxu0  ;;  %2606 = vmatmul.mubr.f32.gmra.mrb[120].mxu0 %v1834_v55  ;;  %v2416_v61 = vpop.f32.mrb[15].mxu1  ;;  %2785 = vmatmul.mubr.f32.gmra.mrb[120].mxu1 %v1883_v56  ;;  %v1840_v55 = vld [vmem:[%s4771_s0 + $0x398] sm:$0xff]  ;;  %v1889_v56 = vld [vmem:[%s4771_s0 + $0x520] sm:$0xff] }
 0x114   :  { %2608 = vmatprep.mubr.msk.f32.mxu0 %vm2998_vm0, %v2999_v6  ;;  %2787 = vmatprep.mubr.msk.f32.mxu1 %vm2998_vm0, %v2999_v6 }
 0x116   :  { %v3816_v0 = vpop.f32.mrb[16].mxu0  ;;  %v3818_v1 = vpop.f32.mrb[16].mxu1 }
 0x117   :  { %v2240_v2 = vpop.f32.mrb[17].mxu0  ;;  %2609 = vmatmul.mubr.f32.gmra.mrb[122].mxu0 %v1835_v62  ;;  %v2419_v4 = vpop.f32.mrb[17].mxu1  ;;  %2788 = vmatmul.mubr.f32.gmra.mrb[122].mxu1 %v1884_v63  ;;  %v1849_v63 = vld [vmem:[%s4771_s0 + $0x3e0] sm:$0xff] }
 0x118   :  { %2611 = vmatprep.mubr.msk.f32.mxu0 %vm2998_vm0, %v2999_v6  ;;  %2790 = vmatprep.mubr.msk.f32.mxu1 %vm2998_vm0, %v2999_v6  ;;  %v1841_v4 = vld [vmem:[%s4771_s0 + $0x3a0] sm:$0xff] }
 0x11a   :  { %v3832_v10 = vpop.f32.mrb[18].mxu0  ;;  %v3834_v12 = vpop.f32.mrb[18].mxu1 }
 0x11b   :  { %v2243_v13 = vpop.f32.mrb[19].mxu0  ;;  %2612 = vmatmul.mubr.f32.gmra.mrb[124].mxu0 %v1836_v5  ;;  %v2422_v17 = vpop.f32.mrb[19].mxu1  ;;  %2791 = vmatmul.mubr.f32.gmra.mrb[124].mxu1 %v1885_v7  ;;  %v1890_v5 = vld [vmem:[%s4771_s0 + $0x528] sm:$0xff] }
 0x11c   :  { %2614 = vmatprep.mubr.msk.f32.mxu0 %vm2998_vm0, %v2999_v6  ;;  %2793 = vmatprep.mubr.msk.f32.mxu1 %vm2998_vm0, %v2999_v6 }
 0x11e   :  { %v3848_v21 = vpop.f32.mrb[20].mxu0  ;;  %v3850_v24 = vpop.f32.mrb[20].mxu1 }
 0x11f   :  { %v2246_v26 = vpop.f32.mrb[21].mxu0  ;;  %2615 = vmatmul.mubr.f32.gmra.mrb[126].mxu0 %v1837_v19  ;;  %v2425_v28 = vpop.f32.mrb[21].mxu1  ;;  %2794 = vmatmul.mubr.f32.gmra.mrb[126].mxu1 %v1886_v20 }
 0x120   :  { %2617 = vmatprep.mubr.msk.f32.mxu0 %vm2998_vm0, %v2999_v6  ;;  %2796 = vmatprep.mubr.msk.f32.mxu1 %vm2998_vm0, %v2999_v6  ;;  %v1842_v26 = vld [vmem:[%s4771_s0 + $0x3a8] sm:$0xff]  ;;  %v1891_v28 = vld [vmem:[%s4771_s0 + $0x530] sm:$0xff] }
 0x122   :  { %v3864_v34 = vpop.f32.mrb[22].mxu0  ;;  %v3866_v35 = vpop.f32.mrb[22].mxu1 }
 0x123   :  { %v2249_v38 = vpop.f32.mrb[23].mxu0  ;;  %2618 = vmatmul.mubr.f32.gmra.mrb[128].mxu0 %v1838_v31  ;;  %v2428_v41 = vpop.f32.mrb[23].mxu1  ;;  %2797 = vmatmul.mubr.f32.gmra.mrb[128].mxu1 %v1887_v33 }
 0x124   :  { %2620 = vmatprep.mubr.msk.f32.mxu0 %vm2998_vm0, %v2999_v6  ;;  %2799 = vmatprep.mubr.msk.f32.mxu1 %vm2998_vm0, %v2999_v6  ;;  %v1848_v41 = vld [vmem:[%s4771_s0 + $0x3d8] sm:$0xff] }
 0x126   :  { %v3880_v47 = vpop.f32.mrb[24].mxu0  ;;  %v3882_v48 = vpop.f32.mrb[24].mxu1 }
 0x127   :  { %v2252_v49 = vpop.f32.mrb[25].mxu0  ;;  %2621 = vmatmul.mubr.f32.gmra.mrb[130].mxu0 %v1839_v42  ;;  %v2431_v54 = vpop.f32.mrb[25].mxu1  ;;  %2800 = vmatmul.mubr.f32.gmra.mrb[130].mxu1 %v1888_v45  ;;  %v1843_v45 = vld [vmem:[%s4771_s0 + $0x3b0] sm:$0xff] }
 0x128   :  { %2623 = vmatprep.mubr.msk.f32.mxu0 %vm2998_vm0, %v2999_v6  ;;  %2802 = vmatprep.mubr.msk.f32.mxu1 %vm2998_vm0, %v2999_v6  ;;  %v1892_v49 = vld [vmem:[%s4771_s0 + $0x538] sm:$0xff] }
 0x12a   :  { %v3896_v59 = vpop.f32.mrb[26].mxu0  ;;  %v3898_v61 = vpop.f32.mrb[26].mxu1 }
 0x12b   :  { %v2255_v62 = vpop.f32.mrb[27].mxu0  ;;  %2624 = vmatmul.mubr.f32.gmra.mrb[132].mxu0 %v1840_v55  ;;  %v2434_v2 = vpop.f32.mrb[27].mxu1  ;;  %2803 = vmatmul.mubr.f32.gmra.mrb[132].mxu1 %v1889_v56 }
 0x12c   :  { %2626 = vmatprep.mubr.msk.f32.mxu0 %vm2998_vm0, %v2999_v6  ;;  %2805 = vmatprep.mubr.msk.f32.mxu1 %vm2998_vm0, %v2999_v6 }
 0x12e   :  { %v3912_v7 = vpop.f32.mrb[28].mxu0  ;;  %v3914_v13 = vpop.f32.mrb[28].mxu1 }
 0x12f   :  { %v2258_v17 = vpop.f32.mrb[29].mxu0  ;;  %2627 = vmatmul.mubr.f32.gmra.mrb[134].mxu0 %v1841_v4  ;;  %v2437_v20 = vpop.f32.mrb[29].mxu1  ;;  %2806 = vmatmul.mubr.f32.gmra.mrb[134].mxu1 %v1890_v5  ;;  %v1844_v4 = vld [vmem:[%s4771_s0 + $0x3b8] sm:$0xff]  ;;  %v1893_v5 = vld [vmem:[%s4771_s0 + $0x540] sm:$0xff] }
 0x130   :  { %2629 = vmatprep.mubr.msk.f32.mxu0 %vm2998_vm0, %v2999_v6  ;;  %2808 = vmatprep.mubr.msk.f32.mxu1 %vm2998_vm0, %v2999_v6 }
 0x132   :  { %v3928_v31 = vpop.f32.mrb[30].mxu0  ;;  %v3930_v33 = vpop.f32.mrb[30].mxu1 }
 0x133   :  { %v2261_v38 = vpop.f32.mrb[31].mxu0  ;;  %2630 = vmatmul.mubr.f32.gmra.mrb[136].mxu0 %v1842_v26  ;;  %v2440_v42 = vpop.f32.mrb[31].mxu1  ;;  %2809 = vmatmul.mubr.f32.gmra.mrb[136].mxu1 %v1891_v28  ;;  %v1847_v28 = vld [vmem:[%s4771_s0 + $0x3d0] sm:$0xff] }
 0x134   :  { %2632 = vmatprep.mubr.msk.f32.mxu0 %vm2998_vm0, %v2999_v6  ;;  %2811 = vmatprep.mubr.msk.f32.mxu1 %vm2998_vm0, %v2999_v6  ;;  %v1845_v42 = vld [vmem:[%s4771_s0 + $0x3c0] sm:$0xff] }
 0x136   :  { %v3944_v54 = vpop.f32.mrb[32].mxu0  ;;  %v3946_v55 = vpop.f32.mrb[32].mxu1 }
 0x137   :  { %v2264_v56 = vpop.f32.mrb[33].mxu0  ;;  %2633 = vmatmul.mubr.f32.gmra.mrb[138].mxu0 %v1843_v45  ;;  %v2443_v2 = vpop.f32.mrb[33].mxu1  ;;  %2812 = vmatmul.mubr.f32.gmra.mrb[138].mxu1 %v1892_v49  ;;  %v1894_v45 = vld [vmem:[%s4771_s0 + $0x548] sm:$0xff] }
 0x138   :  { %2635 = vmatprep.mubr.msk.f32.mxu0 %vm2998_vm0, %v2999_v6  ;;  %2814 = vmatprep.mubr.msk.f32.mxu1 %vm2998_vm0, %v2999_v6 }
 0x13a   :  { %v3960_v17 = vpop.f32.mrb[34].mxu0  ;;  %v3962_v20 = vpop.f32.mrb[34].mxu1 }
 0x13b   :  { %v2267_v26 = vpop.f32.mrb[35].mxu0  ;;  %2636 = vmatmul.mubr.f32.gmra.mrb[140].mxu0 %v1844_v4  ;;  %v2446_v38 = vpop.f32.mrb[35].mxu1  ;;  %2815 = vmatmul.mubr.f32.gmra.mrb[140].mxu1 %v1893_v5 }
 0x13c   :  { %2638 = vmatprep.mubr.msk.f32.mxu0 %vm2998_vm0, %v2999_v6  ;;  %2817 = vmatprep.mubr.msk.f32.mxu1 %vm2998_vm0, %v2999_v6  ;;  %v1846_v26 = vld [vmem:[%s4771_s0 + $0x3c8] sm:$0xff]  ;;  %v1895_v38 = vld [vmem:[%s4771_s0 + $0x550] sm:$0xff] }
 0x13e   :  { %v3976_v49 = vpop.f32.mrb[36].mxu0  ;;  %v3978_v56 = vpop.f32.mrb[36].mxu1 }
 0x13f   :  { %v2270_v2 = vpop.f32.mrb[37].mxu0  ;;  %2639 = vmatmul.mubr.f32.gmra.mrb[142].mxu0 %v1845_v42  ;;  %v2449_v5 = vpop.f32.mrb[37].mxu1  ;;  %2818 = vmatmul.mubr.f32.gmra.mrb[142].mxu1 %v1894_v45 }
 0x140   :  { %2641 = vmatprep.mubr.msk.f32.mxu0 %vm2998_vm0, %v2999_v6  ;;  %2820 = vmatprep.mubr.msk.f32.mxu1 %vm2998_vm0, %v2999_v6 }
 0x142   :  { %v3992_v2 = vpop.f32.mrb[38].mxu0  ;;  %v3994_v4 = vpop.f32.mrb[38].mxu1 }
 0x143   :  { %v2273_v42 = vpop.f32.mrb[39].mxu0  ;;  %2642 = vmatmul.mubr.f32.gmra.mrb[144].mxu0 %v1846_v26  ;;  %v2452_v5 = vpop.f32.mrb[39].mxu1  ;;  %2821 = vmatmul.mubr.f32.gmra.mrb[144].mxu1 %v1895_v38 }
 0x144   :  { %2644 = vmatprep.mubr.msk.f32.mxu0 %vm2998_vm0, %v2999_v6  ;;  %2823 = vmatprep.mubr.msk.f32.mxu1 %vm2998_vm0, %v2999_v6  ;;  %v1896_v42 = vld [vmem:[%s4771_s0 + $0x558] sm:$0xff] }
 0x146   :  { %v4008_v62 = vpop.f32.mrb[40].mxu0  ;;  %v4010_v45 = vpop.f32.mrb[40].mxu1 }
 0x147   :  { %v2276_v26 = vpop.f32.mrb[41].mxu0  ;;  %2645 = vmatmul.mubr.f32.gmra.mrb[146].mxu0 %v1847_v28  ;;  %v2455_v5 = vpop.f32.mrb[41].mxu1  ;;  %2824 = vmatmul.mubr.f32.gmra.mrb[146].mxu1 %v1896_v42 }
 0x148   :  { %2647 = vmatprep.mubr.msk.f32.mxu0 %vm2998_vm0, %v2999_v6  ;;  %2826 = vmatprep.mubr.msk.f32.mxu1 %vm2998_vm0, %v2999_v6  ;;  %v1897_v26 = vld [vmem:[%s4771_s0 + $0x560] sm:$0xff] }
 0x14a   :  { %v4024_v19 = vpop.f32.mrb[42].mxu0  ;;  %v4026_v38 = vpop.f32.mrb[42].mxu1 }
 0x14b   :  { %v2279_v28 = vpop.f32.mrb[43].mxu0  ;;  %2648 = vmatmul.mubr.f32.gmra.mrb[148].mxu0 %v1848_v41  ;;  %v2458_v5 = vpop.f32.mrb[43].mxu1  ;;  %2827 = vmatmul.mubr.f32.gmra.mrb[148].mxu1 %v1897_v26 }
 0x14c   :  { %2650 = vmatprep.mubr.msk.f32.mxu0 %vm2998_vm0, %v2999_v6  ;;  %2829 = vmatprep.mubr.msk.f32.mxu1 %vm2998_vm0, %v2999_v6  ;;  %v1898_v28 = vld [vmem:[%s4771_s0 + $0x568] sm:$0xff] }
 0x14e   :  { %v4040_v52 = vpop.f32.mrb[44].mxu0  ;;  %v4042_v42 = vpop.f32.mrb[44].mxu1 }
 0x14f   :  { %v2282_v41 = vpop.f32.mrb[45].mxu0  ;;  %2651 = vmatmul.mubr.f32.gmra.mrb[150].mxu0 %v1849_v63  ;;  %v2461_v5 = vpop.f32.mrb[45].mxu1  ;;  %2830 = vmatmul.mubr.f32.gmra.mrb[150].mxu1 %v1898_v28 }
 0x150   :  { %2653 = vmatprep.mubr.msk.f32.mxu0 %vm2998_vm0, %v2999_v6  ;;  %2832 = vmatprep.mubr.msk.f32.mxu1 %vm2998_vm0, %v2999_v6  ;;  %v1899_v41 = vld [vmem:[%s4771_s0 + $0x570] sm:$0xff] }
 0x152   :  { %v4056_v27 = vpop.f32.mrb[46].mxu0  ;;  %v4058_v26 = vpop.f32.mrb[46].mxu1 }
 0x153   :  { %v2285_v63 = vpop.f32.mrb[47].mxu0  ;;  %2654 = vmatmul.mubr.f32.gmra.mrb[152].mxu0 %v1850_v40  ;;  %v2464_v5 = vpop.f32.mrb[47].mxu1  ;;  %2833 = vmatmul.mubr.f32.gmra.mrb[152].mxu1 %v1899_v41 }
 0x154   :  { %2656 = vmatprep.mubr.msk.f32.mxu0 %vm2998_vm0, %v2999_v6  ;;  %2835 = vmatprep.mubr.msk.f32.mxu1 %vm2998_vm0, %v2999_v6  ;;  %v1900_v63 = vld [vmem:[%s4771_s0 + $0x578] sm:$0xff] }
 0x156   :  { %v4072_v3 = vpop.f32.mrb[48].mxu0  ;;  %v4074_v28 = vpop.f32.mrb[48].mxu1 }
 0x157   :  { %4823 = vst [vmem:[#allocation2_spill] sm:$0xff] %v4074_v28  ;;  %v2288_v40 = vpop.f32.mrb[49].mxu0  ;;  %2657 = vmatmul.mubr.f32.gmra.mrb[154].mxu0 %v1851_v14  ;;  %v2467_v5 = vpop.f32.mrb[49].mxu1  ;;  %2836 = vmatmul.mubr.f32.gmra.mrb[154].mxu1 %v1900_v63 }
 0x158   :  { %2659 = vmatprep.mubr.msk.f32.mxu0 %vm2998_vm0, %v2999_v6  ;;  %2838 = vmatprep.mubr.msk.f32.mxu1 %vm2998_vm0, %v2999_v6  ;;  %v1901_v40 = vld [vmem:[%s4771_s0 + $0x580] sm:$0xff] }
 0x15a   :  { %v4088_v53 = vpop.f32.mrb[50].mxu0  ;;  %v4090_v41 = vpop.f32.mrb[50].mxu1 }
 0x15b   :  { %4824 = vst [vmem:[#allocation3_spill] sm:$0xff] %v4088_v53  ;;  %4825 = vst [vmem:[#allocation4_spill] sm:$0xff] %v4090_v41  ;;  %v2291_v14 = vpop.f32.mrb[51].mxu0  ;;  %2660 = vmatmul.mubr.f32.gmra.mrb[156].mxu0 %v1852_v60  ;;  %v2470_v5 = vpop.f32.mrb[51].mxu1  ;;  %2839 = vmatmul.mubr.f32.gmra.mrb[156].mxu1 %v1901_v40 }
 0x15c   :  { %2662 = vmatprep.mubr.msk.f32.mxu0 %vm2998_vm0, %v2999_v6  ;;  %2841 = vmatprep.mubr.msk.f32.mxu1 %vm2998_vm0, %v2999_v6  ;;  %v1902_v14 = vld [vmem:[%s4771_s0 + $0x588] sm:$0xff] }
 0x15e   :  { %v4104_v39 = vpop.f32.mrb[52].mxu0  ;;  %v4106_v63 = vpop.f32.mrb[52].mxu1 }
 0x15f   :  { %4826 = vst [vmem:[#allocation5_spill] sm:$0xff] %v4104_v39  ;;  %4827 = vst [vmem:[#allocation6_spill] sm:$0xff] %v4106_v63  ;;  %v2294_v60 = vpop.f32.mrb[53].mxu0  ;;  %2663 = vmatmul.mubr.f32.gmra.mrb[158].mxu0 %v1853_v46  ;;  %v2473_v5 = vpop.f32.mrb[53].mxu1  ;;  %2842 = vmatmul.mubr.f32.gmra.mrb[158].mxu1 %v1902_v14 }
 0x160   :  { %2665 = vmatprep.mubr.msk.f32.mxu0 %vm2998_vm0, %v2999_v6  ;;  %2844 = vmatprep.mubr.msk.f32.mxu1 %vm2998_vm0, %v2999_v6  ;;  %v1903_v60 = vld [vmem:[%s4771_s0 + $0x590] sm:$0xff] }
 0x162   :  { %v4120_v25 = vpop.f32.mrb[54].mxu0  ;;  %v4122_v40 = vpop.f32.mrb[54].mxu1 }
 0x163   :  { %4828 = vst [vmem:[#allocation7_spill] sm:$0xff] %v4120_v25  ;;  %4829 = vst [vmem:[#allocation8_spill] sm:$0xff] %v4122_v40  ;;  %v2297_v46 = vpop.f32.mrb[55].mxu0  ;;  %2666 = vmatmul.mubr.f32.gmra.mrb[160].mxu0 %v1854_v32  ;;  %v2476_v5 = vpop.f32.mrb[55].mxu1  ;;  %2845 = vmatmul.mubr.f32.gmra.mrb[160].mxu1 %v1903_v60  ;;  %v1856_v40 = vld [vmem:[%s4771_s0 + $0x418] sm:$0xff] }
 0x164   :  { %2668 = vmatprep.mubr.msk.f32.mxu0 %vm2998_vm0, %v2999_v6  ;;  %2847 = vmatprep.mubr.msk.f32.mxu1 %vm2998_vm0, %v2999_v6  ;;  %v1904_v46 = vld [vmem:[%s4771_s0 + $0x598] sm:$0xff] }
 0x166   :  { %v4136_v11 = vpop.f32.mrb[56].mxu0  ;;  %v4138_v14 = vpop.f32.mrb[56].mxu1 }
 0x167   :  { %4830 = vst [vmem:[#allocation9_spill] sm:$0xff] %v4136_v11  ;;  %4831 = vst [vmem:[#allocation10_spill] sm:$0xff] %v4138_v14  ;;  %v2300_v32 = vpop.f32.mrb[57].mxu0  ;;  %2669 = vmatmul.mubr.f32.gmra.mrb[162].mxu0 %v1855_v18  ;;  %v2479_v5 = vpop.f32.mrb[57].mxu1  ;;  %2848 = vmatmul.mubr.f32.gmra.mrb[162].mxu1 %v1904_v46  ;;  %v1857_v14 = vld [vmem:[%s4771_s0 + $0x420] sm:$0xff] }
 0x168   :  { %2671 = vmatprep.mubr.msk.f32.mxu0 %vm2998_vm0, %v2999_v6  ;;  %2850 = vmatprep.mubr.msk.f32.mxu1 %vm2998_vm0, %v2999_v6  ;;  %v1905_v32 = vld [vmem:[%s4771_s0 + $0x5a0] sm:$0xff] }
 0x16a   :  { %v4152_v25 = vpop.f32.mrb[58].mxu0  ;;  %v4154_v60 = vpop.f32.mrb[58].mxu1 }
 0x16b   :  { %4832 = vst [vmem:[#allocation11_spill] sm:$0xff] %v4152_v25  ;;  %4833 = vst [vmem:[#allocation12_spill] sm:$0xff] %v4154_v60  ;;  %v2303_v18 = vpop.f32.mrb[59].mxu0  ;;  %2672 = vmatmul.mubr.f32.gmra.mrb[164].mxu0 %v1856_v40  ;;  %v2482_v5 = vpop.f32.mrb[59].mxu1  ;;  %2851 = vmatmul.mubr.f32.gmra.mrb[164].mxu1 %v1905_v32  ;;  %v1858_v60 = vld [vmem:[%s4771_s0 + $0x428] sm:$0xff] }
 0x16c   :  { %2674 = vmatprep.mubr.msk.f32.mxu0 %vm2998_vm0, %v2999_v6  ;;  %2853 = vmatprep.mubr.msk.f32.mxu1 %vm2998_vm0, %v2999_v6  ;;  %v1906_v18 = vld [vmem:[%s4771_s0 + $0x5a8] sm:$0xff] }
 0x16e   :  { %v4168_v11 = vpop.f32.mrb[60].mxu0  ;;  %v4170_v46 = vpop.f32.mrb[60].mxu1 }
 0x16f   :  { %4834 = vst [vmem:[#allocation13_spill] sm:$0xff] %v4168_v11  ;;  %4835 = vst [vmem:[#allocation14_spill] sm:$0xff] %v4170_v46  ;;  %v2306_v40 = vpop.f32.mrb[61].mxu0  ;;  %2675 = vmatmul.mubr.f32.gmra.mrb[166].mxu0 %v1857_v14  ;;  %v2485_v5 = vpop.f32.mrb[61].mxu1  ;;  %2854 = vmatmul.mubr.f32.gmra.mrb[166].mxu1 %v1906_v18  ;;  %v1859_v46 = vld [vmem:[%s4771_s0 + $0x430] sm:$0xff] }
 0x170   :  { %2677 = vmatprep.mubr.msk.f32.mxu0 %vm2998_vm0, %v2999_v6  ;;  %2856 = vmatprep.mubr.msk.f32.mxu1 %vm2998_vm0, %v2999_v6  ;;  %v1907_v40 = vld [vmem:[%s4771_s0 + $0x5b0] sm:$0xff] }
 0x172   :  { %v4184_v25 = vpop.f32.mrb[62].mxu0  ;;  %v4186_v32 = vpop.f32.mrb[62].mxu1 }
 0x173   :  { %4836 = vst [vmem:[#allocation15_spill] sm:$0xff] %v4184_v25  ;;  %4837 = vst [vmem:[#allocation16_spill] sm:$0xff] %v4186_v32  ;;  %v2309_v14 = vpop.f32.mrb[63].mxu0  ;;  %2678 = vmatmul.mubr.f32.gmra.mrb[168].mxu0 %v1858_v60  ;;  %v2488_v5 = vpop.f32.mrb[63].mxu1  ;;  %2857 = vmatmul.mubr.f32.gmra.mrb[168].mxu1 %v1907_v40  ;;  %v1860_v32 = vld [vmem:[%s4771_s0 + $0x438] sm:$0xff] }
 0x174   :  { %2680 = vmatprep.mubr.msk.f32.mxu0 %vm2998_vm0, %v2999_v6  ;;  %2859 = vmatprep.mubr.msk.f32.mxu1 %vm2998_vm0, %v2999_v6  ;;  %v1908_v14 = vld [vmem:[%s4771_s0 + $0x5b8] sm:$0xff] }
 0x176   :  { %v4200_v11 = vpop.f32.mrb[64].mxu0  ;;  %v4202_v18 = vpop.f32.mrb[64].mxu1 }
 0x177   :  { %4838 = vst [vmem:[#allocation17_spill] sm:$0xff] %v4200_v11  ;;  %4839 = vst [vmem:[#allocation18_spill] sm:$0xff] %v4202_v18  ;;  %v2312_v60 = vpop.f32.mrb[65].mxu0  ;;  %2681 = vmatmul.mubr.f32.gmra.mrb[170].mxu0 %v1859_v46  ;;  %v2491_v5 = vpop.f32.mrb[65].mxu1  ;;  %2860 = vmatmul.mubr.f32.gmra.mrb[170].mxu1 %v1908_v14  ;;  %v1861_v18 = vld [vmem:[%s4771_s0 + $0x440] sm:$0xff] }
 0x178   :  { %2683 = vmatprep.mubr.msk.f32.mxu0 %vm2998_vm0, %v2999_v6  ;;  %2862 = vmatprep.mubr.msk.f32.mxu1 %vm2998_vm0, %v2999_v6  ;;  %v1909_v60 = vld [vmem:[%s4771_s0 + $0x5c0] sm:$0xff] }
 0x17a   :  { %v4216_v25 = vpop.f32.mrb[66].mxu0  ;;  %v4218_v40 = vpop.f32.mrb[66].mxu1 }
 0x17b   :  { %4840 = vst [vmem:[#allocation19_spill] sm:$0xff] %v4216_v25  ;;  %4841 = vst [vmem:[#allocation20_spill] sm:$0xff] %v4218_v40  ;;  %v2315_v46 = vpop.f32.mrb[67].mxu0  ;;  %2684 = vmatmul.mubr.f32.gmra.mrb[172].mxu0 %v1860_v32  ;;  %v2494_v5 = vpop.f32.mrb[67].mxu1  ;;  %2863 = vmatmul.mubr.f32.gmra.mrb[172].mxu1 %v1909_v60  ;;  %v1862_v40 = vld [vmem:[%s4771_s0 + $0x448] sm:$0xff] }
 0x17c   :  { %2686 = vmatprep.mubr.msk.f32.mxu0 %vm2998_vm0, %v2999_v6  ;;  %2865 = vmatprep.mubr.msk.f32.mxu1 %vm2998_vm0, %v2999_v6  ;;  %v1910_v46 = vld [vmem:[%s4771_s0 + $0x5c8] sm:$0xff] }
 0x17e   :  { %v4232_v11 = vpop.f32.mrb[68].mxu0  ;;  %v4234_v14 = vpop.f32.mrb[68].mxu1 }
 0x17f   :  { %4842 = vst [vmem:[#allocation21_spill] sm:$0xff] %v4232_v11  ;;  %4843 = vst [vmem:[#allocation22_spill] sm:$0xff] %v4234_v14  ;;  %v2318_v32 = vpop.f32.mrb[69].mxu0  ;;  %2687 = vmatmul.mubr.f32.gmra.mrb[174].mxu0 %v1861_v18  ;;  %v2497_v5 = vpop.f32.mrb[69].mxu1  ;;  %2866 = vmatmul.mubr.f32.gmra.mrb[174].mxu1 %v1910_v46  ;;  %v1863_v14 = vld [vmem:[%s4771_s0 + $0x450] sm:$0xff] }
 0x180   :  { %2689 = vmatprep.mubr.msk.f32.mxu0 %vm2998_vm0, %v2999_v6  ;;  %2868 = vmatprep.mubr.msk.f32.mxu1 %vm2998_vm0, %v2999_v6  ;;  %v1911_v32 = vld [vmem:[%s4771_s0 + $0x5d0] sm:$0xff] }
 0x182   :  { %v4248_v25 = vpop.f32.mrb[70].mxu0  ;;  %v4250_v60 = vpop.f32.mrb[70].mxu1 }
 0x183   :  { %4844 = vst [vmem:[#allocation23_spill] sm:$0xff] %v4248_v25  ;;  %4845 = vst [vmem:[#allocation24_spill] sm:$0xff] %v4250_v60  ;;  %v2321_v18 = vpop.f32.mrb[71].mxu0  ;;  %2690 = vmatmul.mubr.f32.gmra.mrb[176].mxu0 %v1862_v40  ;;  %v2500_v5 = vpop.f32.mrb[71].mxu1  ;;  %2869 = vmatmul.mubr.f32.gmra.mrb[176].mxu1 %v1911_v32  ;;  %v1864_v60 = vld [vmem:[%s4771_s0 + $0x458] sm:$0xff] }
 0x184   :  { %2692 = vmatprep.mubr.msk.f32.mxu0 %vm2998_vm0, %v2999_v6  ;;  %2871 = vmatprep.mubr.msk.f32.mxu1 %vm2998_vm0, %v2999_v6  ;;  %v1912_v18 = vld [vmem:[%s4771_s0 + $0x5d8] sm:$0xff] }
 0x186   :  { %v4264_v11 = vpop.f32.mrb[72].mxu0  ;;  %v4266_v46 = vpop.f32.mrb[72].mxu1 }
 0x187   :  { %4846 = vst [vmem:[#allocation25_spill] sm:$0xff] %v4264_v11  ;;  %4847 = vst [vmem:[#allocation26_spill] sm:$0xff] %v4266_v46  ;;  %v2324_v40 = vpop.f32.mrb[73].mxu0  ;;  %2693 = vmatmul.mubr.f32.gmra.mrb[178].mxu0 %v1863_v14  ;;  %v2503_v5 = vpop.f32.mrb[73].mxu1  ;;  %2872 = vmatmul.mubr.f32.gmra.mrb[178].mxu1 %v1912_v18  ;;  %v1865_v46 = vld [vmem:[%s4771_s0 + $0x460] sm:$0xff] }
 0x188   :  { %2695 = vmatprep.mubr.msk.f32.mxu0 %vm2998_vm0, %v2999_v6  ;;  %2874 = vmatprep.mubr.msk.f32.mxu1 %vm2998_vm0, %v2999_v6  ;;  %v1913_v40 = vld [vmem:[%s4771_s0 + $0x5e0] sm:$0xff] }
 0x18a   :  { %v4280_v25 = vpop.f32.mrb[74].mxu0  ;;  %v4282_v32 = vpop.f32.mrb[74].mxu1 }
 0x18b   :  { %4848 = vst [vmem:[#allocation27_spill] sm:$0xff] %v4280_v25  ;;  %4849 = vst [vmem:[#allocation28_spill] sm:$0xff] %v4282_v32  ;;  %v2327_v14 = vpop.f32.mrb[75].mxu0  ;;  %2696 = vmatmul.mubr.f32.gmra.mrb[180].mxu0 %v1864_v60  ;;  %v2506_v5 = vpop.f32.mrb[75].mxu1  ;;  %2875 = vmatmul.mubr.f32.gmra.mrb[180].mxu1 %v1913_v40  ;;  %v1866_v32 = vld [vmem:[%s4771_s0 + $0x468] sm:$0xff] }
 0x18c   :  { %2698 = vmatprep.mubr.msk.f32.mxu0 %vm2998_vm0, %v2999_v6  ;;  %2877 = vmatprep.mubr.msk.f32.mxu1 %vm2998_vm0, %v2999_v6  ;;  %v1914_v14 = vld [vmem:[%s4771_s0 + $0x5e8] sm:$0xff] }
 0x18e   :  { %v4296_v11 = vpop.f32.mrb[76].mxu0  ;;  %v4298_v18 = vpop.f32.mrb[76].mxu1 }
 0x18f   :  { %4850 = vst [vmem:[#allocation29_spill] sm:$0xff] %v4296_v11  ;;  %4851 = vst [vmem:[#allocation30_spill] sm:$0xff] %v4298_v18  ;;  %v2330_v60 = vpop.f32.mrb[77].mxu0  ;;  %2699 = vmatmul.mubr.f32.gmra.mrb[182].mxu0 %v1865_v46  ;;  %v2509_v5 = vpop.f32.mrb[77].mxu1  ;;  %2878 = vmatmul.mubr.f32.gmra.mrb[182].mxu1 %v1914_v14  ;;  %v1867_v18 = vld [vmem:[%s4771_s0 + $0x470] sm:$0xff] }
 0x190   :  { %2701 = vmatprep.mubr.msk.f32.mxu0 %vm2998_vm0, %v2999_v6  ;;  %2880 = vmatprep.mubr.msk.f32.mxu1 %vm2998_vm0, %v2999_v6  ;;  %v1915_v60 = vld [vmem:[%s4771_s0 + $0x5f0] sm:$0xff] }
 0x192   :  { %v4312_v25 = vpop.f32.mrb[78].mxu0  ;;  %v4314_v40 = vpop.f32.mrb[78].mxu1 }
 0x193   :  { %4852 = vst [vmem:[#allocation31_spill] sm:$0xff] %v4312_v25  ;;  %4853 = vst [vmem:[#allocation32_spill] sm:$0xff] %v4314_v40  ;;  %v2333_v46 = vpop.f32.mrb[79].mxu0  ;;  %2702 = vmatmul.mubr.f32.gmra.mrb[184].mxu0 %v1866_v32  ;;  %v2512_v5 = vpop.f32.mrb[79].mxu1  ;;  %2881 = vmatmul.mubr.f32.gmra.mrb[184].mxu1 %v1915_v60  ;;  %v1868_v40 = vld [vmem:[%s4771_s0 + $0x478] sm:$0xff] }
 0x194   :  { %2704 = vmatprep.mubr.msk.f32.mxu0 %vm2998_vm0, %v2999_v6  ;;  %2883 = vmatprep.mubr.msk.f32.mxu1 %vm2998_vm0, %v2999_v6  ;;  %v1916_v46 = vld [vmem:[%s4771_s0 + $0x5f8] sm:$0xff] }
 0x196   :  { %v4328_v11 = vpop.f32.mrb[80].mxu0  ;;  %v4330_v14 = vpop.f32.mrb[80].mxu1 }
 0x197   :  { %4854 = vst [vmem:[#allocation33_spill] sm:$0xff] %v4328_v11  ;;  %4855 = vst [vmem:[#allocation34_spill] sm:$0xff] %v4330_v14  ;;  %v2336_v32 = vpop.f32.mrb[81].mxu0  ;;  %2705 = vmatmul.mubr.f32.gmra.mrb[186].mxu0 %v1867_v18  ;;  %v2515_v5 = vpop.f32.mrb[81].mxu1  ;;  %2884 = vmatmul.mubr.f32.gmra.mrb[186].mxu1 %v1916_v46  ;;  %v1869_v14 = vld [vmem:[%s4771_s0 + $0x480] sm:$0xff] }
 0x198   :  { %2707 = vmatprep.mubr.msk.f32.mxu0 %vm2998_vm0, %v2999_v6  ;;  %2886 = vmatprep.mubr.msk.f32.mxu1 %vm2998_vm0, %v2999_v6  ;;  %v1917_v32 = vld [vmem:[%s4771_s0 + $0x600] sm:$0xff] }
 0x19a   :  { %v4344_v25 = vpop.f32.mrb[82].mxu0  ;;  %v4346_v60 = vpop.f32.mrb[82].mxu1 }
 0x19b   :  { %4856 = vst [vmem:[#allocation35_spill] sm:$0xff] %v4344_v25  ;;  %4857 = vst [vmem:[#allocation36_spill] sm:$0xff] %v4346_v60  ;;  %v2339_v18 = vpop.f32.mrb[83].mxu0  ;;  %2708 = vmatmul.mubr.f32.gmra.mrb[188].mxu0 %v1868_v40  ;;  %v2518_v5 = vpop.f32.mrb[83].mxu1  ;;  %2887 = vmatmul.mubr.f32.gmra.mrb[188].mxu1 %v1917_v32  ;;  %v1870_v60 = vld [vmem:[%s4771_s0 + $0x488] sm:$0xff] }
 0x19c   :  { %2710 = vmatprep.mubr.msk.f32.mxu0 %vm2998_vm0, %v2999_v6  ;;  %2889 = vmatprep.mubr.msk.f32.mxu1 %vm2998_vm0, %v2999_v6  ;;  %v1918_v18 = vld [vmem:[%s4771_s0 + $0x608] sm:$0xff] }
 0x19e   :  { %v4360_v11 = vpop.f32.mrb[84].mxu0  ;;  %v4362_v46 = vpop.f32.mrb[84].mxu1 }
 0x19f   :  { %4858 = vst [vmem:[#allocation37_spill] sm:$0xff] %v4360_v11  ;;  %4859 = vst [vmem:[#allocation38_spill] sm:$0xff] %v4362_v46  ;;  %v2342_v40 = vpop.f32.mrb[85].mxu0  ;;  %2711 = vmatmul.mubr.f32.gmra.mrb[190].mxu0 %v1869_v14  ;;  %v2521_v5 = vpop.f32.mrb[85].mxu1  ;;  %2890 = vmatmul.mubr.f32.gmra.mrb[190].mxu1 %v1918_v18  ;;  %v1871_v46 = vld [vmem:[%s4771_s0 + $0x490] sm:$0xff] }
 0x1a0   :  { %2713 = vmatprep.mubr.msk.f32.mxu0 %vm2998_vm0, %v2999_v6  ;;  %2892 = vmatprep.mubr.msk.f32.mxu1 %vm2998_vm0, %v2999_v6  ;;  %v1919_v40 = vld [vmem:[%s4771_s0 + $0x610] sm:$0xff] }
 0x1a2   :  { %v4376_v25 = vpop.f32.mrb[86].mxu0  ;;  %v4378_v32 = vpop.f32.mrb[86].mxu1 }
 0x1a3   :  { %4860 = vst [vmem:[#allocation39_spill] sm:$0xff] %v4376_v25  ;;  %4861 = vst [vmem:[#allocation40_spill] sm:$0xff] %v4378_v32  ;;  %v2345_v14 = vpop.f32.mrb[87].mxu0  ;;  %2714 = vmatmul.mubr.f32.gmra.mrb[192].mxu0 %v1870_v60  ;;  %v2524_v5 = vpop.f32.mrb[87].mxu1  ;;  %2893 = vmatmul.mubr.f32.gmra.mrb[192].mxu1 %v1919_v40 }
 0x1a4   :  { %2716 = vmatprep.mubr.msk.f32.mxu0 %vm2998_vm0, %v2999_v6  ;;  %2895 = vmatprep.mubr.msk.f32.mxu1 %vm2998_vm0, %v2999_v6  ;;  %v1920_v14 = vld [vmem:[%s4771_s0 + $0x618] sm:$0xff] }
 0x1a6   :  { %v4392_v11 = vpop.f32.mrb[88].mxu0  ;;  %v4394_v18 = vpop.f32.mrb[88].mxu1 }
 0x1a7   :  { %4862 = vst [vmem:[#allocation41_spill] sm:$0xff] %v4392_v11  ;;  %4863 = vst [vmem:[#allocation42_spill] sm:$0xff] %v4394_v18  ;;  %v2348_v60 = vpop.f32.mrb[89].mxu0  ;;  %2717 = vmatmul.mubr.f32.gmra.mrb[194].mxu0 %v1871_v46  ;;  %v2527_v5 = vpop.f32.mrb[89].mxu1  ;;  %2896 = vmatmul.mubr.f32.gmra.mrb[194].mxu1 %v1920_v14 }
 0x1aa   :  { %v4398_v32 = vpop.f32.mrb[90].mxu0  ;;  %v4400_v25 = vpop.f32.mrb[90].mxu1 }
 0x1ab   :  { %4864 = vst [vmem:[#allocation43_spill] sm:$0xff] %v4398_v32  ;;  %4865 = vst [vmem:[#allocation44_spill] sm:$0xff] %v4400_v25  ;;  %v2351_v6 = vpop.f32.mrb[91].mxu0  ;;  %v2530_v39 = vpop.f32.mrb[91].mxu1 }
 0x1ae   :  { %v4404_v41 = vpop.f32.mrb[92].mxu0  ;;  %v4406_v53 = vpop.f32.mrb[92].mxu1 }
 0x1af   :  { %4866 = vst [vmem:[#allocation45_spill] sm:$0xff] %v4404_v41  ;;  %4867 = vst [vmem:[#allocation46_spill] sm:$0xff] %v4406_v53  ;;  %v2354_v60 = vpop.f32.mrb[93].mxu0  ;;  %v2533_v46 = vpop.f32.mrb[93].mxu1  ;;  %v4872_v53 = vmax.f32 %v3688_v8, %v3690_v9 }
 0x1b2   :  { %v4410_v5 = vpop.f32.mrb[94].mxu0  ;;  %v4412_v14 = vpop.f32.mrb[94].mxu1 }
 0x1b3   :  { %4868 = vst [vmem:[#allocation47_spill] sm:$0xff] %v4410_v5  ;;  %4869 = vst [vmem:[#allocation48_spill] sm:$0xff] %v4412_v14  ;;  %v2357_v18 = vpop.f32.mrb[95].mxu0  ;;  %v2536_v11 = vpop.f32.mrb[95].mxu1 }
 0x1b4   :  { %v4428_v11 = vld [vmem:[%s4772_s2] ss:$0 sm:$0xff] }
 0x1b6   :  { %v4416_v63 = vpop.f32.mrb[96].mxu0  ;;  %v4418_v39 = vpop.f32.mrb[96].mxu1 }
 0x1b7   :  { %4870 = vst [vmem:[#allocation49_spill] sm:$0xff] %v4416_v63  ;;  %4871 = vst [vmem:[#allocation50_spill] sm:$0xff] %v4418_v39  ;;  %v2360_v25 = vpop.f32.mrb[97].mxu0  ;;  %v2539_v32 = vpop.f32.mrb[97].mxu1 }
 0x1b8   :  { %v4873_v32 = vmax.f32 %v3704_v15, %v3706_v16 }
 0x1ba   :  { %v914_v40 = vpop.f32.mrb[98].mxu0  ;;  %v1323_v46 = vpop.f32.mrb[98].mxu1 }
 0x1bb   :  { %v1158_v41 = vmax.f32 %v4872_v53, %v914_v40  ;;  %v2574_v18 = vpop.f32.mrb[99].mxu0  ;;  %v2753_v28 = vpop.f32.mrb[99].mxu1  ;;  %v4874_v40 = vmax.f32 %v3720_v22, %v3722_v23 }
 0x1bd   :  { %v1567_v6 = vmax.f32 %v1158_v41, %v1323_v46 }
 0x1be   :  { %v919_v14 = vpop.f32.mrb[100].mxu0  ;;  %v1328_v25 = vpop.f32.mrb[100].mxu1 }
 0x1bf   :  { %v1623_v5 = vadd.f32 %v4428_v11, %v1567_v6  ;;  %v1159_v60 = vmax.f32 %v4873_v32, %v919_v14  ;;  %v2577_v39 = vpop.f32.mrb[101].mxu0  ;;  %v2756_v63 = vpop.f32.mrb[101].mxu1 }
 0x1c0   :  { %v4875_v39 = vmax.f32 %v3736_v29, %v3738_v30 }
 0x1c1   :  { %v1672_v8 = vmax.f32 %v1623_v5, 0.0  ;;  %v1568_v9 = vmax.f32 %v1159_v60, %v1328_v25 }
 0x1c2   :  { %v924_v53 = vpop.f32.mrb[102].mxu0  ;;  %v1333_v28 = vpop.f32.mrb[102].mxu1 }
 0x1c3   :  { %1721 = vst [vmem:[%s4773_s3] sm:$0xff] %v1672_v8  ;;  %v1624_v41 = vadd.f32 %v4428_v11, %v1568_v9  ;;  %v1160_v6 = vmax.f32 %v4874_v40, %v924_v53  ;;  %v2580_v46 = vpop.f32.mrb[103].mxu0  ;;  %v2759_v18 = vpop.f32.mrb[103].mxu1 }
 0x1c5   :  { %v1673_v15 = vmax.f32 %v1624_v41, 0.0  ;;  %v1569_v16 = vmax.f32 %v1160_v6, %v1333_v28  ;;  %v4876_v28 = vmax.f32 %v3752_v36, %v3754_v37 }
 0x1c6   :  { %v929_v14 = vpop.f32.mrb[104].mxu0  ;;  %v1338_v63 = vpop.f32.mrb[104].mxu1 }
 0x1c7   :  { %1722 = vst [vmem:[%s4773_s3 + $0x8] sm:$0xff] %v1673_v15  ;;  %v1625_v5 = vadd.f32 %v4428_v11, %v1569_v16  ;;  %v1161_v60 = vmax.f32 %v4875_v39, %v929_v14  ;;  %v2583_v25 = vpop.f32.mrb[105].mxu0  ;;  %v2762_v32 = vpop.f32.mrb[105].mxu1  ;;  %v4877_v16 = vmax.f32 %v3768_v43, %v3770_v44 }
 0x1c8   :  { %v4878_v32 = vmax.f32 %v3784_v50, %v3786_v51 }
 0x1c9   :  { %v1674_v22 = vmax.f32 %v1625_v5, 0.0  ;;  %v1570_v23 = vmax.f32 %v1161_v60, %v1338_v63 }
 0x1ca   :  { %v934_v8 = vpop.f32.mrb[106].mxu0  ;;  %v1343_v9 = vpop.f32.mrb[106].mxu1 }
 0x1cb   :  { %1723 = vst [vmem:[%s4773_s3 + $0x10] sm:$0xff] %v1674_v22  ;;  %v1626_v53 = vadd.f32 %v4428_v11, %v1570_v23  ;;  %v1162_v41 = vmax.f32 %v4876_v28, %v934_v8  ;;  %v2586_v40 = vpop.f32.mrb[107].mxu0  ;;  %v2765_v6 = vpop.f32.mrb[107].mxu1 }
 0x1cd   :  { %v1675_v29 = vmax.f32 %v1626_v53, 0.0  ;;  %v1571_v30 = vmax.f32 %v1162_v41, %v1343_v9  ;;  %v4879_v41 = vmax.f32 %v3800_v57, %v3802_v58 }
 0x1ce   :  { %v939_v46 = vpop.f32.mrb[108].mxu0  ;;  %v1348_v18 = vpop.f32.mrb[108].mxu1 }
 0x1cf   :  { %1724 = vst [vmem:[%s4773_s3 + $0x18] sm:$0xff] %v1675_v29  ;;  %v1627_v15 = vadd.f32 %v4428_v11, %v1571_v30  ;;  %v1163_v14 = vmax.f32 %v4877_v16, %v939_v46  ;;  %v2589_v63 = vpop.f32.mrb[109].mxu0  ;;  %v2768_v5 = vpop.f32.mrb[109].mxu1 }
 0x1d1   :  { %v1676_v36 = vmax.f32 %v1627_v15, 0.0  ;;  %v1572_v37 = vmax.f32 %v1163_v14, %v1348_v18  ;;  %v4880_v15 = vmax.f32 %v3816_v0, %v3818_v1 }
 0x1d2   :  { %v944_v39 = vpop.f32.mrb[110].mxu0  ;;  %v1353_v60 = vpop.f32.mrb[110].mxu1 }
 0x1d3   :  { %1725 = vst [vmem:[%s4773_s3 + $0x20] sm:$0xff] %v1676_v36  ;;  %v1628_v25 = vadd.f32 %v4428_v11, %v1572_v37  ;;  %v1164_v22 = vmax.f32 %v4878_v32, %v944_v39  ;;  %v2592_v23 = vpop.f32.mrb[111].mxu0  ;;  %v2771_v8 = vpop.f32.mrb[111].mxu1  ;;  %v4881_v39 = vmax.f32 %v3832_v10, %v3834_v12 }
 0x1d5   :  { %v1677_v43 = vmax.f32 %v1628_v25, 0.0  ;;  %v1573_v44 = vmax.f32 %v1164_v22, %v1353_v60 }
 0x1d6   :  { %v949_v9 = vpop.f32.mrb[112].mxu0  ;;  %v1358_v53 = vpop.f32.mrb[112].mxu1 }
 0x1d7   :  { %1726 = vst [vmem:[%s4773_s3 + $0x28] sm:$0xff] %v1677_v43  ;;  %v1629_v28 = vadd.f32 %v4428_v11, %v1573_v44  ;;  %v1165_v40 = vmax.f32 %v4879_v41, %v949_v9  ;;  %v2595_v6 = vpop.f32.mrb[113].mxu0  ;;  %v2774_v29 = vpop.f32.mrb[113].mxu1  ;;  %v4882_v43 = vmax.f32 %v3848_v21, %v3850_v24 }
 0x1d8   :  { %v4883_v6 = vmax.f32 %v3864_v34, %v3866_v35 }
 0x1d9   :  { %v1678_v50 = vmax.f32 %v1629_v28, 0.0  ;;  %v1574_v51 = vmax.f32 %v1165_v40, %v1358_v53 }
 0x1da   :  { %v954_v30 = vpop.f32.mrb[114].mxu0  ;;  %v1363_v46 = vpop.f32.mrb[114].mxu1 }
 0x1db   :  { %1727 = vst [vmem:[%s4773_s3 + $0x30] sm:$0xff] %v1678_v50  ;;  %v1630_v18 = vadd.f32 %v4428_v11, %v1574_v51  ;;  %v1166_v16 = vmax.f32 %v4880_v15, %v954_v30  ;;  %v2598_v14 = vpop.f32.mrb[115].mxu0  ;;  %v2777_v63 = vpop.f32.mrb[115].mxu1  ;;  %v4884_v15 = vmax.f32 %v3880_v47, %v3882_v48 }
 0x1dd   :  { %v1679_v57 = vmax.f32 %v1630_v18, 0.0  ;;  %v1575_v58 = vmax.f32 %v1166_v16, %v1363_v46 }
 0x1de   :  { %v959_v5 = vpop.f32.mrb[116].mxu0  ;;  %v1368_v36 = vpop.f32.mrb[116].mxu1 }
 0x1df   :  { %1728 = vst [vmem:[%s4773_s3 + $0x38] sm:$0xff] %v1679_v57  ;;  %v1631_v37 = vadd.f32 %v4428_v11, %v1575_v58  ;;  %v1167_v60 = vmax.f32 %v4881_v39, %v959_v5  ;;  %v2601_v25 = vpop.f32.mrb[117].mxu0  ;;  %v2780_v32 = vpop.f32.mrb[117].mxu1 }
 0x1e1   :  { %v1680_v0 = vmax.f32 %v1631_v37, 0.0  ;;  %v1576_v1 = vmax.f32 %v1167_v60, %v1368_v36  ;;  %v4885_v36 = vmax.f32 %v3896_v59, %v3898_v61 }
 0x1e2   :  { %v964_v22 = vpop.f32.mrb[118].mxu0  ;;  %v1373_v23 = vpop.f32.mrb[118].mxu1 }
 0x1e3   :  { %1729 = vst [vmem:[%s4773_s3 + $0x40] sm:$0xff] %v1680_v0  ;;  %v1632_v8 = vadd.f32 %v4428_v11, %v1576_v1  ;;  %v1168_v44 = vmax.f32 %v4882_v43, %v964_v22  ;;  %v2604_v9 = vpop.f32.mrb[119].mxu0  ;;  %v2783_v53 = vpop.f32.mrb[119].mxu1  ;;  %v4886_v1 = vmax.f32 %v3912_v7, %v3914_v13 }
 0x1e4   :  { %v4887_v53 = vmax.f32 %v3928_v31, %v3930_v33 }
 0x1e5   :  { %v1681_v10 = vmax.f32 %v1632_v8, 0.0  ;;  %v1577_v12 = vmax.f32 %v1168_v44, %v1373_v23 }
 0x1e6   :  { %v969_v28 = vpop.f32.mrb[120].mxu0  ;;  %v1378_v41 = vpop.f32.mrb[120].mxu1 }
 0x1e7   :  { %1730 = vst [vmem:[%s4773_s3 + $0x48] sm:$0xff] %v1681_v10  ;;  %v1633_v40 = vadd.f32 %v4428_v11, %v1577_v12  ;;  %v1169_v29 = vmax.f32 %v4883_v6, %v969_v28  ;;  %v2607_v50 = vpop.f32.mrb[121].mxu0  ;;  %v2786_v51 = vpop.f32.mrb[121].mxu1 }
 0x1e9   :  { %v1682_v21 = vmax.f32 %v1633_v40, 0.0  ;;  %v1578_v24 = vmax.f32 %v1169_v29, %v1378_v41  ;;  %v4888_v29 = vmax.f32 %v3944_v54, %v3946_v55 }
 0x1ea   :  { %v974_v30 = vpop.f32.mrb[122].mxu0  ;;  %v1383_v46 = vpop.f32.mrb[122].mxu1 }
 0x1eb   :  { %1731 = vst [vmem:[%s4773_s3 + $0x50] sm:$0xff] %v1682_v21  ;;  %v1634_v18 = vadd.f32 %v4428_v11, %v1578_v24  ;;  %v1170_v16 = vmax.f32 %v4884_v15, %v974_v30  ;;  %v2610_v14 = vpop.f32.mrb[123].mxu0  ;;  %v2789_v63 = vpop.f32.mrb[123].mxu1 }
 0x1ed   :  { %v1683_v34 = vmax.f32 %v1634_v18, 0.0  ;;  %v1579_v35 = vmax.f32 %v1170_v16, %v1383_v46  ;;  %v4889_v18 = vmax.f32 %v3960_v17, %v3962_v20 }
 0x1ee   :  { %v979_v57 = vpop.f32.mrb[124].mxu0  ;;  %v1388_v58 = vpop.f32.mrb[124].mxu1 }
 0x1ef   :  { %1732 = vst [vmem:[%s4773_s3 + $0x58] sm:$0xff] %v1683_v34  ;;  %v1635_v5 = vadd.f32 %v4428_v11, %v1579_v35  ;;  %v1171_v37 = vmax.f32 %v4885_v36, %v979_v57  ;;  %v2613_v39 = vpop.f32.mrb[125].mxu0  ;;  %v2792_v60 = vpop.f32.mrb[125].mxu1  ;;  %v4890_v57 = vmax.f32 %v3976_v49, %v3978_v56 }
 0x1f1   :  { %v1684_v47 = vmax.f32 %v1635_v5, 0.0  ;;  %v1580_v48 = vmax.f32 %v1171_v37, %v1388_v58 }
 0x1f2   :  { %v984_v25 = vpop.f32.mrb[126].mxu0  ;;  %v1393_v32 = vpop.f32.mrb[126].mxu1 }
 0x1f3   :  { %1733 = vst [vmem:[%s4773_s3 + $0x60] sm:$0xff] %v1684_v47  ;;  %v1636_v0 = vadd.f32 %v4428_v11, %v1580_v48  ;;  %v1172_v22 = vmax.f32 %v4886_v1, %v984_v25  ;;  %v2616_v23 = vpop.f32.mrb[127].mxu0  ;;  %v2795_v8 = vpop.f32.mrb[127].mxu1  ;;  %v4891_v47 = vmax.f32 %v3992_v2, %v3994_v4 }
 0x1f4   :  { %v4892_v23 = vmax.f32 %v4008_v62, %v4010_v45 }
 0x1f5   :  { %v1685_v59 = vmax.f32 %v1636_v0, 0.0  ;;  %v1581_v61 = vmax.f32 %v1172_v22, %v1393_v32 }
 0x1f6   :  { %v989_v43 = vpop.f32.mrb[128].mxu0  ;;  %v1398_v44 = vpop.f32.mrb[128].mxu1 }
 0x1f7   :  { %1734 = vst [vmem:[%s4773_s3 + $0x68] sm:$0xff] %v1685_v59  ;;  %v1637_v9 = vadd.f32 %v4428_v11, %v1581_v61  ;;  %v1173_v10 = vmax.f32 %v4887_v53, %v989_v43  ;;  %v2619_v12 = vpop.f32.mrb[129].mxu0  ;;  %v2798_v28 = vpop.f32.mrb[129].mxu1  ;;  %v4893_v53 = vmax.f32 %v4024_v19, %v4026_v38 }
 0x1f9   :  { %v1686_v7 = vmax.f32 %v1637_v9, 0.0  ;;  %v1582_v13 = vmax.f32 %v1173_v10, %v1398_v44 }
 0x1fa   :  { %v994_v41 = vpop.f32.mrb[130].mxu0  ;;  %v1403_v40 = vpop.f32.mrb[130].mxu1 }
 0x1fb   :  { %1735 = vst [vmem:[%s4773_s3 + $0x70] sm:$0xff] %v1686_v7  ;;  %v1638_v6 = vadd.f32 %v4428_v11, %v1582_v13  ;;  %v1174_v50 = vmax.f32 %v4888_v29, %v994_v41  ;;  %v2622_v51 = vpop.f32.mrb[131].mxu0  ;;  %v2801_v21 = vpop.f32.mrb[131].mxu1 }
 0x1fd   :  { %v1687_v31 = vmax.f32 %v1638_v6, 0.0  ;;  %v1583_v33 = vmax.f32 %v1174_v50, %v1403_v40  ;;  %v4894_v40 = vmax.f32 %v4040_v52, %v4042_v42 }
 0x1fe   :  { %v999_v24 = vpop.f32.mrb[132].mxu0  ;;  %v1408_v30 = vpop.f32.mrb[132].mxu1 }
 0x1ff   :  { %1736 = vst [vmem:[%s4773_s3 + $0x78] sm:$0xff] %v1687_v31  ;;  %v1639_v46 = vadd.f32 %v4428_v11, %v1583_v33  ;;  %v1175_v15 = vmax.f32 %v4889_v18, %v999_v24  ;;  %v2625_v16 = vpop.f32.mrb[133].mxu0  ;;  %v2804_v14 = vpop.f32.mrb[133].mxu1  ;;  %v4895_v33 = vmax.f32 %v4056_v27, %v4058_v26 }
 0x200   :  { %v4896_v14 = vld [vmem:[#allocation2_spill] sm:$0xff] }
 0x201   :  { %v1688_v54 = vmax.f32 %v1639_v46, 0.0  ;;  %v1584_v55 = vmax.f32 %v1175_v15, %v1408_v30 }
 0x202   :  { %v1004_v63 = vpop.f32.mrb[134].mxu0  ;;  %v1413_v34 = vpop.f32.mrb[134].mxu1 }
 0x203   :  { %1737 = vst [vmem:[%s4773_s3 + $0x80] sm:$0xff] %v1688_v54  ;;  %v1640_v35 = vadd.f32 %v4428_v11, %v1584_v55  ;;  %v1176_v58 = vmax.f32 %v4890_v57, %v1004_v63  ;;  %v2628_v5 = vpop.f32.mrb[135].mxu0  ;;  %v2807_v36 = vpop.f32.mrb[135].mxu1  ;;  %v4897_v54 = vmax.f32 %v4072_v3, %v4896_v14 }
 0x204   :  { %v4898_v5 = vld [vmem:[#allocation3_spill] sm:$0xff]  ;;  %v4899_v36 = vld [vmem:[#allocation4_spill] sm:$0xff] }
 0x205   :  { %v1689_v17 = vmax.f32 %v1640_v35, 0.0  ;;  %v1585_v20 = vmax.f32 %v1176_v58, %v1413_v34 }
 0x206   :  { %v1009_v37 = vpop.f32.mrb[136].mxu0  ;;  %v1418_v39 = vpop.f32.mrb[136].mxu1 }
 0x207   :  { %1738 = vst [vmem:[%s4773_s3 + $0x88] sm:$0xff] %v1689_v17  ;;  %v1641_v60 = vadd.f32 %v4428_v11, %v1585_v20  ;;  %v1177_v48 = vmax.f32 %v4891_v47, %v1009_v37  ;;  %v2631_v25 = vpop.f32.mrb[137].mxu0  ;;  %v2810_v32 = vpop.f32.mrb[137].mxu1  ;;  %v4900_v17 = vmax.f32 %v4898_v5, %v4899_v36 }
 0x208   :  { %v4901_v32 = vld [vmem:[#allocation5_spill] sm:$0xff] }
 0x209   :  { %v1690_v49 = vmax.f32 %v1641_v60, 0.0  ;;  %v1586_v56 = vmax.f32 %v1177_v48, %v1418_v39 }
 0x20a   :  { %v1014_v0 = vpop.f32.mrb[138].mxu0  ;;  %v1423_v1 = vpop.f32.mrb[138].mxu1 }
 0x20b   :  { %1739 = vst [vmem:[%s4773_s3 + $0x90] sm:$0xff] %v1690_v49  ;;  %v1642_v22 = vadd.f32 %v4428_v11, %v1586_v56  ;;  %v1178_v8 = vmax.f32 %v4892_v23, %v1014_v0  ;;  %v2634_v59 = vpop.f32.mrb[139].mxu0  ;;  %v2813_v61 = vpop.f32.mrb[139].mxu1  ;;  %v4902_v49 = vld [vmem:[#allocation6_spill] sm:$0xff] }
 0x20c   :  { %v4903_v56 = vmax.f32 %v4901_v32, %v4902_v49 }
 0x20d   :  { %v1691_v4 = vmax.f32 %v1642_v22, 0.0  ;;  %v1587_v2 = vmax.f32 %v1178_v8, %v1423_v1 }
 0x20e   :  { %v1019_v43 = vpop.f32.mrb[140].mxu0  ;;  %v1428_v44 = vpop.f32.mrb[140].mxu1 }
 0x20f   :  { %1740 = vst [vmem:[%s4773_s3 + $0x98] sm:$0xff] %v1691_v4  ;;  %v1643_v9 = vadd.f32 %v4428_v11, %v1587_v2  ;;  %v1179_v10 = vmax.f32 %v4893_v53, %v1019_v43  ;;  %v2637_v12 = vpop.f32.mrb[141].mxu0  ;;  %v2816_v28 = vpop.f32.mrb[141].mxu1  ;;  %v4904_v2 = vld [vmem:[#allocation7_spill] sm:$0xff]  ;;  %v4905_v43 = vld [vmem:[#allocation8_spill] sm:$0xff] }
 0x211   :  { %v1692_v62 = vmax.f32 %v1643_v9, 0.0  ;;  %v1588_v45 = vmax.f32 %v1179_v10, %v1428_v44  ;;  %v4906_v44 = vmax.f32 %v4904_v2, %v4905_v43 }
 0x212   :  { %v1024_v7 = vpop.f32.mrb[142].mxu0  ;;  %v1433_v13 = vpop.f32.mrb[142].mxu1 }
 0x213   :  { %1741 = vst [vmem:[%s4773_s3 + $0xa0] sm:$0xff] %v1692_v62  ;;  %v1644_v41 = vadd.f32 %v4428_v11, %v1588_v45  ;;  %v1180_v6 = vmax.f32 %v4894_v40, %v1024_v7  ;;  %v2640_v29 = vpop.f32.mrb[143].mxu0  ;;  %v2819_v50 = vpop.f32.mrb[143].mxu1 }
 0x215   :  { %v1693_v19 = vmax.f32 %v1644_v41, 0.0  ;;  %v1589_v38 = vmax.f32 %v1180_v6, %v1433_v13  ;;  %v4907_v13 = vld [vmem:[#allocation9_spill] sm:$0xff]  ;;  %v4908_v41 = vld [vmem:[#allocation10_spill] sm:$0xff] }
 0x216   :  { %v1029_v51 = vpop.f32.mrb[144].mxu0  ;;  %v1438_v21 = vpop.f32.mrb[144].mxu1  ;;  %v4909_v40 = vmax.f32 %v4907_v13, %v4908_v41 }
 0x217   :  { %1742 = vst [vmem:[%s4773_s3 + $0xa8] sm:$0xff] %v1693_v19  ;;  %v1645_v31 = vadd.f32 %v4428_v11, %v1589_v38  ;;  %v1181_v24 = vmax.f32 %v4895_v33, %v1029_v51  ;;  %v2643_v30 = vpop.f32.mrb[145].mxu0  ;;  %v2822_v46 = vpop.f32.mrb[145].mxu1  ;;  %v4910_v33 = vld [vmem:[#allocation11_spill] sm:$0xff] }
 0x219   :  { %v1694_v52 = vmax.f32 %v1645_v31, 0.0  ;;  %v1590_v42 = vmax.f32 %v1181_v24, %v1438_v21  ;;  %v4911_v24 = vld [vmem:[#allocation12_spill] sm:$0xff] }
 0x21a   :  { %v1034_v18 = vpop.f32.mrb[146].mxu0  ;;  %v1443_v15 = vpop.f32.mrb[146].mxu1  ;;  %v4912_v30 = vmax.f32 %v4910_v33, %v4911_v24 }
 0x21b   :  { %1743 = vst [vmem:[%s4773_s3 + $0xb0] sm:$0xff] %v1694_v52  ;;  %v1646_v16 = vadd.f32 %v4428_v11, %v1590_v42  ;;  %v1182_v55 = vmax.f32 %v4897_v54, %v1034_v18  ;;  %v2646_v63 = vpop.f32.mrb[147].mxu0  ;;  %v2825_v34 = vpop.f32.mrb[147].mxu1 }
 0x21c   :  { %v4914_v63 = vld [vmem:[#allocation14_spill] sm:$0xff] }
 0x21d   :  { %v1695_v27 = vmax.f32 %v1646_v16, 0.0  ;;  %v1591_v26 = vmax.f32 %v1182_v55, %v1443_v15  ;;  %v4913_v55 = vld [vmem:[#allocation13_spill] sm:$0xff] }
 0x21e   :  { %v1039_v35 = vpop.f32.mrb[148].mxu0  ;;  %v1448_v57 = vpop.f32.mrb[148].mxu1  ;;  %v4915_v34 = vmax.f32 %v4913_v55, %v4914_v63 }
 0x21f   :  { %1744 = vst [vmem:[%s4773_s3 + $0xb8] sm:$0xff] %v1695_v27  ;;  %v1647_v58 = vadd.f32 %v4428_v11, %v1591_v26  ;;  %v1183_v20 = vmax.f32 %v4900_v17, %v1039_v35  ;;  %v2649_v37 = vpop.f32.mrb[149].mxu0  ;;  %v2828_v39 = vpop.f32.mrb[149].mxu1 }
 0x220   :  { %v4917_v37 = vld [vmem:[#allocation16_spill] sm:$0xff] }
 0x221   :  { %v1696_v3 = vmax.f32 %v1647_v58, 0.0  ;;  %v1592_v60 = vmax.f32 %v1183_v20, %v1448_v57  ;;  %v4916_v20 = vld [vmem:[#allocation15_spill] sm:$0xff] }
 0x222   :  { %v1044_v47 = vpop.f32.mrb[150].mxu0  ;;  %v1453_v48 = vpop.f32.mrb[150].mxu1  ;;  %v4918_v39 = vmax.f32 %v4916_v20, %v4917_v37 }
 0x223   :  { %1745 = vst [vmem:[%s4773_s3 + $0xc0] sm:$0xff] %v1696_v3  ;;  %v1648_v25 = vadd.f32 %v4428_v11, %v1592_v60  ;;  %v1184_v0 = vmax.f32 %v4903_v56, %v1044_v47  ;;  %v2652_v1 = vpop.f32.mrb[151].mxu0  ;;  %v2831_v22 = vpop.f32.mrb[151].mxu1 }
 0x224   :  { %v4920_v1 = vld [vmem:[#allocation18_spill] sm:$0xff] }
 0x225   :  { %v1697_v23 = vmax.f32 %v1648_v25, 0.0  ;;  %v1593_v8 = vmax.f32 %v1184_v0, %v1453_v48  ;;  %v4919_v0 = vld [vmem:[#allocation17_spill] sm:$0xff] }
 0x226   :  { %v1049_v59 = vpop.f32.mrb[152].mxu0  ;;  %v1458_v61 = vpop.f32.mrb[152].mxu1  ;;  %v4921_v22 = vmax.f32 %v4919_v0, %v4920_v1 }
 0x227   :  { %1746 = vst [vmem:[%s4773_s3 + $0xc8] sm:$0xff] %v1697_v23  ;;  %v1649_v4 = vadd.f32 %v4428_v11, %v1593_v8  ;;  %v1185_v9 = vmax.f32 %v4906_v44, %v1049_v59  ;;  %v2655_v53 = vpop.f32.mrb[153].mxu0  ;;  %v2834_v10 = vpop.f32.mrb[153].mxu1 }
 0x228   :  { %v4923_v53 = vld [vmem:[#allocation20_spill] sm:$0xff] }
 0x229   :  { %v1698_v12 = vmax.f32 %v1649_v4, 0.0  ;;  %v1594_v28 = vmax.f32 %v1185_v9, %v1458_v61  ;;  %v4922_v9 = vld [vmem:[#allocation19_spill] sm:$0xff] }
 0x22a   :  { %v1054_v62 = vpop.f32.mrb[154].mxu0  ;;  %v1463_v45 = vpop.f32.mrb[154].mxu1  ;;  %v4924_v10 = vmax.f32 %v4922_v9, %v4923_v53 }
 0x22b   :  { %1747 = vst [vmem:[%s4773_s3 + $0xd0] sm:$0xff] %v1698_v12  ;;  %v1650_v7 = vadd.f32 %v4428_v11, %v1594_v28  ;;  %v1186_v6 = vmax.f32 %v4909_v40, %v1054_v62  ;;  %v2658_v29 = vpop.f32.mrb[155].mxu0  ;;  %v2837_v50 = vpop.f32.mrb[155].mxu1 }
 0x22c   :  { %v4926_v29 = vld [vmem:[#allocation22_spill] sm:$0xff] }
 0x22d   :  { %v1699_v19 = vmax.f32 %v1650_v7, 0.0  ;;  %v1595_v38 = vmax.f32 %v1186_v6, %v1463_v45  ;;  %v4925_v6 = vld [vmem:[#allocation21_spill] sm:$0xff] }
 0x22e   :  { %v1059_v51 = vpop.f32.mrb[156].mxu0  ;;  %v1468_v21 = vpop.f32.mrb[156].mxu1  ;;  %v4927_v50 = vmax.f32 %v4925_v6, %v4926_v29 }
 0x22f   :  { %1748 = vst [vmem:[%s4773_s3 + $0xd8] sm:$0xff] %v1699_v19  ;;  %v1651_v31 = vadd.f32 %v4428_v11, %v1595_v38  ;;  %v1187_v46 = vmax.f32 %v4912_v30, %v1059_v51  ;;  %v2661_v52 = vpop.f32.mrb[157].mxu0  ;;  %v2840_v42 = vpop.f32.mrb[157].mxu1 }
 0x230   :  { %v4929_v52 = vld [vmem:[#allocation24_spill] sm:$0xff] }
 0x231   :  { %v1700_v18 = vmax.f32 %v1651_v31, 0.0  ;;  %v1596_v15 = vmax.f32 %v1187_v46, %v1468_v21  ;;  %v4928_v46 = vld [vmem:[#allocation23_spill] sm:$0xff] }
 0x232   :  { %v1064_v16 = vpop.f32.mrb[158].mxu0  ;;  %v1473_v14 = vpop.f32.mrb[158].mxu1  ;;  %v4930_v42 = vmax.f32 %v4928_v46, %v4929_v52 }
 0x233   :  { %1749 = vst [vmem:[%s4773_s3 + $0xe0] sm:$0xff] %v1700_v18  ;;  %v1652_v54 = vadd.f32 %v4428_v11, %v1596_v15  ;;  %v1188_v27 = vmax.f32 %v4915_v34, %v1064_v16  ;;  %v2664_v26 = vpop.f32.mrb[159].mxu0  ;;  %v2843_v35 = vpop.f32.mrb[159].mxu1 }
 0x234   :  { %v4932_v26 = vld [vmem:[#allocation26_spill] sm:$0xff] }
 0x235   :  { %v1701_v57 = vmax.f32 %v1652_v54, 0.0  ;;  %v1597_v58 = vmax.f32 %v1188_v27, %v1473_v14  ;;  %v4931_v27 = vld [vmem:[#allocation25_spill] sm:$0xff] }
 0x236   :  { %v1069_v5 = vpop.f32.mrb[160].mxu0  ;;  %v1478_v36 = vpop.f32.mrb[160].mxu1  ;;  %v4933_v35 = vmax.f32 %v4931_v27, %v4932_v26 }
 0x237   :  { %1750 = vst [vmem:[%s4773_s3 + $0xe8] sm:$0xff] %v1701_v57  ;;  %v1653_v17 = vadd.f32 %v4428_v11, %v1597_v58  ;;  %v1189_v3 = vmax.f32 %v4918_v39, %v1069_v5  ;;  %v2667_v60 = vpop.f32.mrb[161].mxu0  ;;  %v2846_v47 = vpop.f32.mrb[161].mxu1 }
 0x238   :  { %v4935_v60 = vld [vmem:[#allocation28_spill] sm:$0xff] }
 0x239   :  { %v1702_v48 = vmax.f32 %v1653_v17, 0.0  ;;  %v1598_v25 = vmax.f32 %v1189_v3, %v1478_v36  ;;  %v4934_v3 = vld [vmem:[#allocation27_spill] sm:$0xff] }
 0x23a   :  { %v1074_v32 = vpop.f32.mrb[162].mxu0  ;;  %v1483_v49 = vpop.f32.mrb[162].mxu1  ;;  %v4936_v47 = vmax.f32 %v4934_v3, %v4935_v60 }
 0x23b   :  { %1751 = vst [vmem:[%s4773_s3 + $0xf0] sm:$0xff] %v1702_v48  ;;  %v1654_v56 = vadd.f32 %v4428_v11, %v1598_v25  ;;  %v1190_v23 = vmax.f32 %v4921_v22, %v1074_v32  ;;  %v2670_v8 = vpop.f32.mrb[163].mxu0  ;;  %v2849_v59 = vpop.f32.mrb[163].mxu1 }
 0x23c   :  { %v4938_v8 = vld [vmem:[#allocation30_spill] sm:$0xff] }
 0x23d   :  { %v1703_v61 = vmax.f32 %v1654_v56, 0.0  ;;  %v1599_v4 = vmax.f32 %v1190_v23, %v1483_v49  ;;  %v4937_v23 = vld [vmem:[#allocation29_spill] sm:$0xff] }
 0x23e   :  { %v1079_v2 = vpop.f32.mrb[164].mxu0  ;;  %v1488_v43 = vpop.f32.mrb[164].mxu1  ;;  %v4939_v59 = vmax.f32 %v4937_v23, %v4938_v8 }
 0x23f   :  { %1752 = vst [vmem:[%s4773_s3 + $0xf8] sm:$0xff] %v1703_v61  ;;  %v1655_v44 = vadd.f32 %v4428_v11, %v1599_v4  ;;  %v1191_v12 = vmax.f32 %v4924_v10, %v1079_v2  ;;  %v2673_v28 = vpop.f32.mrb[165].mxu0  ;;  %v2852_v62 = vpop.f32.mrb[165].mxu1 }
 0x240   :  { %v4941_v28 = vld [vmem:[#allocation32_spill] sm:$0xff] }
 0x241   :  { %v1704_v45 = vmax.f32 %v1655_v44, 0.0  ;;  %v1600_v7 = vmax.f32 %v1191_v12, %v1488_v43  ;;  %v4940_v12 = vld [vmem:[#allocation31_spill] sm:$0xff] }
 0x242   :  { %v1084_v13 = vpop.f32.mrb[166].mxu0  ;;  %v1493_v41 = vpop.f32.mrb[166].mxu1  ;;  %v4942_v62 = vmax.f32 %v4940_v12, %v4941_v28 }
 0x243   :  { %1753 = vst [vmem:[%s4773_s3 + $0x100] sm:$0xff] %v1704_v45  ;;  %v1656_v40 = vadd.f32 %v4428_v11, %v1600_v7  ;;  %v1192_v19 = vmax.f32 %v4927_v50, %v1084_v13  ;;  %v2676_v38 = vpop.f32.mrb[167].mxu0  ;;  %v2855_v51 = vpop.f32.mrb[167].mxu1 }
 0x244   :  { %v4944_v38 = vld [vmem:[#allocation34_spill] sm:$0xff] }
 0x245   :  { %v1705_v21 = vmax.f32 %v1656_v40, 0.0  ;;  %v1601_v31 = vmax.f32 %v1192_v19, %v1493_v41  ;;  %v4943_v19 = vld [vmem:[#allocation33_spill] sm:$0xff] }
 0x246   :  { %v1089_v33 = vpop.f32.mrb[168].mxu0  ;;  %v1498_v24 = vpop.f32.mrb[168].mxu1  ;;  %v4945_v51 = vmax.f32 %v4943_v19, %v4944_v38 }
 0x247   :  { %1754 = vst [vmem:[%s4773_s3 + $0x108] sm:$0xff] %v1705_v21  ;;  %v1657_v30 = vadd.f32 %v4428_v11, %v1601_v31  ;;  %v1193_v18 = vmax.f32 %v4930_v42, %v1089_v33  ;;  %v2679_v15 = vpop.f32.mrb[169].mxu0  ;;  %v2858_v16 = vpop.f32.mrb[169].mxu1 }
 0x248   :  { %v4947_v15 = vld [vmem:[#allocation36_spill] sm:$0xff] }
 0x249   :  { %v1706_v14 = vmax.f32 %v1657_v30, 0.0  ;;  %v1602_v54 = vmax.f32 %v1193_v18, %v1498_v24  ;;  %v4946_v18 = vld [vmem:[#allocation35_spill] sm:$0xff] }
 0x24a   :  { %v1094_v55 = vpop.f32.mrb[170].mxu0  ;;  %v1503_v63 = vpop.f32.mrb[170].mxu1  ;;  %v4948_v16 = vmax.f32 %v4946_v18, %v4947_v15 }
 0x24b   :  { %1755 = vst [vmem:[%s4773_s3 + $0x110] sm:$0xff] %v1706_v14  ;;  %v1658_v34 = vadd.f32 %v4428_v11, %v1602_v54  ;;  %v1194_v57 = vmax.f32 %v4933_v35, %v1094_v55  ;;  %v2682_v58 = vpop.f32.mrb[171].mxu0  ;;  %v2861_v5 = vpop.f32.mrb[171].mxu1 }
 0x24c   :  { %v4950_v58 = vld [vmem:[#allocation38_spill] sm:$0xff] }
 0x24d   :  { %v1707_v36 = vmax.f32 %v1658_v34, 0.0  ;;  %v1603_v17 = vmax.f32 %v1194_v57, %v1503_v63  ;;  %v4949_v57 = vld [vmem:[#allocation37_spill] sm:$0xff] }
 0x24e   :  { %v1099_v20 = vpop.f32.mrb[172].mxu0  ;;  %v1508_v37 = vpop.f32.mrb[172].mxu1  ;;  %v4951_v5 = vmax.f32 %v4949_v57, %v4950_v58 }
 0x24f   :  { %1756 = vst [vmem:[%s4773_s3 + $0x118] sm:$0xff] %v1707_v36  ;;  %v1659_v39 = vadd.f32 %v4428_v11, %v1603_v17  ;;  %v1195_v48 = vmax.f32 %v4936_v47, %v1099_v20  ;;  %v2685_v25 = vpop.f32.mrb[173].mxu0  ;;  %v2864_v32 = vpop.f32.mrb[173].mxu1 }
 0x250   :  { %v4953_v25 = vld [vmem:[#allocation40_spill] sm:$0xff] }
 0x251   :  { %v1708_v49 = vmax.f32 %v1659_v39, 0.0  ;;  %v1604_v56 = vmax.f32 %v1195_v48, %v1508_v37  ;;  %v4952_v48 = vld [vmem:[#allocation39_spill] sm:$0xff] }
 0x252   :  { %v1104_v0 = vpop.f32.mrb[174].mxu0  ;;  %v1513_v1 = vpop.f32.mrb[174].mxu1  ;;  %v4954_v32 = vmax.f32 %v4952_v48, %v4953_v25 }
 0x253   :  { %1757 = vst [vmem:[%s4773_s3 + $0x120] sm:$0xff] %v1708_v49  ;;  %v1660_v22 = vadd.f32 %v4428_v11, %v1604_v56  ;;  %v1196_v61 = vmax.f32 %v4939_v59, %v1104_v0  ;;  %v2688_v4 = vpop.f32.mrb[175].mxu0  ;;  %v2867_v2 = vpop.f32.mrb[175].mxu1 }
 0x254   :  { %v4956_v4 = vld [vmem:[#allocation42_spill] sm:$0xff] }
 0x255   :  { %v1709_v43 = vmax.f32 %v1660_v22, 0.0  ;;  %v1605_v44 = vmax.f32 %v1196_v61, %v1513_v1  ;;  %v4955_v61 = vld [vmem:[#allocation41_spill] sm:$0xff] }
 0x256   :  { %v1109_v9 = vpop.f32.mrb[176].mxu0  ;;  %v1518_v53 = vpop.f32.mrb[176].mxu1  ;;  %v4957_v2 = vmax.f32 %v4955_v61, %v4956_v4 }
 0x257   :  { %1758 = vst [vmem:[%s4773_s3 + $0x128] sm:$0xff] %v1709_v43  ;;  %v1661_v10 = vadd.f32 %v4428_v11, %v1605_v44  ;;  %v1197_v45 = vmax.f32 %v4942_v62, %v1109_v9  ;;  %v2691_v7 = vpop.f32.mrb[177].mxu0  ;;  %v2870_v13 = vpop.f32.mrb[177].mxu1 }
 0x258   :  { %v4959_v7 = vld [vmem:[#allocation44_spill] sm:$0xff] }
 0x259   :  { %v1710_v41 = vmax.f32 %v1661_v10, 0.0  ;;  %v1606_v40 = vmax.f32 %v1197_v45, %v1518_v53  ;;  %v4958_v45 = vld [vmem:[#allocation43_spill] sm:$0xff] }
 0x25a   :  { %v1114_v6 = vpop.f32.mrb[178].mxu0  ;;  %v1523_v29 = vpop.f32.mrb[178].mxu1  ;;  %v4960_v13 = vmax.f32 %v4958_v45, %v4959_v7 }
 0x25b   :  { %1759 = vst [vmem:[%s4773_s3 + $0x130] sm:$0xff] %v1710_v41  ;;  %v1662_v50 = vadd.f32 %v4428_v11, %v1606_v40  ;;  %v1198_v21 = vmax.f32 %v4945_v51, %v1114_v6  ;;  %v2694_v31 = vpop.f32.mrb[179].mxu0  ;;  %v2873_v33 = vpop.f32.mrb[179].mxu1 }
 0x25c   :  { %v4962_v31 = vld [vmem:[#allocation46_spill] sm:$0xff] }
 0x25d   :  { %v1711_v24 = vmax.f32 %v1662_v50, 0.0  ;;  %v1607_v30 = vmax.f32 %v1198_v21, %v1523_v29  ;;  %v4961_v21 = vld [vmem:[#allocation45_spill] sm:$0xff] }
 0x25e   :  { %v1119_v46 = vpop.f32.mrb[180].mxu0  ;;  %v1528_v52 = vpop.f32.mrb[180].mxu1  ;;  %v4963_v33 = vmax.f32 %v4961_v21, %v4962_v31 }
 0x25f   :  { %1760 = vst [vmem:[%s4773_s3 + $0x138] sm:$0xff] %v1711_v24  ;;  %v1663_v42 = vadd.f32 %v4428_v11, %v1607_v30  ;;  %v1199_v14 = vmax.f32 %v4948_v16, %v1119_v46  ;;  %v2697_v54 = vpop.f32.mrb[181].mxu0  ;;  %v2876_v55 = vpop.f32.mrb[181].mxu1 }
 0x260   :  { %v4965_v54 = vld [vmem:[#allocation48_spill] sm:$0xff] }
 0x261   :  { %v1712_v63 = vmax.f32 %v1663_v42, 0.0  ;;  %v1608_v34 = vmax.f32 %v1199_v14, %v1528_v52  ;;  %v4964_v14 = vld [vmem:[#allocation47_spill] sm:$0xff] }
 0x262   :  { %v1124_v27 = vpop.f32.mrb[182].mxu0  ;;  %v1533_v26 = vpop.f32.mrb[182].mxu1  ;;  %v4966_v55 = vmax.f32 %v4964_v14, %v4965_v54 }
 0x263   :  { %1761 = vst [vmem:[%s4773_s3 + $0x140] sm:$0xff] %v1712_v63  ;;  %v1664_v35 = vadd.f32 %v4428_v11, %v1608_v34  ;;  %v1200_v36 = vmax.f32 %v4951_v5, %v1124_v27  ;;  %v2700_v17 = vpop.f32.mrb[183].mxu0  ;;  %v2879_v20 = vpop.f32.mrb[183].mxu1 }
 0x264   :  { %v4968_v17 = vld [vmem:[#allocation50_spill] sm:$0xff] }
 0x265   :  { %v1713_v37 = vmax.f32 %v1664_v35, 0.0  ;;  %v1609_v39 = vmax.f32 %v1200_v36, %v1533_v26  ;;  %v4967_v36 = vld [vmem:[#allocation49_spill] sm:$0xff] }
 0x266   :  { %v1129_v3 = vpop.f32.mrb[184].mxu0  ;;  %v1538_v60 = vpop.f32.mrb[184].mxu1  ;;  %v4969_v20 = vmax.f32 %v4967_v36, %v4968_v17 }
 0x267   :  { %1762 = vst [vmem:[%s4773_s3 + $0x148] sm:$0xff] %v1713_v37  ;;  %v1665_v47 = vadd.f32 %v4428_v11, %v1609_v39  ;;  %v1201_v49 = vmax.f32 %v4954_v32, %v1129_v3  ;;  %v2703_v56 = vpop.f32.mrb[185].mxu0  ;;  %v2882_v0 = vpop.f32.mrb[185].mxu1 }
 0x269   :  { %v1714_v1 = vmax.f32 %v1665_v47, 0.0  ;;  %v1610_v22 = vmax.f32 %v1201_v49, %v1538_v60 }
 0x26a   :  { %v1134_v23 = vpop.f32.mrb[186].mxu0  ;;  %v1543_v8 = vpop.f32.mrb[186].mxu1 }
 0x26b   :  { %1763 = vst [vmem:[%s4773_s3 + $0x150] sm:$0xff] %v1714_v1  ;;  %v1666_v59 = vadd.f32 %v4428_v11, %v1610_v22  ;;  %v1202_v43 = vmax.f32 %v4957_v2, %v1134_v23  ;;  %v2706_v44 = vpop.f32.mrb[187].mxu0  ;;  %v2885_v9 = vpop.f32.mrb[187].mxu1 }
 0x26d   :  { %v1715_v53 = vmax.f32 %v1666_v59, 0.0  ;;  %v1611_v10 = vmax.f32 %v1202_v43, %v1543_v8 }
 0x26e   :  { %v1139_v12 = vpop.f32.mrb[188].mxu0  ;;  %v1548_v28 = vpop.f32.mrb[188].mxu1 }
 0x26f   :  { %1764 = vst [vmem:[%s4773_s3 + $0x158] sm:$0xff] %v1715_v53  ;;  %v1667_v62 = vadd.f32 %v4428_v11, %v1611_v10  ;;  %v1203_v41 = vmax.f32 %v4960_v13, %v1139_v12  ;;  %v2709_v40 = vpop.f32.mrb[189].mxu0  ;;  %v2888_v6 = vpop.f32.mrb[189].mxu1 }
 0x271   :  { %v1716_v29 = vmax.f32 %v1667_v62, 0.0  ;;  %v1612_v50 = vmax.f32 %v1203_v41, %v1548_v28 }
 0x272   :  { %v1144_v19 = vpop.f32.mrb[190].mxu0  ;;  %v1553_v38 = vpop.f32.mrb[190].mxu1 }
 0x273   :  { %1765 = vst [vmem:[%s4773_s3 + $0x160] sm:$0xff] %v1716_v29  ;;  %v1668_v51 = vadd.f32 %v4428_v11, %v1612_v50  ;;  %v1204_v24 = vmax.f32 %v4963_v33, %v1144_v19  ;;  %v2712_v30 = vpop.f32.mrb[191].mxu0  ;;  %v2891_v46 = vpop.f32.mrb[191].mxu1 }
 0x275   :  { %v1717_v52 = vmax.f32 %v1668_v51, 0.0  ;;  %v1613_v42 = vmax.f32 %v1204_v24, %v1553_v38 }
 0x276   :  { %v1149_v18 = vpop.f32.mrb[192].mxu0  ;;  %v1558_v15 = vpop.f32.mrb[192].mxu1 }
 0x277   :  { %1766 = vst [vmem:[%s4773_s3 + $0x168] sm:$0xff] %v1717_v52  ;;  %v1669_v16 = vadd.f32 %v4428_v11, %v1613_v42  ;;  %v1205_v63 = vmax.f32 %v4966_v55, %v1149_v18  ;;  %v2715_v34 = vpop.f32.mrb[193].mxu0  ;;  %v2894_v27 = vpop.f32.mrb[193].mxu1 }
 0x279   :  { %v1718_v26 = vmax.f32 %v1669_v16, 0.0  ;;  %v1614_v35 = vmax.f32 %v1205_v63, %v1558_v15 }
 0x27a   :  { %v1154_v57 = vpop.f32.mrb[194].mxu0  ;;  %v1563_v58 = vpop.f32.mrb[194].mxu1 }
 0x27b   :  { %1767 = vst [vmem:[%s4773_s3 + $0x170] sm:$0xff] %v1718_v26  ;;  %v1670_v5 = vadd.f32 %v4428_v11, %v1614_v35  ;;  %v1206_v37 = vmax.f32 %v4969_v20, %v1154_v57  ;;  %v2718_v39 = vpop.f32.mrb[195].mxu0  ;;  %v2897_v3 = vpop.f32.mrb[195].mxu1 }
 0x27d   :  { %v1719_v60 = vmax.f32 %v1670_v5, 0.0  ;;  %v1615_v47 = vmax.f32 %v1206_v37, %v1563_v58 }
 0x27f   :  { %1768 = vst [vmem:[%s4773_s3 + $0x178] sm:$0xff] %v1719_v60  ;;  %v1671_v48 = vadd.f32 %v4428_v11, %v1615_v47 }
 0x281   :  { %v1720_v25 = vmax.f32 %v1671_v48, 0.0 }
 0x283   :  { %1769 = vst [vmem:[%s4773_s3 + $0x180] sm:$0xff] %v1720_v25 }

// kernel: net_forward.4
= control target key start
LH: loop header
LB: loop body
LE: loop exit
PB: predicated region body
PF: predicated region fallthrough
CT: control target
= control target key end

     0   :  { %s1387_s1 = inlined_call_operand.vmem [shape: f32[256,128], index: 1, kind: input, shape index: {}]   ;;  %s1388_s0 = inlined_call_operand.vmem [shape: f32[4,50,256], index: 0, kind: input, shape index: {}]   ;;  %s1389_s2 = inlined_call_operand.vmem [shape: f32[1,128], index: 2, kind: input, shape index: {}]   ;;  %s1390_s3 = inlined_call_operand.vmem [shape: f32[50,128], index: 3, kind: output, shape index: {}]  }
   0x1   :  { %v30_v0 = vld [vmem:[%s1387_s1 + $0x80] sm:$0xff]  ;;  %v31_v1 = vld [vmem:[%s1387_s1 + $0x88] sm:$0xff]  ;;  %v32_v5 = vld [vmem:[%s1387_s1 + $0x90] sm:$0xff] }
   0x2   :  { %v14_v2 = vld [vmem:[%s1387_s1] sm:$0xff]  ;;  %v970_v3 = vpack.c.bf16 %v31_v1, %v30_v0  ;;  %v15_v4 = vld [vmem:[%s1387_s1 + $0x8] sm:$0xff]  ;;  %v33_v6 = vld [vmem:[%s1387_s1 + $0x98] sm:$0xff] }
   0x3   :  { %v981_v7 = vpack.c.bf16 %v15_v4, %v14_v2  ;;  %v983_v8 = vpack.c.bf16 %v33_v6, %v32_v5  ;;  %v16_v9 = vld [vmem:[%s1387_s1 + $0x10] sm:$0xff]  ;;  %v17_v10 = vld [vmem:[%s1387_s1 + $0x18] sm:$0xff]  ;;  %v34_v11 = vld [vmem:[%s1387_s1 + $0xa0] sm:$0xff] }
   0x4   :  { %814 = vmatprep.subr.bf16.mxu0 %v970_v3  ;;  %846 = vmatprep.subr.bf16.mxu1 %v970_v3  ;;  %v35_v12 = vld [vmem:[%s1387_s1 + $0xa8] sm:$0xff]  ;;  %v1001_v13 = vpack.c.bf16 %v17_v10, %v16_v9  ;;  %v18_v15 = vld [vmem:[%s1387_s1 + $0x20] sm:$0xff]  ;;  %v36_v17 = vld [vmem:[%s1387_s1 + $0xb0] sm:$0xff] }
   0x5   :  { %816 = vmatpush3.bf16.msra.mxu0 %v981_v7  ;;  %848 = vmatpush3.bf16.msra.mxu1 %v981_v7  ;;  %v1005_v14 = vpack.c.bf16 %v35_v12, %v34_v11  ;;  %v19_v16 = vld [vmem:[%s1387_s1 + $0x28] sm:$0xff]  ;;  %v37_v18 = vld [vmem:[%s1387_s1 + $0xb8] sm:$0xff]  ;;  %v20_v21 = vld [vmem:[%s1387_s1 + $0x30] sm:$0xff] }
   0x6   :  { %818 = vmatprep.subr.bf16.mxu0 %v983_v8  ;;  %850 = vmatprep.subr.bf16.mxu1 %v983_v8  ;;  %v1021_v19 = vpack.c.bf16 %v19_v16, %v18_v15  ;;  %v1025_v20 = vpack.c.bf16 %v37_v18, %v36_v17  ;;  %v21_v22 = vld [vmem:[%s1387_s1 + $0x38] sm:$0xff]  ;;  %v38_v23 = vld [vmem:[%s1387_s1 + $0xc0] sm:$0xff]  ;;  %v39_v24 = vld [vmem:[%s1387_s1 + $0xc8] sm:$0xff] }
   0x7   :  { %v47_v25 = vld [vmem:[%s1388_s0 + $0x8] sm:$0xff]  ;;  %v559_v26 = vld [vmem:[%s1388_s0 + $0x78] sm:$0xff]  ;;  %v1047_v27 = vpack.c.bf16 %v21_v22, %v20_v21  ;;  %v1051_v28 = vpack.c.bf16 %v39_v24, %v38_v23  ;;  %v22_v29 = vld [vmem:[%s1387_s1 + $0x40] sm:$0xff] }
   0x8   :  { %124 = vmatprep.mubr.f32.mxu0 %v47_v25  ;;  %v23_v30 = vld [vmem:[%s1387_s1 + $0x48] sm:$0xff]  ;;  %v40_v31 = vld [vmem:[%s1387_s1 + $0xd0] sm:$0xff]  ;;  %v41_v32 = vld [vmem:[%s1387_s1 + $0xd8] sm:$0xff]  ;;  %239 = vmatprep.mubr.f32.mxu1 %v559_v26 }
   0x9   :  { %820 = vmatpush3.bf16.msra.mxu0 %v1001_v13  ;;  %852 = vmatpush3.bf16.msra.mxu1 %v1001_v13  ;;  %v1067_v33 = vpack.c.bf16 %v23_v30, %v22_v29  ;;  %v1071_v34 = vpack.c.bf16 %v41_v32, %v40_v31  ;;  %v24_v35 = vld [vmem:[%s1387_s1 + $0x50] sm:$0xff]  ;;  %v25_v36 = vld [vmem:[%s1387_s1 + $0x58] sm:$0xff]  ;;  %v42_v37 = vld [vmem:[%s1387_s1 + $0xe0] sm:$0xff] }
   0xa   :  { %822 = vmatprep.subr.bf16.mxu0 %v1005_v14  ;;  %854 = vmatprep.subr.bf16.mxu1 %v1005_v14  ;;  %v43_v38 = vld [vmem:[%s1387_s1 + $0xe8] sm:$0xff]  ;;  %v1087_v39 = vpack.c.bf16 %v25_v36, %v24_v35  ;;  %v26_v41 = vld [vmem:[%s1387_s1 + $0x60] sm:$0xff]  ;;  %v44_v43 = vld [vmem:[%s1387_s1 + $0xf0] sm:$0xff] }
   0xb   :  { %v1091_v40 = vpack.c.bf16 %v43_v38, %v42_v37  ;;  %v27_v42 = vld [vmem:[%s1387_s1 + $0x68] sm:$0xff]  ;;  %v45_v44 = vld [vmem:[%s1387_s1 + $0xf8] sm:$0xff]  ;;  %v28_v47 = vld [vmem:[%s1387_s1 + $0x70] sm:$0xff] }
   0xc   :  { %v1107_v45 = vpack.c.bf16 %v27_v42, %v26_v41  ;;  %v1111_v46 = vpack.c.bf16 %v45_v44, %v44_v43  ;;  %v29_v48 = vld [vmem:[%s1387_s1 + $0x78] sm:$0xff]  ;;  %v46_v50 = vld [vmem:[%s1388_s0] sm:$0xff]  ;;  %v558_v51 = vld [vmem:[%s1388_s0 + $0x70] sm:$0xff] }
   0xd   :  { %824 = vmatpush3.bf16.msra.mxu0 %v1021_v19  ;;  %856 = vmatpush3.bf16.msra.mxu1 %v1021_v19  ;;  %v1121_v49 = vpack.c.bf16 %v29_v48, %v28_v47  ;;  %v49_v52 = vld [vmem:[%s1388_s0 + $0x18] sm:$0xff]  ;;  %v561_v53 = vld [vmem:[%s1388_s0 + $0x88] sm:$0xff]  ;;  %v48_v54 = vld [vmem:[%s1388_s0 + $0x10] sm:$0xff] }
   0xe   :  { %826 = vmatprep.subr.bf16.mxu0 %v1025_v20  ;;  %858 = vmatprep.subr.bf16.mxu1 %v1025_v20  ;;  %v560_v55 = vld [vmem:[%s1388_s0 + $0x80] sm:$0xff]  ;;  %v51_v56 = vld [vmem:[%s1388_s0 + $0x28] sm:$0xff]  ;;  %v563_v57 = vld [vmem:[%s1388_s0 + $0x98] sm:$0xff] }
   0xf   :  { %v50_v58 = vld [vmem:[%s1388_s0 + $0x20] sm:$0xff]  ;;  %v562_v59 = vld [vmem:[%s1388_s0 + $0x90] sm:$0xff]  ;;  %v53_v60 = vld [vmem:[%s1388_s0 + $0x38] sm:$0xff] }
  0x10   :  { %v565_v61 = vld [vmem:[%s1388_s0 + $0xa8] sm:$0xff]  ;;  %v52_v62 = vld [vmem:[%s1388_s0 + $0x30] sm:$0xff]  ;;  %v564_v63 = vld [vmem:[%s1388_s0 + $0xa0] sm:$0xff] }
  0x11   :  { %828 = vmatpush3.bf16.msra.mxu0 %v1047_v27  ;;  %860 = vmatpush3.bf16.msra.mxu1 %v1047_v27  ;;  %v55_v0 = vld [vmem:[%s1388_s0 + $0x48] sm:$0xff]  ;;  %v567_v1 = vld [vmem:[%s1388_s0 + $0xb8] sm:$0xff]  ;;  %v54_v2 = vld [vmem:[%s1388_s0 + $0x40] sm:$0xff] }
  0x12   :  { %830 = vmatprep.subr.bf16.mxu0 %v1051_v28  ;;  %862 = vmatprep.subr.bf16.mxu1 %v1051_v28  ;;  %v57_v4 = vld [vmem:[%s1388_s0 + $0x58] sm:$0xff]  ;;  %v569_v5 = vld [vmem:[%s1388_s0 + $0xc8] sm:$0xff]  ;;  %v56_v6 = vld [vmem:[%s1388_s0 + $0x50] sm:$0xff] }
  0x13   :  { %v571_v9 = vld [vmem:[%s1388_s0 + $0xd8] sm:$0x3]  ;;  %v58_v10 = vld [vmem:[%s1388_s0 + $0x60] sm:$0x3]  ;;  %v570_v11 = vld [vmem:[%s1388_s0 + $0xd0] sm:$0x3] }
  0x14   :  { %v573_v12 = vld [vmem:[%s1388_s0 + $0xe8] sm:$0xff]  ;;  %v586_v15 = vld [vmem:[%s1388_s0 + $0x150] sm:$0xff]  ;;  %v575_v16 = vld [vmem:[%s1388_s0 + $0xf8] sm:$0xff] }
  0x15   :  { %832 = vmatpush3.bf16.msra.mxu0 %v1067_v33  ;;  %864 = vmatpush3.bf16.msra.mxu1 %v1067_v33  ;;  %v589_v17 = vld [vmem:[%s1388_s0 + $0x168] sm:$0xff]  ;;  %v574_v18 = vld [vmem:[%s1388_s0 + $0xf0] sm:$0xff]  ;;  %v591_v21 = vld [vmem:[%s1388_s0 + $0x178] sm:$0xff] }
  0x16   :  { %834 = vmatprep.subr.bf16.mxu0 %v1071_v34  ;;  %866 = vmatprep.subr.bf16.mxu1 %v1071_v34  ;;  %v576_v22 = vld [vmem:[%s1388_s0 + $0x100] sm:$0xff]  ;;  %v590_v23 = vld [vmem:[%s1388_s0 + $0x170] sm:$0xff]  ;;  %v579_v24 = vld [vmem:[%s1388_s0 + $0x118] sm:$0xff] }
  0x17   :  { %v593_v25 = vld [vmem:[%s1388_s0 + $0x188] sm:$0xff]  ;;  %v578_v26 = vld [vmem:[%s1388_s0 + $0x110] sm:$0xff]  ;;  %v595_v29 = vld [vmem:[%s1388_s0 + $0x198] sm:$0xff] }
  0x18   :  { %v580_v30 = vld [vmem:[%s1388_s0 + $0x120] sm:$0xff]  ;;  %v594_v31 = vld [vmem:[%s1388_s0 + $0x190] sm:$0xff]  ;;  %v583_v32 = vld [vmem:[%s1388_s0 + $0x138] sm:$0xff] }
  0x19   :  { %836 = vmatpush3.bf16.msra.mxu0 %v1087_v39  ;;  %868 = vmatpush3.bf16.msra.mxu1 %v1087_v39  ;;  %v596_v35 = vld [vmem:[%s1388_s0 + $0x1a0] sm:$0xff]  ;;  %v585_v36 = vld [vmem:[%s1388_s0 + $0x148] sm:$0x3]  ;;  %v599_v37 = vld [vmem:[%s1388_s0 + $0x1b8] sm:$0x3] }
  0x1a   :  { %838 = vmatprep.subr.bf16.mxu0 %v1091_v40  ;;  %870 = vmatprep.subr.bf16.mxu1 %v1091_v40  ;;  %v584_v38 = vld [vmem:[%s1388_s0 + $0x140] sm:$0x3] }
  0x1d   :  { %840 = vmatpush3.bf16.msra.mxu0 %v1107_v45  ;;  %872 = vmatpush3.bf16.msra.mxu1 %v1107_v45 }
  0x1e   :  { %842 = vmatprep.subr.bf16.mxu0 %v1111_v46  ;;  %874 = vmatprep.subr.bf16.mxu1 %v1111_v46 }
  0x21   :  { %844 = vmatpush3.bf16.msra.mxu0 %v1121_v49  ;;  %876 = vmatpush3.bf16.msra.mxu1 %v1121_v49 }
  0x22   :  { %878 = vmatprep.subr.bf16.mxu0 %v970_v3  ;;  %910 = vmatprep.subr.bf16.mxu1 %v970_v3  ;;  %v566_v3 = vld [vmem:[%s1388_s0 + $0xb0] sm:$0xff] }
  0x24   :  { %125 = vmatmul.mubr.f32.vlgmr.msra.gmra.mrb[0].mxu0 %v46_v50  ;;  %240 = vmatmul.mubr.f32.vlgmr.msra.gmra.mrb[0].mxu1 %v558_v51 }
  0x25   :  { %880 = vmatpush3.bf16.msra.mxu0 %v981_v7  ;;  %912 = vmatpush3.bf16.msra.mxu1 %v981_v7  ;;  %v568_v7 = vld [vmem:[%s1388_s0 + $0xc0] sm:$0xff] }
  0x26   :  { %882 = vmatprep.subr.bf16.mxu0 %v983_v8  ;;  %914 = vmatprep.subr.bf16.mxu1 %v983_v8  ;;  %v59_v8 = vld [vmem:[%s1388_s0 + $0x68] sm:$0x3] }
  0x27   :  { %129 = vmatprep.mubr.f32.mxu0 %v49_v52  ;;  %244 = vmatprep.mubr.f32.mxu1 %v561_v53 }
  0x28   :  { %130 = vmatmul.mubr.f32.gmra.mrb[2].mxu0 %v48_v54  ;;  %245 = vmatmul.mubr.f32.gmra.mrb[2].mxu1 %v560_v55 }
  0x29   :  { %884 = vmatpush3.bf16.msra.mxu0 %v1001_v13  ;;  %916 = vmatpush3.bf16.msra.mxu1 %v1001_v13  ;;  %v587_v13 = vld [vmem:[%s1388_s0 + $0x158] sm:$0xff] }
  0x2a   :  { %886 = vmatprep.subr.bf16.mxu0 %v1005_v14  ;;  %918 = vmatprep.subr.bf16.mxu1 %v1005_v14  ;;  %v572_v14 = vld [vmem:[%s1388_s0 + $0xe0] sm:$0xff] }
  0x2b   :  { %134 = vmatprep.mubr.f32.mxu0 %v51_v56  ;;  %249 = vmatprep.mubr.f32.mxu1 %v563_v57 }
  0x2c   :  { %135 = vmatmul.mubr.f32.gmra.mrb[4].mxu0 %v50_v58  ;;  %250 = vmatmul.mubr.f32.gmra.mrb[4].mxu1 %v562_v59 }
  0x2d   :  { %888 = vmatpush3.bf16.msra.mxu0 %v1021_v19  ;;  %920 = vmatpush3.bf16.msra.mxu1 %v1021_v19  ;;  %v588_v19 = vld [vmem:[%s1388_s0 + $0x160] sm:$0xff] }
  0x2e   :  { %890 = vmatprep.subr.bf16.mxu0 %v1025_v20  ;;  %922 = vmatprep.subr.bf16.mxu1 %v1025_v20  ;;  %v577_v20 = vld [vmem:[%s1388_s0 + $0x108] sm:$0xff] }
  0x2f   :  { %139 = vmatprep.mubr.f32.mxu0 %v53_v60  ;;  %254 = vmatprep.mubr.f32.mxu1 %v565_v61 }
  0x30   :  { %140 = vmatmul.mubr.f32.gmra.mrb[6].mxu0 %v52_v62  ;;  %255 = vmatmul.mubr.f32.gmra.mrb[6].mxu1 %v564_v63 }
  0x31   :  { %892 = vmatpush3.bf16.msra.mxu0 %v1047_v27  ;;  %924 = vmatpush3.bf16.msra.mxu1 %v1047_v27  ;;  %v592_v27 = vld [vmem:[%s1388_s0 + $0x180] sm:$0xff] }
  0x32   :  { %894 = vmatprep.subr.bf16.mxu0 %v1051_v28  ;;  %926 = vmatprep.subr.bf16.mxu1 %v1051_v28  ;;  %v581_v28 = vld [vmem:[%s1388_s0 + $0x128] sm:$0xff] }
  0x33   :  { %144 = vmatprep.mubr.f32.mxu0 %v55_v0  ;;  %259 = vmatprep.mubr.f32.mxu1 %v567_v1 }
  0x34   :  { %145 = vmatmul.mubr.f32.gmra.mrb[8].mxu0 %v54_v2  ;;  %260 = vmatmul.mubr.f32.gmra.mrb[8].mxu1 %v566_v3 }
  0x35   :  { %896 = vmatpush3.bf16.msra.mxu0 %v1067_v33  ;;  %928 = vmatpush3.bf16.msra.mxu1 %v1067_v33  ;;  %v597_v33 = vld [vmem:[%s1388_s0 + $0x1a8] sm:$0xff] }
  0x36   :  { %898 = vmatprep.subr.bf16.mxu0 %v1071_v34  ;;  %930 = vmatprep.subr.bf16.mxu1 %v1071_v34  ;;  %v582_v34 = vld [vmem:[%s1388_s0 + $0x130] sm:$0xff] }
  0x37   :  { %149 = vmatprep.mubr.f32.mxu0 %v57_v4  ;;  %264 = vmatprep.mubr.f32.mxu1 %v569_v5 }
  0x38   :  { %150 = vmatmul.mubr.f32.gmra.mrb[10].mxu0 %v56_v6  ;;  %265 = vmatmul.mubr.f32.gmra.mrb[10].mxu1 %v568_v7 }
  0x39   :  { %900 = vmatpush3.bf16.msra.mxu0 %v1087_v39  ;;  %932 = vmatpush3.bf16.msra.mxu1 %v1087_v39  ;;  %v598_v39 = vld [vmem:[%s1388_s0 + $0x1b0] sm:$0x3] }
  0x3a   :  { %902 = vmatprep.subr.bf16.mxu0 %v1091_v40  ;;  %934 = vmatprep.subr.bf16.mxu1 %v1091_v40 }
  0x3b   :  { %154 = vmatprep.mubr.f32.mxu0 %v59_v8  ;;  %269 = vmatprep.mubr.f32.mxu1 %v571_v9 }
  0x3c   :  { %155 = vmatmul.mubr.f32.gmra.mrb[12].mxu0 %v58_v10  ;;  %270 = vmatmul.mubr.f32.gmra.mrb[12].mxu1 %v570_v11 }
  0x3d   :  { %904 = vmatpush3.bf16.msra.mxu0 %v1107_v45  ;;  %936 = vmatpush3.bf16.msra.mxu1 %v1107_v45 }
  0x3e   :  { %906 = vmatprep.subr.bf16.mxu0 %v1111_v46  ;;  %938 = vmatprep.subr.bf16.mxu1 %v1111_v46 }
  0x3f   :  { %361 = vmatprep.mubr.f32.mxu0 %v573_v12  ;;  %483 = vmatprep.mubr.f32.mxu1 %v587_v13 }
  0x41   :  { %908 = vmatpush3.bf16.msra.mxu0 %v1121_v49  ;;  %940 = vmatpush3.bf16.msra.mxu1 %v1121_v49 }
  0x44   :  { %362 = vmatmul.mubr.f32.vlgmr.msra.gmra.mrb[14].mxu0 %v572_v14  ;;  %484 = vmatmul.mubr.f32.vlgmr.msra.gmra.mrb[14].mxu1 %v586_v15 }
  0x45   :  { %366 = vmatprep.mubr.f32.mxu0 %v575_v16  ;;  %488 = vmatprep.mubr.f32.mxu1 %v589_v17 }
  0x48   :  { %367 = vmatmul.mubr.f32.gmra.mrb[16].mxu0 %v574_v18  ;;  %489 = vmatmul.mubr.f32.gmra.mrb[16].mxu1 %v588_v19 }
  0x49   :  { %371 = vmatprep.mubr.f32.mxu0 %v577_v20  ;;  %493 = vmatprep.mubr.f32.mxu1 %v591_v21 }
  0x4c   :  { %372 = vmatmul.mubr.f32.gmra.mrb[18].mxu0 %v576_v22  ;;  %494 = vmatmul.mubr.f32.gmra.mrb[18].mxu1 %v590_v23 }
  0x4d   :  { %376 = vmatprep.mubr.f32.mxu0 %v579_v24  ;;  %498 = vmatprep.mubr.f32.mxu1 %v593_v25 }
  0x50   :  { %377 = vmatmul.mubr.f32.gmra.mrb[20].mxu0 %v578_v26  ;;  %499 = vmatmul.mubr.f32.gmra.mrb[20].mxu1 %v592_v27 }
  0x51   :  { %381 = vmatprep.mubr.f32.mxu0 %v581_v28  ;;  %503 = vmatprep.mubr.f32.mxu1 %v595_v29 }
  0x54   :  { %382 = vmatmul.mubr.f32.gmra.mrb[22].mxu0 %v580_v30  ;;  %504 = vmatmul.mubr.f32.gmra.mrb[22].mxu1 %v594_v31 }
  0x55   :  { %386 = vmatprep.mubr.f32.mxu0 %v583_v32  ;;  %508 = vmatprep.mubr.f32.mxu1 %v597_v33 }
  0x58   :  { %387 = vmatmul.mubr.f32.gmra.mrb[24].mxu0 %v582_v34  ;;  %509 = vmatmul.mubr.f32.gmra.mrb[24].mxu1 %v596_v35  ;;  %v1348_v34 = vld [vmem:[%s1389_s2] ss:$0 sm:$0xff] }
  0x59   :  { %391 = vmatprep.mubr.f32.mxu0 %v585_v36  ;;  %513 = vmatprep.mubr.f32.mxu1 %v599_v37 }
  0x5c   :  { %392 = vmatmul.mubr.f32.gmra.mrb[26].mxu0 %v584_v38  ;;  %514 = vmatmul.mubr.f32.gmra.mrb[26].mxu1 %v598_v39 }
  0xf7   :  { %v633_v40 = vpop.f32.mrb[0].mxu0  ;;  %v686_v41 = vpop.f32.mrb[0].mxu1 }
  0xf8   :  { %v634_v42 = vpop.f32.mrb[1].mxu0  ;;  %v687_v43 = vpop.f32.mrb[1].mxu1 }
  0xf9   :  { %v635_v44 = vadd.f32 %v634_v42, %v633_v40  ;;  %v688_v45 = vadd.f32 %v687_v43, %v686_v41 }
  0xfb   :  { %v275_v46 = vmax.f32 %v635_v44, %v688_v45  ;;  %v636_v47 = vpop.f32.mrb[2].mxu0  ;;  %v689_v48 = vpop.f32.mrb[2].mxu1 }
  0xfc   :  { %v637_v49 = vpop.f32.mrb[3].mxu0  ;;  %v690_v50 = vpop.f32.mrb[3].mxu1 }
  0xfd   :  { %v638_v51 = vadd.f32 %v637_v49, %v636_v47  ;;  %v691_v52 = vadd.f32 %v690_v50, %v689_v48 }
  0xff   :  { %v276_v53 = vmax.f32 %v638_v51, %v691_v52  ;;  %v639_v54 = vpop.f32.mrb[4].mxu0  ;;  %v692_v55 = vpop.f32.mrb[4].mxu1 }
 0x100   :  { %v640_v56 = vpop.f32.mrb[5].mxu0  ;;  %v693_v57 = vpop.f32.mrb[5].mxu1 }
 0x101   :  { %v641_v58 = vadd.f32 %v640_v56, %v639_v54  ;;  %v694_v59 = vadd.f32 %v693_v57, %v692_v55 }
 0x103   :  { %v277_v60 = vmax.f32 %v641_v58, %v694_v59  ;;  %v642_v61 = vpop.f32.mrb[6].mxu0  ;;  %v695_v62 = vpop.f32.mrb[6].mxu1 }
 0x104   :  { %v643_v63 = vpop.f32.mrb[7].mxu0  ;;  %v696_v0 = vpop.f32.mrb[7].mxu1 }
 0x105   :  { %v1321_v1 = vadd.f32 %v643_v63, %v642_v61  ;;  %v1323_v2 = vadd.f32 %v696_v0, %v695_v62 }
 0x107   :  { %v278_v3 = vmax.f32 %v1321_v1, %v1323_v2  ;;  %v645_v4 = vpop.f32.mrb[8].mxu0  ;;  %v698_v5 = vpop.f32.mrb[8].mxu1 }
 0x108   :  { %v646_v6 = vpop.f32.mrb[9].mxu0  ;;  %v699_v7 = vpop.f32.mrb[9].mxu1 }
 0x109   :  { %v1327_v8 = vadd.f32 %v646_v6, %v645_v4  ;;  %v1329_v9 = vadd.f32 %v699_v7, %v698_v5 }
 0x10b   :  { %v279_v10 = vmax.f32 %v1327_v8, %v1329_v9  ;;  %v648_v11 = vpop.f32.mrb[10].mxu0  ;;  %v701_v12 = vpop.f32.mrb[10].mxu1 }
 0x10c   :  { %v649_v13 = vpop.f32.mrb[11].mxu0  ;;  %v702_v14 = vpop.f32.mrb[11].mxu1 }
 0x10d   :  { %v1333_v15 = vadd.f32 %v649_v13, %v648_v11  ;;  %v1335_v16 = vadd.f32 %v702_v14, %v701_v12 }
 0x10f   :  { %v280_v17 = vmax.f32 %v1333_v15, %v1335_v16  ;;  %v651_v18 = vpop.f32.mrb[12].mxu0  ;;  %v704_v19 = vpop.f32.mrb[12].mxu1 }
 0x110   :  { %v652_v20 = vpop.f32.mrb[13].mxu0  ;;  %v705_v21 = vpop.f32.mrb[13].mxu1 }
 0x111   :  { %v1339_v22 = vadd.f32 %v652_v20, %v651_v18  ;;  %v1341_v23 = vadd.f32 %v705_v21, %v704_v19 }
 0x113   :  { %v281_v24 = vmax.f32 %v1339_v22, %v1341_v23 }
 0x117   :  { %v739_v25 = vpop.f32.mrb[14].mxu0  ;;  %v792_v26 = vpop.f32.mrb[14].mxu1 }
 0x118   :  { %v740_v27 = vpop.f32.mrb[15].mxu0  ;;  %v793_v28 = vpop.f32.mrb[15].mxu1 }
 0x119   :  { %v741_v29 = vadd.f32 %v740_v27, %v739_v25  ;;  %v794_v30 = vadd.f32 %v793_v28, %v792_v26 }
 0x11b   :  { %v397_v31 = vmax.f32 %v275_v46, %v741_v29  ;;  %v742_v32 = vpop.f32.mrb[16].mxu0  ;;  %v795_v33 = vpop.f32.mrb[16].mxu1 }
 0x11c   :  { %v743_v35 = vpop.f32.mrb[17].mxu0  ;;  %v796_v36 = vpop.f32.mrb[17].mxu1 }
 0x11d   :  { %v519_v37 = vmax.f32 %v397_v31, %v794_v30  ;;  %v744_v38 = vadd.f32 %v743_v35, %v742_v32  ;;  %v797_v39 = vadd.f32 %v796_v36, %v795_v33 }
 0x11f   :  { %v533_v40 = vadd.f32 %v1348_v34, %v519_v37  ;;  %v398_v41 = vmax.f32 %v276_v53, %v744_v38  ;;  %v745_v42 = vpop.f32.mrb[18].mxu0  ;;  %v798_v43 = vpop.f32.mrb[18].mxu1 }
 0x120   :  { %v746_v44 = vpop.f32.mrb[19].mxu0  ;;  %v799_v45 = vpop.f32.mrb[19].mxu1 }
 0x121   :  { %v540_v46 = vmax.f32 %v533_v40, 0.0  ;;  %v520_v47 = vmax.f32 %v398_v41, %v797_v39  ;;  %v747_v48 = vadd.f32 %v746_v44, %v745_v42  ;;  %v800_v49 = vadd.f32 %v799_v45, %v798_v43 }
 0x123   :  { %547 = vst [vmem:[%s1390_s3] sm:$0xff] %v540_v46  ;;  %v534_v50 = vadd.f32 %v1348_v34, %v520_v47  ;;  %v399_v51 = vmax.f32 %v277_v60, %v747_v48  ;;  %v748_v52 = vpop.f32.mrb[20].mxu0  ;;  %v801_v54 = vpop.f32.mrb[20].mxu1 }
 0x124   :  { %v749_v55 = vpop.f32.mrb[21].mxu0  ;;  %v802_v56 = vpop.f32.mrb[21].mxu1 }
 0x125   :  { %v541_v53 = vmax.f32 %v534_v50, 0.0  ;;  %v521_v57 = vmax.f32 %v399_v51, %v800_v49  ;;  %v750_v58 = vadd.f32 %v749_v55, %v748_v52  ;;  %v803_v59 = vadd.f32 %v802_v56, %v801_v54 }
 0x127   :  { %548 = vst [vmem:[%s1390_s3 + $0x8] sm:$0xff] %v541_v53  ;;  %v535_v61 = vadd.f32 %v1348_v34, %v521_v57  ;;  %v400_v62 = vmax.f32 %v278_v3, %v750_v58  ;;  %v751_v63 = vpop.f32.mrb[22].mxu0  ;;  %v804_v0 = vpop.f32.mrb[22].mxu1 }
 0x128   :  { %v752_v1 = vpop.f32.mrb[23].mxu0  ;;  %v805_v2 = vpop.f32.mrb[23].mxu1 }
 0x129   :  { %v542_v60 = vmax.f32 %v535_v61, 0.0  ;;  %v522_v4 = vmax.f32 %v400_v62, %v803_v59  ;;  %v753_v5 = vadd.f32 %v752_v1, %v751_v63  ;;  %v806_v6 = vadd.f32 %v805_v2, %v804_v0 }
 0x12b   :  { %549 = vst [vmem:[%s1390_s3 + $0x10] sm:$0xff] %v542_v60  ;;  %v536_v7 = vadd.f32 %v1348_v34, %v522_v4  ;;  %v401_v11 = vmax.f32 %v279_v10, %v753_v5  ;;  %v754_v12 = vpop.f32.mrb[24].mxu0  ;;  %v807_v3 = vpop.f32.mrb[24].mxu1 }
 0x12c   :  { %v755_v13 = vpop.f32.mrb[25].mxu0  ;;  %v808_v14 = vpop.f32.mrb[25].mxu1 }
 0x12d   :  { %v543_v18 = vmax.f32 %v536_v7, 0.0  ;;  %v523_v19 = vmax.f32 %v401_v11, %v806_v6  ;;  %v756_v20 = vadd.f32 %v755_v13, %v754_v12  ;;  %v809_v21 = vadd.f32 %v808_v14, %v807_v3 }
 0x12f   :  { %550 = vst [vmem:[%s1390_s3 + $0x18] sm:$0xff] %v543_v18  ;;  %v537_v25 = vadd.f32 %v1348_v34, %v523_v19  ;;  %v402_v26 = vmax.f32 %v280_v17, %v756_v20  ;;  %v757_v8 = vpop.f32.mrb[26].mxu0  ;;  %v810_v9 = vpop.f32.mrb[26].mxu1 }
 0x130   :  { %v758_v10 = vpop.f32.mrb[27].mxu0  ;;  %v811_v27 = vpop.f32.mrb[27].mxu1 }
 0x131   :  { %v544_v28 = vmax.f32 %v537_v25, 0.0  ;;  %v524_v29 = vmax.f32 %v402_v26, %v809_v21  ;;  %v759_v30 = vadd.f32 %v758_v10, %v757_v8  ;;  %v812_v31 = vadd.f32 %v811_v27, %v810_v9 }
 0x133   :  { %551 = vst [vmem:[%s1390_s3 + $0x20] sm:$0xff] %v544_v28  ;;  %v538_v32 = vadd.f32 %v1348_v34, %v524_v29  ;;  %v403_v33 = vmax.f32 %v281_v24, %v759_v30 }
 0x135   :  { %v545_v15 = vmax.f32 %v538_v32, 0.0  ;;  %v525_v16 = vmax.f32 %v403_v33, %v812_v31 }
 0x137   :  { %552 = vst [vmem:[%s1390_s3 + $0x28] sm:$0xff] %v545_v15  ;;  %v539_v17 = vadd.f32 %v1348_v34, %v525_v16 }
 0x139   :  { %v546_v35 = vmax.f32 %v539_v17, 0.0 }
 0x13b   :  { %553 = vst [vmem:[%s1390_s3 + $0x30] sm:$0x3] %v546_v35 }

// kernel: net_forward.5
= control target key start
LH: loop header
LB: loop body
LE: loop exit
PB: predicated region body
PF: predicated region fallthrough
CT: control target
= control target key end

     0   :  { %v4975_v3 = vmov 0.0|0.0   ;;  %vm4976_vm0 = vmmov 0   ;;  %v4977_v11 = vmov 0.0   ;;  %s6693_s0 = inlined_call_operand.vmem [shape: f32[25,2,128], index: 0, kind: input, shape index: {}]   ;;  %s6694_s1 = inlined_call_operand.vmem [shape: f32[25,128,128], index: 1, kind: input, shape index: {}]   ;;  %s6695_s2 = inlined_call_operand.vmem [shape: f32[1,128], index: 2, kind: input, shape index: {}]   ;;  %s6696_s3 = inlined_call_operand.vmem [shape: f32[128,128], index: 3, kind: input, shape index: {}]   ;;  %s6697_s4 = inlined_call_operand.vmem [shape: f32[1,128], index: 4, kind: input, shape index: {}]   ;;  %s6698_s5 = inlined_call_operand.vmem [shape: f32[128,128], index: 5, kind: input, shape index: {}]   ;;  %s6699_s6 = inlined_call_operand.vmem [shape: f32[1,128], index: 6, kind: input, shape index: {}]   ;;  %s6700_s7 = inlined_call_operand.hbm [shape: f32[2,128], index: 7, kind: output, shape index: {}]  }
   0x1   :  { %v2485_v0 = vld [vmem:[%s6694_s1 + $0x80] sm:$0xff]  ;;  %v2486_v1 = vld [vmem:[%s6694_s1 + $0x88] sm:$0xff]  ;;  %4299 = vmatprep.subr.bf16.mxu0 %v4975_v3  ;;  %4323 = vmatprep.subr.bf16.mxu1 %v4975_v3  ;;  %v2487_v6 = vld [vmem:[%s6694_s1 + $0x90] sm:$0xff] }
   0x2   :  { %v28_v2 = vld [vmem:[%s6694_s1] sm:$0xff]  ;;  %v4300_v4 = vpack.c.bf16 %v2486_v1, %v2485_v0  ;;  %v29_v5 = vld [vmem:[%s6694_s1 + $0x8] sm:$0xff]  ;;  %v2488_v7 = vld [vmem:[%s6694_s1 + $0x98] sm:$0xff]  ;;  %3386 = vmatprep.mubr.msk.f32.mxu0 %vm4976_vm0, %v4977_v11  ;;  %3421 = vmatprep.mubr.msk.f32.mxu1 %vm4976_vm0, %v4977_v11 }
   0x3   :  { %v4324_v8 = vpack.c.bf16 %v29_v5, %v28_v2  ;;  %v30_v9 = vld [vmem:[%s6694_s1 + $0x10] sm:$0xff]  ;;  %v31_v10 = vld [vmem:[%s6694_s1 + $0x18] sm:$0xff]  ;;  %v4303_v12 = vpack.c.bf16 %v2488_v7, %v2487_v6  ;;  %v2489_v14 = vld [vmem:[%s6694_s1 + $0xa0] sm:$0xff] }
   0x4   :  { %4301 = vmatpush3.bf16.msra.mxu0 %v4300_v4  ;;  %v4327_v13 = vpack.c.bf16 %v31_v10, %v30_v9  ;;  %v2490_v15 = vld [vmem:[%s6694_s1 + $0xa8] sm:$0xff]  ;;  %v32_v16 = vld [vmem:[%s6694_s1 + $0x20] sm:$0xff]  ;;  %v2491_v20 = vld [vmem:[%s6694_s1 + $0xb0] sm:$0xff] }
   0x5   :  { %4325 = vmatpush3.bf16.msra.mxu1 %v4324_v8  ;;  %4302 = vmatprep.subr.bf16.mxu0 %v4975_v3  ;;  %v33_v17 = vld [vmem:[%s6694_s1 + $0x28] sm:$0xff]  ;;  %v4306_v18 = vpack.c.bf16 %v2490_v15, %v2489_v14  ;;  %v2492_v21 = vld [vmem:[%s6694_s1 + $0xb8] sm:$0xff]  ;;  %v34_v22 = vld [vmem:[%s6694_s1 + $0x30] sm:$0xff] }
   0x6   :  { %4326 = vmatprep.subr.bf16.mxu1 %v4975_v3  ;;  %v4330_v19 = vpack.c.bf16 %v33_v17, %v32_v16  ;;  %v35_v23 = vld [vmem:[%s6694_s1 + $0x38] sm:$0xff]  ;;  %v4309_v24 = vpack.c.bf16 %v2492_v21, %v2491_v20  ;;  %v2493_v26 = vld [vmem:[%s6694_s1 + $0xc0] sm:$0xff]  ;;  %v2494_v27 = vld [vmem:[%s6694_s1 + $0xc8] sm:$0xff] }
   0x7   :  { %v4333_v25 = vpack.c.bf16 %v35_v23, %v34_v22  ;;  %v36_v28 = vld [vmem:[%s6694_s1 + $0x40] sm:$0xff]  ;;  %v37_v29 = vld [vmem:[%s6694_s1 + $0x48] sm:$0xff]  ;;  %v4312_v30 = vpack.c.bf16 %v2494_v27, %v2493_v26  ;;  %v2495_v32 = vld [vmem:[%s6694_s1 + $0xd0] sm:$0xff] }
   0x8   :  { %4304 = vmatpush3.bf16.msra.mxu0 %v4303_v12  ;;  %v4336_v31 = vpack.c.bf16 %v37_v29, %v36_v28  ;;  %v2496_v33 = vld [vmem:[%s6694_s1 + $0xd8] sm:$0xff]  ;;  %v38_v34 = vld [vmem:[%s6694_s1 + $0x50] sm:$0xff]  ;;  %v2497_v38 = vld [vmem:[%s6694_s1 + $0xe0] sm:$0xff] }
   0x9   :  { %4328 = vmatpush3.bf16.msra.mxu1 %v4327_v13  ;;  %4305 = vmatprep.subr.bf16.mxu0 %v4975_v3  ;;  %v39_v35 = vld [vmem:[%s6694_s1 + $0x58] sm:$0xff]  ;;  %v4315_v36 = vpack.c.bf16 %v2496_v33, %v2495_v32  ;;  %v2498_v39 = vld [vmem:[%s6694_s1 + $0xe8] sm:$0xff]  ;;  %v40_v40 = vld [vmem:[%s6694_s1 + $0x60] sm:$0xff] }
   0xa   :  { %4329 = vmatprep.subr.bf16.mxu1 %v4975_v3  ;;  %v4339_v37 = vpack.c.bf16 %v39_v35, %v38_v34  ;;  %v41_v41 = vld [vmem:[%s6694_s1 + $0x68] sm:$0xff]  ;;  %v4318_v42 = vpack.c.bf16 %v2498_v39, %v2497_v38  ;;  %v2499_v44 = vld [vmem:[%s6694_s1 + $0xf0] sm:$0xff]  ;;  %v2500_v45 = vld [vmem:[%s6694_s1 + $0xf8] sm:$0xff] }
   0xb   :  { %v4342_v43 = vpack.c.bf16 %v41_v41, %v40_v40  ;;  %v42_v46 = vld [vmem:[%s6694_s1 + $0x70] sm:$0xff]  ;;  %v43_v47 = vld [vmem:[%s6694_s1 + $0x78] sm:$0xff]  ;;  %v4321_v48 = vpack.c.bf16 %v2500_v45, %v2499_v44  ;;  %v2502_v50 = vld [vmem:[%s6694_s1 + $0x100] sm:$0xff] }
   0xc   :  { %4307 = vmatpush3.bf16.msra.mxu0 %v4306_v18  ;;  %v4345_v49 = vpack.c.bf16 %v43_v47, %v42_v46  ;;  %v2503_v51 = vld [vmem:[%s6694_s1 + $0x108] sm:$0xff]  ;;  %v2519_v52 = vld [vmem:[%s6694_s1 + $0x180] sm:$0xff]  ;;  %v2504_v58 = vld [vmem:[%s6694_s1 + $0x110] sm:$0xff] }
   0xd   :  { %4331 = vmatpush3.bf16.msra.mxu1 %v4330_v19  ;;  %4308 = vmatprep.subr.bf16.mxu0 %v4975_v3  ;;  %v2520_v53 = vld [vmem:[%s6694_s1 + $0x188] sm:$0xff]  ;;  %v2484_v54 = vld [vmem:[%s6693_s0 + $0x2] sm:$0x3]  ;;  %v4348_v55 = vpack.c.bf16 %v2503_v51, %v2502_v50  ;;  %v27_v56 = vld [vmem:[%s6693_s0] sm:$0x3] }
   0xe   :  { %4332 = vmatprep.subr.bf16.mxu1 %v4975_v3  ;;  %v4372_v57 = vpack.c.bf16 %v2520_v53, %v2519_v52  ;;  %v2505_v59 = vld [vmem:[%s6694_s1 + $0x118] sm:$0xff]  ;;  %v2521_v60 = vld [vmem:[%s6694_s1 + $0x190] sm:$0xff]  ;;  %v2506_v0 = vld [vmem:[%s6694_s1 + $0x120] sm:$0xff] }
   0xf   :  { %v2522_v61 = vld [vmem:[%s6694_s1 + $0x198] sm:$0xff]  ;;  %v4351_v62 = vpack.c.bf16 %v2505_v59, %v2504_v58  ;;  %v2507_v1 = vld [vmem:[%s6694_s1 + $0x128] sm:$0xff]  ;;  %v2523_v2 = vld [vmem:[%s6694_s1 + $0x1a0] sm:$0xff] }
  0x10   :  { %4310 = vmatpush3.bf16.msra.mxu0 %v4309_v24  ;;  %v4375_v63 = vpack.c.bf16 %v2522_v61, %v2521_v60  ;;  %v2524_v4 = vld [vmem:[%s6694_s1 + $0x1a8] sm:$0xff]  ;;  %v4354_v5 = vpack.c.bf16 %v2507_v1, %v2506_v0  ;;  %v2508_v7 = vld [vmem:[%s6694_s1 + $0x130] sm:$0xff]  ;;  %v2509_v8 = vld [vmem:[%s6694_s1 + $0x138] sm:$0xff] }
  0x11   :  { %4334 = vmatpush3.bf16.msra.mxu1 %v4333_v25  ;;  %4311 = vmatprep.subr.bf16.mxu0 %v4975_v3  ;;  %v4378_v6 = vpack.c.bf16 %v2524_v4, %v2523_v2  ;;  %v2525_v9 = vld [vmem:[%s6694_s1 + $0x1b0] sm:$0xff]  ;;  %v2526_v10 = vld [vmem:[%s6694_s1 + $0x1b8] sm:$0xff]  ;;  %v4357_v12 = vpack.c.bf16 %v2509_v8, %v2508_v7  ;;  %v2510_v14 = vld [vmem:[%s6694_s1 + $0x140] sm:$0xff] }
  0x12   :  { %4335 = vmatprep.subr.bf16.mxu1 %v4975_v3  ;;  %v4381_v13 = vpack.c.bf16 %v2526_v10, %v2525_v9  ;;  %v2511_v15 = vld [vmem:[%s6694_s1 + $0x148] sm:$0xff]  ;;  %v2527_v16 = vld [vmem:[%s6694_s1 + $0x1c0] sm:$0xff]  ;;  %v2512_v20 = vld [vmem:[%s6694_s1 + $0x150] sm:$0xff] }
  0x13   :  { %v2528_v17 = vld [vmem:[%s6694_s1 + $0x1c8] sm:$0xff]  ;;  %v4360_v18 = vpack.c.bf16 %v2511_v15, %v2510_v14  ;;  %v2513_v21 = vld [vmem:[%s6694_s1 + $0x158] sm:$0xff]  ;;  %v2529_v22 = vld [vmem:[%s6694_s1 + $0x1d0] sm:$0xff] }
  0x14   :  { %4313 = vmatpush3.bf16.msra.mxu0 %v4312_v30  ;;  %v4384_v19 = vpack.c.bf16 %v2528_v17, %v2527_v16  ;;  %v2530_v23 = vld [vmem:[%s6694_s1 + $0x1d8] sm:$0xff]  ;;  %v4363_v24 = vpack.c.bf16 %v2513_v21, %v2512_v20  ;;  %v2514_v26 = vld [vmem:[%s6694_s1 + $0x160] sm:$0xff]  ;;  %v2515_v27 = vld [vmem:[%s6694_s1 + $0x168] sm:$0xff] }
  0x15   :  { %4337 = vmatpush3.bf16.msra.mxu1 %v4336_v31  ;;  %4314 = vmatprep.subr.bf16.mxu0 %v4975_v3  ;;  %v4387_v25 = vpack.c.bf16 %v2530_v23, %v2529_v22  ;;  %v2531_v28 = vld [vmem:[%s6694_s1 + $0x1e0] sm:$0xff]  ;;  %v2532_v29 = vld [vmem:[%s6694_s1 + $0x1e8] sm:$0xff]  ;;  %v4366_v30 = vpack.c.bf16 %v2515_v27, %v2514_v26  ;;  %v2516_v32 = vld [vmem:[%s6694_s1 + $0x170] sm:$0xff] }
  0x16   :  { %4338 = vmatprep.subr.bf16.mxu1 %v4975_v3  ;;  %v4390_v31 = vpack.c.bf16 %v2532_v29, %v2531_v28  ;;  %v2517_v33 = vld [vmem:[%s6694_s1 + $0x178] sm:$0xff]  ;;  %v2533_v34 = vld [vmem:[%s6694_s1 + $0x1f0] sm:$0xff]  ;;  %v2536_v38 = vld [vmem:[%s6694_s1 + $0x200] sm:$0xff] }
  0x17   :  { %v2534_v35 = vld [vmem:[%s6694_s1 + $0x1f8] sm:$0xff]  ;;  %v2537_v39 = vld [vmem:[%s6694_s1 + $0x208] sm:$0xff]  ;;  %v2553_v40 = vld [vmem:[%s6694_s1 + $0x280] sm:$0xff] }
  0x18   :  { %4316 = vmatpush3.bf16.msra.mxu0 %v4315_v36  ;;  %v4369_v36 = vpack.c.bf16 %v2517_v33, %v2516_v32  ;;  %v2554_v41 = vld [vmem:[%s6694_s1 + $0x288] sm:$0xff]  ;;  %v2518_v44 = vld [vmem:[%s6693_s0 + $0x6] sm:$0x3]  ;;  %v2538_v46 = vld [vmem:[%s6694_s1 + $0x210] sm:$0xff] }
  0x19   :  { %4340 = vmatpush3.bf16.msra.mxu1 %v4339_v37  ;;  %4317 = vmatprep.subr.bf16.mxu0 %v4975_v3  ;;  %v4393_v37 = vpack.c.bf16 %v2534_v35, %v2533_v34  ;;  %v4420_v45 = vpack.c.bf16 %v2554_v41, %v2553_v40  ;;  %v2539_v47 = vld [vmem:[%s6694_s1 + $0x218] sm:$0xff]  ;;  %v2540_v52 = vld [vmem:[%s6694_s1 + $0x220] sm:$0xff]  ;;  %v2541_v53 = vld [vmem:[%s6694_s1 + $0x228] sm:$0xff] }
  0x1a   :  { %4341 = vmatprep.subr.bf16.mxu1 %v4975_v3  ;;  %v4399_v50 = vpack.c.bf16 %v2539_v47, %v2538_v46 }
  0x1c   :  { %4319 = vmatpush3.bf16.msra.mxu0 %v4318_v42  ;;  %v2501_v42 = vld [vmem:[%s6693_s0 + $0x4] sm:$0x3] }
  0x1d   :  { %4343 = vmatpush3.bf16.msra.mxu1 %v4342_v43  ;;  %4320 = vmatprep.subr.bf16.mxu0 %v4975_v3  ;;  %v4396_v43 = vpack.c.bf16 %v2537_v39, %v2536_v38 }
  0x1e   :  { %4344 = vmatprep.subr.bf16.mxu1 %v4975_v3 }
  0x20   :  { %4322 = vmatpush3.bf16.msra.mxu0 %v4321_v48  ;;  %v2555_v48 = vld [vmem:[%s6694_s1 + $0x290] sm:$0xff] }
  0x21   :  { %4346 = vmatpush3.bf16.msra.mxu1 %v4345_v49  ;;  %4347 = vmatprep.subr.bf16.mxu0 %v4975_v3  ;;  %v2556_v49 = vld [vmem:[%s6694_s1 + $0x298] sm:$0xff] }
  0x22   :  { %4371 = vmatprep.subr.bf16.mxu1 %v4975_v3  ;;  %v4423_v51 = vpack.c.bf16 %v2556_v49, %v2555_v48 }
  0x23   :  { %3387 = vmatmul.mubr.f32.vlgmr.msra.gmra.mrb[0].mxu0 %v2484_v54  ;;  %v2557_v54 = vld [vmem:[%s6694_s1 + $0x2a0] sm:$0xff] }
  0x24   :  { %3422 = vmatmul.mubr.f32.vlgmr.msra.gmra.mrb[0].mxu1 %v27_v56  ;;  %4349 = vmatpush3.bf16.msra.mxu0 %v4348_v55  ;;  %v2558_v55 = vld [vmem:[%s6694_s1 + $0x2a8] sm:$0xff] }
  0x25   :  { %4373 = vmatpush3.bf16.msra.mxu1 %v4372_v57  ;;  %4350 = vmatprep.subr.bf16.mxu0 %v4975_v3 }
  0x26   :  { %4374 = vmatprep.subr.bf16.mxu1 %v4975_v3  ;;  %3456 = vmatprep.mubr.msk.f32.mxu0 %vm4976_vm0, %v4977_v11 }
  0x27   :  { %3491 = vmatprep.mubr.msk.f32.mxu1 %vm4976_vm0, %v4977_v11 }
  0x28   :  { %4352 = vmatpush3.bf16.msra.mxu0 %v4351_v62 }
  0x29   :  { %4376 = vmatpush3.bf16.msra.mxu1 %v4375_v63  ;;  %4353 = vmatprep.subr.bf16.mxu0 %v4975_v3 }
  0x2a   :  { %4377 = vmatprep.subr.bf16.mxu1 %v4975_v3 }
  0x2c   :  { %4355 = vmatpush3.bf16.msra.mxu0 %v4354_v5 }
  0x2d   :  { %4379 = vmatpush3.bf16.msra.mxu1 %v4378_v6  ;;  %4356 = vmatprep.subr.bf16.mxu0 %v4975_v3 }
  0x2e   :  { %4380 = vmatprep.subr.bf16.mxu1 %v4975_v3 }
  0x30   :  { %4358 = vmatpush3.bf16.msra.mxu0 %v4357_v12 }
  0x31   :  { %4382 = vmatpush3.bf16.msra.mxu1 %v4381_v13  ;;  %4359 = vmatprep.subr.bf16.mxu0 %v4975_v3 }
  0x32   :  { %4383 = vmatprep.subr.bf16.mxu1 %v4975_v3 }
  0x34   :  { %4361 = vmatpush3.bf16.msra.mxu0 %v4360_v18 }
  0x35   :  { %4385 = vmatpush3.bf16.msra.mxu1 %v4384_v19  ;;  %4362 = vmatprep.subr.bf16.mxu0 %v4975_v3 }
  0x36   :  { %4386 = vmatprep.subr.bf16.mxu1 %v4975_v3 }
  0x38   :  { %4364 = vmatpush3.bf16.msra.mxu0 %v4363_v24 }
  0x39   :  { %4388 = vmatpush3.bf16.msra.mxu1 %v4387_v25  ;;  %4365 = vmatprep.subr.bf16.mxu0 %v4975_v3 }
  0x3a   :  { %4389 = vmatprep.subr.bf16.mxu1 %v4975_v3 }
  0x3c   :  { %4367 = vmatpush3.bf16.msra.mxu0 %v4366_v30 }
  0x3d   :  { %4391 = vmatpush3.bf16.msra.mxu1 %v4390_v31  ;;  %4368 = vmatprep.subr.bf16.mxu0 %v4975_v3 }
  0x3e   :  { %4392 = vmatprep.subr.bf16.mxu1 %v4975_v3 }
  0x40   :  { %4370 = vmatpush3.bf16.msra.mxu0 %v4369_v36 }
  0x41   :  { %4394 = vmatpush3.bf16.msra.mxu1 %v4393_v37  ;;  %4395 = vmatprep.subr.bf16.mxu0 %v4975_v3 }
  0x42   :  { %4419 = vmatprep.subr.bf16.mxu1 %v4975_v3 }
  0x43   :  { %3457 = vmatmul.mubr.f32.vlgmr.msra.gmra.mrb[2].mxu0 %v2501_v42 }
  0x44   :  { %4397 = vmatpush3.bf16.msra.mxu0 %v4396_v43  ;;  %3492 = vmatmul.mubr.f32.vlgmr.msra.gmra.mrb[2].mxu1 %v2518_v44 }
  0x45   :  { %4421 = vmatpush3.bf16.msra.mxu1 %v4420_v45  ;;  %4398 = vmatprep.subr.bf16.mxu0 %v4975_v3 }
  0x46   :  { %4422 = vmatprep.subr.bf16.mxu1 %v4975_v3  ;;  %3526 = vmatprep.mubr.msk.f32.mxu0 %vm4976_vm0, %v4977_v11 }
  0x47   :  { %3561 = vmatprep.mubr.msk.f32.mxu1 %vm4976_vm0, %v4977_v11 }
  0x48   :  { %12 = vsyncpa [#allocation3], 0  ;;  %4400 = vmatpush3.bf16.msra.mxu0 %v4399_v50  ;;  %v4402_v56 = vpack.c.bf16 %v2541_v53, %v2540_v52  ;;  %v4426_v57 = vpack.c.bf16 %v2558_v55, %v2557_v54  ;;  %v2542_v58 = vld [vmem:[%s6694_s1 + $0x230] sm:$0xff]  ;;  %v2543_v59 = vld [vmem:[%s6694_s1 + $0x238] sm:$0xff]  ;;  %s4978_s15 = smov [#allocation2]  }
  0x49   :  { %4424 = vmatpush3.bf16.msra.mxu1 %v4423_v51  ;;  %4401 = vmatprep.subr.bf16.mxu0 %v4975_v3  ;;  %v2559_v60 = vld [vmem:[%s6694_s1 + $0x2b0] sm:$0xff]  ;;  %v2560_v61 = vld [vmem:[%s6694_s1 + $0x2b8] sm:$0xff]  ;;  %v4405_v62 = vpack.c.bf16 %v2543_v59, %v2542_v58  ;;  %v2544_v0 = vld [vmem:[%s6694_s1 + $0x240] sm:$0xff]  ;;  %s2476_s16 = sshll.u32 %s4978_s15, 4  ;;  %s2477_s16 = int_to_ptr.vmem [resolvable:$true] %s2476_s16 }
  0x4a   :  { %4425 = vmatprep.subr.bf16.mxu1 %v4975_v3  ;;  %v4429_v63 = vpack.c.bf16 %v2560_v61, %v2559_v60  ;;  %v2545_v1 = vld [vmem:[%s6694_s1 + $0x248] sm:$0xff]  ;;  %v2561_v2 = vld [vmem:[%s6694_s1 + $0x2c0] sm:$0xff]  ;;  %v2546_v7 = vld [vmem:[%s6694_s1 + $0x250] sm:$0xff]  ;;  %p4956_p1 = scmp.lt.s32.totalorder %s2477_s16, %s2477_s16 }
  0x4b   :  { %v2562_v4 = vld [vmem:[%s6694_s1 + $0x2c8] sm:$0xff]  ;;  %v4408_v5 = vpack.c.bf16 %v2545_v1, %v2544_v0  ;;  %v2547_v8 = vld [vmem:[%s6694_s1 + $0x258] sm:$0xff]  ;;  %v2563_v9 = vld [vmem:[%s6694_s1 + $0x2d0] sm:$0xff] }
  0x4c   :  { %4403 = vmatpush3.bf16.msra.mxu0 %v4402_v56  ;;  %v4432_v6 = vpack.c.bf16 %v2562_v4, %v2561_v2  ;;  %v2564_v10 = vld [vmem:[%s6694_s1 + $0x2d8] sm:$0xff]  ;;  %v4411_v12 = vpack.c.bf16 %v2547_v8, %v2546_v7  ;;  %v2548_v14 = vld [vmem:[%s6694_s1 + $0x260] sm:$0xff]  ;;  %v2549_v15 = vld [vmem:[%s6694_s1 + $0x268] sm:$0xff] }
  0x4d   :  { %4427 = vmatpush3.bf16.msra.mxu1 %v4426_v57  ;;  %4404 = vmatprep.subr.bf16.mxu0 %v4975_v3  ;;  %v4435_v13 = vpack.c.bf16 %v2564_v10, %v2563_v9  ;;  %v2565_v16 = vld [vmem:[%s6694_s1 + $0x2e0] sm:$0xff]  ;;  %v2566_v17 = vld [vmem:[%s6694_s1 + $0x2e8] sm:$0xff]  ;;  %v4414_v18 = vpack.c.bf16 %v2549_v15, %v2548_v14  ;;  %v2550_v20 = vld [vmem:[%s6694_s1 + $0x270] sm:$0xff] }
  0x4e   :  { %4428 = vmatprep.subr.bf16.mxu1 %v4975_v3  ;;  %v4438_v19 = vpack.c.bf16 %v2566_v17, %v2565_v16  ;;  %v2551_v21 = vld [vmem:[%s6694_s1 + $0x278] sm:$0xff]  ;;  %v2567_v22 = vld [vmem:[%s6694_s1 + $0x2f0] sm:$0xff]  ;;  %v2570_v26 = vld [vmem:[%s6694_s1 + $0x300] sm:$0xff] }
  0x4f   :  { %v2568_v23 = vld [vmem:[%s6694_s1 + $0x2f8] sm:$0xff]  ;;  %v4417_v24 = vpack.c.bf16 %v2551_v21, %v2550_v20  ;;  %v2571_v27 = vld [vmem:[%s6694_s1 + $0x308] sm:$0xff]  ;;  %v2587_v28 = vld [vmem:[%s6694_s1 + $0x380] sm:$0xff] }
  0x50   :  { %4406 = vmatpush3.bf16.msra.mxu0 %v4405_v62  ;;  %v4441_v25 = vpack.c.bf16 %v2568_v23, %v2567_v22  ;;  %v2588_v29 = vld [vmem:[%s6694_s1 + $0x388] sm:$0xff]  ;;  %v4444_v31 = vpack.c.bf16 %v2571_v27, %v2570_v26  ;;  %v2572_v34 = vld [vmem:[%s6694_s1 + $0x310] sm:$0xff]  ;;  %v2573_v35 = vld [vmem:[%s6694_s1 + $0x318] sm:$0xff] }
  0x51   :  { %4430 = vmatpush3.bf16.msra.mxu1 %v4429_v63  ;;  %4407 = vmatprep.subr.bf16.mxu0 %v4975_v3  ;;  %v2535_v30 = vld [vmem:[%s6693_s0 + $0x8] sm:$0x3]  ;;  %v2552_v32 = vld [vmem:[%s6693_s0 + $0xa] sm:$0x3]  ;;  %v4468_v33 = vpack.c.bf16 %v2588_v29, %v2587_v28  ;;  %v2589_v36 = vld [vmem:[%s6694_s1 + $0x390] sm:$0xff]  ;;  %v4447_v38 = vpack.c.bf16 %v2573_v35, %v2572_v34 }
  0x52   :  { %4431 = vmatprep.subr.bf16.mxu1 %v4975_v3  ;;  %v2590_v37 = vld [vmem:[%s6694_s1 + $0x398] sm:$0xff]  ;;  %v2574_v40 = vld [vmem:[%s6694_s1 + $0x320] sm:$0xff]  ;;  %v2575_v41 = vld [vmem:[%s6694_s1 + $0x328] sm:$0xff] }
  0x53   :  { %v4471_v39 = vpack.c.bf16 %v2590_v37, %v2589_v36  ;;  %v2591_v42 = vld [vmem:[%s6694_s1 + $0x3a0] sm:$0xff]  ;;  %v2592_v43 = vld [vmem:[%s6694_s1 + $0x3a8] sm:$0xff]  ;;  %v4450_v44 = vpack.c.bf16 %v2575_v41, %v2574_v40  ;;  %v2576_v46 = vld [vmem:[%s6694_s1 + $0x330] sm:$0xff] }
  0x54   :  { %4409 = vmatpush3.bf16.msra.mxu0 %v4408_v5  ;;  %v4474_v45 = vpack.c.bf16 %v2592_v43, %v2591_v42  ;;  %v2577_v47 = vld [vmem:[%s6694_s1 + $0x338] sm:$0xff]  ;;  %v2593_v48 = vld [vmem:[%s6694_s1 + $0x3b0] sm:$0xff]  ;;  %v2578_v52 = vld [vmem:[%s6694_s1 + $0x340] sm:$0xff] }
  0x55   :  { %4433 = vmatpush3.bf16.msra.mxu1 %v4432_v6  ;;  %4410 = vmatprep.subr.bf16.mxu0 %v4975_v3  ;;  %v2594_v49 = vld [vmem:[%s6694_s1 + $0x3b8] sm:$0xff]  ;;  %v4453_v50 = vpack.c.bf16 %v2577_v47, %v2576_v46  ;;  %v2579_v53 = vld [vmem:[%s6694_s1 + $0x348] sm:$0xff]  ;;  %v2595_v54 = vld [vmem:[%s6694_s1 + $0x3c0] sm:$0xff] }
  0x56   :  { %4434 = vmatprep.subr.bf16.mxu1 %v4975_v3  ;;  %v4477_v51 = vpack.c.bf16 %v2594_v49, %v2593_v48  ;;  %v2596_v55 = vld [vmem:[%s6694_s1 + $0x3c8] sm:$0xff]  ;;  %v4456_v56 = vpack.c.bf16 %v2579_v53, %v2578_v52  ;;  %v2580_v58 = vld [vmem:[%s6694_s1 + $0x350] sm:$0xff]  ;;  %v2581_v59 = vld [vmem:[%s6694_s1 + $0x358] sm:$0xff] }
  0x57   :  { %v4480_v57 = vpack.c.bf16 %v2596_v55, %v2595_v54  ;;  %v2597_v60 = vld [vmem:[%s6694_s1 + $0x3d0] sm:$0xff]  ;;  %v2598_v61 = vld [vmem:[%s6694_s1 + $0x3d8] sm:$0xff]  ;;  %v4459_v62 = vpack.c.bf16 %v2581_v59, %v2580_v58  ;;  %v2582_v0 = vld [vmem:[%s6694_s1 + $0x360] sm:$0xff] }
  0x58   :  { %4412 = vmatpush3.bf16.msra.mxu0 %v4411_v12  ;;  %v4483_v63 = vpack.c.bf16 %v2598_v61, %v2597_v60  ;;  %v2583_v1 = vld [vmem:[%s6694_s1 + $0x368] sm:$0xff]  ;;  %v2599_v2 = vld [vmem:[%s6694_s1 + $0x3e0] sm:$0xff]  ;;  %v2584_v7 = vld [vmem:[%s6694_s1 + $0x370] sm:$0xff] }
  0x59   :  { %4436 = vmatpush3.bf16.msra.mxu1 %v4435_v13  ;;  %4413 = vmatprep.subr.bf16.mxu0 %v4975_v3  ;;  %v2600_v4 = vld [vmem:[%s6694_s1 + $0x3e8] sm:$0xff]  ;;  %v4462_v5 = vpack.c.bf16 %v2583_v1, %v2582_v0  ;;  %v2585_v8 = vld [vmem:[%s6694_s1 + $0x378] sm:$0xff]  ;;  %v2601_v9 = vld [vmem:[%s6694_s1 + $0x3f0] sm:$0xff] }
  0x5a   :  { %4437 = vmatprep.subr.bf16.mxu1 %v4975_v3  ;;  %v4486_v6 = vpack.c.bf16 %v2600_v4, %v2599_v2  ;;  %v2602_v10 = vld [vmem:[%s6694_s1 + $0x3f8] sm:$0xff]  ;;  %v4465_v12 = vpack.c.bf16 %v2585_v8, %v2584_v7  ;;  %v2604_v14 = vld [vmem:[%s6694_s1 + $0x400] sm:$0xff]  ;;  %v2605_v15 = vld [vmem:[%s6694_s1 + $0x408] sm:$0xff] }
  0x5b   :  { %v4489_v13 = vpack.c.bf16 %v2602_v10, %v2601_v9  ;;  %v2621_v16 = vld [vmem:[%s6694_s1 + $0x480] sm:$0xff]  ;;  %v2622_v17 = vld [vmem:[%s6694_s1 + $0x488] sm:$0xff]  ;;  %v2606_v22 = vld [vmem:[%s6694_s1 + $0x410] sm:$0xff] }
  0x5c   :  { %4415 = vmatpush3.bf16.msra.mxu0 %v4414_v18  ;;  %v2569_v18 = vld [vmem:[%s6693_s0 + $0xc] sm:$0x3]  ;;  %v2586_v20 = vld [vmem:[%s6693_s0 + $0xe] sm:$0x3]  ;;  %v4516_v21 = vpack.c.bf16 %v2622_v17, %v2621_v16  ;;  %v2607_v23 = vld [vmem:[%s6694_s1 + $0x418] sm:$0xff] }
  0x5d   :  { %4439 = vmatpush3.bf16.msra.mxu1 %v4438_v19  ;;  %4416 = vmatprep.subr.bf16.mxu0 %v4975_v3  ;;  %v4492_v19 = vpack.c.bf16 %v2605_v15, %v2604_v14  ;;  %v4495_v26 = vpack.c.bf16 %v2607_v23, %v2606_v22  ;;  %v2608_v28 = vld [vmem:[%s6694_s1 + $0x420] sm:$0xff]  ;;  %v2609_v29 = vld [vmem:[%s6694_s1 + $0x428] sm:$0xff]  ;;  %v2610_v34 = vld [vmem:[%s6694_s1 + $0x430] sm:$0xff] }
  0x5e   :  { %4440 = vmatprep.subr.bf16.mxu1 %v4975_v3  ;;  %v2611_v35 = vld [vmem:[%s6694_s1 + $0x438] sm:$0xff]  ;;  %v2627_v36 = vld [vmem:[%s6694_s1 + $0x4b0] sm:$0xff]  ;;  %v2612_v40 = vld [vmem:[%s6694_s1 + $0x440] sm:$0xff] }
  0x5f   :  { %v2628_v37 = vld [vmem:[%s6694_s1 + $0x4b8] sm:$0xff]  ;;  %v2613_v41 = vld [vmem:[%s6694_s1 + $0x448] sm:$0xff]  ;;  %v2629_v42 = vld [vmem:[%s6694_s1 + $0x4c0] sm:$0xff] }
  0x60   :  { %4418 = vmatpush3.bf16.msra.mxu0 %v4417_v24  ;;  %v2623_v24 = vld [vmem:[%s6694_s1 + $0x490] sm:$0xff]  ;;  %v2630_v43 = vld [vmem:[%s6694_s1 + $0x4c8] sm:$0xff]  ;;  %v2615_v47 = vld [vmem:[%s6694_s1 + $0x458] sm:$0xff] }
  0x61   :  { %4442 = vmatpush3.bf16.msra.mxu1 %v4441_v25  ;;  %4443 = vmatprep.subr.bf16.mxu0 %v4975_v3  ;;  %v2624_v25 = vld [vmem:[%s6694_s1 + $0x498] sm:$0xff]  ;;  %v2614_v46 = vld [vmem:[%s6694_s1 + $0x450] sm:$0xff]  ;;  %v2616_v52 = vld [vmem:[%s6694_s1 + $0x460] sm:$0xff] }
  0x62   :  { %4467 = vmatprep.subr.bf16.mxu1 %v4975_v3  ;;  %v4519_v27 = vpack.c.bf16 %v2624_v25, %v2623_v24  ;;  %v2631_v48 = vld [vmem:[%s6694_s1 + $0x4d0] sm:$0xff]  ;;  %v2632_v49 = vld [vmem:[%s6694_s1 + $0x4d8] sm:$0xff]  ;;  %v2617_v53 = vld [vmem:[%s6694_s1 + $0x468] sm:$0xff] }
  0x63   :  { %3527 = vmatmul.mubr.f32.vlgmr.msra.gmra.mrb[4].mxu0 %v2535_v30  ;;  %v2625_v30 = vld [vmem:[%s6694_s1 + $0x4a0] sm:$0xff]  ;;  %v2634_v55 = vld [vmem:[%s6694_s1 + $0x4e8] sm:$0xff]  ;;  %v2618_v58 = vld [vmem:[%s6694_s1 + $0x470] sm:$0xff] }
  0x64   :  { %4445 = vmatpush3.bf16.msra.mxu0 %v4444_v31  ;;  %3562 = vmatmul.mubr.f32.vlgmr.msra.gmra.mrb[4].mxu1 %v2552_v32  ;;  %v2626_v31 = vld [vmem:[%s6694_s1 + $0x4a8] sm:$0xff]  ;;  %v4498_v32 = vpack.c.bf16 %v2609_v29, %v2608_v28  ;;  %v2633_v54 = vld [vmem:[%s6694_s1 + $0x4e0] sm:$0xff]  ;;  %v2619_v59 = vld [vmem:[%s6694_s1 + $0x478] sm:$0xff] }
  0x65   :  { %4469 = vmatpush3.bf16.msra.mxu1 %v4468_v33  ;;  %4446 = vmatprep.subr.bf16.mxu0 %v4975_v3  ;;  %v4522_v33 = vpack.c.bf16 %v2626_v31, %v2625_v30  ;;  %v2635_v60 = vld [vmem:[%s6694_s1 + $0x4f0] sm:$0xff]  ;;  %v2636_v61 = vld [vmem:[%s6694_s1 + $0x4f8] sm:$0xff]  ;;  %v2638_v0 = vld [vmem:[%s6694_s1 + $0x500] sm:$0xff] }
  0x66   :  { %4470 = vmatprep.subr.bf16.mxu1 %v4975_v3  ;;  %3596 = vmatprep.mubr.msk.f32.mxu0 %vm4976_vm0, %v4977_v11  ;;  %v2639_v1 = vld [vmem:[%s6694_s1 + $0x508] sm:$0xff]  ;;  %v2655_v2 = vld [vmem:[%s6694_s1 + $0x580] sm:$0xff]  ;;  %v2620_v7 = vld [vmem:[%s6693_s0 + $0x12] sm:$0x3] }
  0x67   :  { %3631 = vmatprep.mubr.msk.f32.mxu1 %vm4976_vm0, %v4977_v11  ;;  %v2656_v4 = vld [vmem:[%s6694_s1 + $0x588] sm:$0xff]  ;;  %v2640_v9 = vld [vmem:[%s6694_s1 + $0x510] sm:$0xff]  ;;  %v2641_v10 = vld [vmem:[%s6694_s1 + $0x518] sm:$0xff] }
  0x68   :  { %4448 = vmatpush3.bf16.msra.mxu0 %v4447_v38  ;;  %v4501_v38 = vpack.c.bf16 %v2611_v35, %v2610_v34  ;;  %v4564_v8 = vpack.c.bf16 %v2656_v4, %v2655_v2  ;;  %v4543_v14 = vpack.c.bf16 %v2641_v10, %v2640_v9  ;;  %v2642_v16 = vld [vmem:[%s6694_s1 + $0x520] sm:$0xff]  ;;  %v2643_v17 = vld [vmem:[%s6694_s1 + $0x528] sm:$0xff]  ;;  %v2644_v22 = vld [vmem:[%s6694_s1 + $0x530] sm:$0xff] }
  0x69   :  { %4472 = vmatpush3.bf16.msra.mxu1 %v4471_v39  ;;  %4449 = vmatprep.subr.bf16.mxu0 %v4975_v3  ;;  %v4525_v39 = vpack.c.bf16 %v2628_v37, %v2627_v36  ;;  %v2645_v23 = vld [vmem:[%s6694_s1 + $0x538] sm:$0xff]  ;;  %v2661_v24 = vld [vmem:[%s6694_s1 + $0x5b0] sm:$0xff]  ;;  %v2646_v28 = vld [vmem:[%s6694_s1 + $0x540] sm:$0xff] }
  0x6a   :  { %4473 = vmatprep.subr.bf16.mxu1 %v4975_v3  ;;  %v2662_v25 = vld [vmem:[%s6694_s1 + $0x5b8] sm:$0xff]  ;;  %v2647_v29 = vld [vmem:[%s6694_s1 + $0x548] sm:$0xff]  ;;  %v2663_v30 = vld [vmem:[%s6694_s1 + $0x5c0] sm:$0xff] }
  0x6b   :  { %v2664_v31 = vld [vmem:[%s6694_s1 + $0x5c8] sm:$0xff]  ;;  %v2648_v34 = vld [vmem:[%s6694_s1 + $0x550] sm:$0xff]  ;;  %v2649_v35 = vld [vmem:[%s6694_s1 + $0x558] sm:$0xff] }
  0x6c   :  { %4451 = vmatpush3.bf16.msra.mxu0 %v4450_v44  ;;  %v4504_v44 = vpack.c.bf16 %v2613_v41, %v2612_v40  ;;  %v2665_v36 = vld [vmem:[%s6694_s1 + $0x5d0] sm:$0xff]  ;;  %v2666_v37 = vld [vmem:[%s6694_s1 + $0x5d8] sm:$0xff]  ;;  %v2650_v40 = vld [vmem:[%s6694_s1 + $0x560] sm:$0xff] }
  0x6d   :  { %4475 = vmatpush3.bf16.msra.mxu1 %v4474_v45  ;;  %4452 = vmatprep.subr.bf16.mxu0 %v4975_v3  ;;  %v4528_v45 = vpack.c.bf16 %v2630_v43, %v2629_v42  ;;  %v2651_v41 = vld [vmem:[%s6694_s1 + $0x568] sm:$0xff]  ;;  %v2667_v42 = vld [vmem:[%s6694_s1 + $0x5e0] sm:$0xff]  ;;  %v2678_v9 = vld [vmem:[%s6694_s1 + $0x630] sm:$0xff] }
  0x6e   :  { %4476 = vmatprep.subr.bf16.mxu1 %v4975_v3  ;;  %v2668_v43 = vld [vmem:[%s6694_s1 + $0x5e8] sm:$0xff]  ;;  %v2676_v2 = vld [vmem:[%s6694_s1 + $0x620] sm:$0xff]  ;;  %v2679_v10 = vld [vmem:[%s6694_s1 + $0x638] sm:$0xff] }
  0x6f   :  { %v2677_v4 = vld [vmem:[%s6694_s1 + $0x628] sm:$0xff] }
  0x70   :  { %4454 = vmatpush3.bf16.msra.mxu0 %v4453_v50  ;;  %v4507_v50 = vpack.c.bf16 %v2615_v47, %v2614_v46  ;;  %v2652_v46 = vld [vmem:[%s6694_s1 + $0x570] sm:$0xff]  ;;  %v2653_v47 = vld [vmem:[%s6694_s1 + $0x578] sm:$0xff] }
  0x71   :  { %4478 = vmatpush3.bf16.msra.mxu1 %v4477_v51  ;;  %4455 = vmatprep.subr.bf16.mxu0 %v4975_v3  ;;  %v4531_v51 = vpack.c.bf16 %v2632_v49, %v2631_v48  ;;  %v2669_v48 = vld [vmem:[%s6694_s1 + $0x5f0] sm:$0xff]  ;;  %v2670_v49 = vld [vmem:[%s6694_s1 + $0x5f8] sm:$0xff] }
  0x72   :  { %4479 = vmatprep.subr.bf16.mxu1 %v4975_v3 }
  0x74   :  { %4457 = vmatpush3.bf16.msra.mxu0 %v4456_v56  ;;  %v4510_v56 = vpack.c.bf16 %v2617_v53, %v2616_v52  ;;  %v2672_v52 = vld [vmem:[%s6694_s1 + $0x600] sm:$0xff]  ;;  %v2673_v53 = vld [vmem:[%s6694_s1 + $0x608] sm:$0xff] }
  0x75   :  { %4481 = vmatpush3.bf16.msra.mxu1 %v4480_v57  ;;  %4458 = vmatprep.subr.bf16.mxu0 %v4975_v3  ;;  %v4534_v57 = vpack.c.bf16 %v2634_v55, %v2633_v54  ;;  %v2689_v54 = vld [vmem:[%s6694_s1 + $0x680] sm:$0xff]  ;;  %v2690_v55 = vld [vmem:[%s6694_s1 + $0x688] sm:$0xff] }
  0x76   :  { %4482 = vmatprep.subr.bf16.mxu1 %v4975_v3 }
  0x78   :  { %4460 = vmatpush3.bf16.msra.mxu0 %v4459_v62  ;;  %v4513_v62 = vpack.c.bf16 %v2619_v59, %v2618_v58  ;;  %v2654_v58 = vld [vmem:[%s6693_s0 + $0x16] sm:$0x3]  ;;  %v4612_v59 = vpack.c.bf16 %v2690_v55, %v2689_v54  ;;  %v2710_v54 = vld [vmem:[%s6694_s1 + $0x720] sm:$0xff]  ;;  %v2711_v55 = vld [vmem:[%s6694_s1 + $0x728] sm:$0xff] }
  0x79   :  { %4484 = vmatpush3.bf16.msra.mxu1 %v4483_v63  ;;  %4461 = vmatprep.subr.bf16.mxu0 %v4975_v3  ;;  %v4537_v63 = vpack.c.bf16 %v2636_v61, %v2635_v60  ;;  %v2674_v60 = vld [vmem:[%s6694_s1 + $0x610] sm:$0xff]  ;;  %v2675_v61 = vld [vmem:[%s6694_s1 + $0x618] sm:$0xff] }
  0x7a   :  { %4485 = vmatprep.subr.bf16.mxu1 %v4975_v3 }
  0x7c   :  { %4463 = vmatpush3.bf16.msra.mxu0 %v4462_v5  ;;  %v2603_v5 = vld [vmem:[%s6693_s0 + $0x10] sm:$0x3] }
  0x7d   :  { %4487 = vmatpush3.bf16.msra.mxu1 %v4486_v6  ;;  %4464 = vmatprep.subr.bf16.mxu0 %v4975_v3  ;;  %v4540_v6 = vpack.c.bf16 %v2639_v1, %v2638_v0  ;;  %v4591_v0 = vpack.c.bf16 %v2675_v61, %v2674_v60  ;;  %v2712_v60 = vld [vmem:[%s6694_s1 + $0x730] sm:$0xff]  ;;  %v2713_v61 = vld [vmem:[%s6694_s1 + $0x738] sm:$0xff] }
  0x7e   :  { %4488 = vmatprep.subr.bf16.mxu1 %v4975_v3 }
  0x80   :  { %4466 = vmatpush3.bf16.msra.mxu0 %v4465_v12  ;;  %v2657_v12 = vld [vmem:[%s6694_s1 + $0x590] sm:$0xff] }
  0x81   :  { %4490 = vmatpush3.bf16.msra.mxu1 %v4489_v13  ;;  %4491 = vmatprep.subr.bf16.mxu0 %v4975_v3  ;;  %v2658_v13 = vld [vmem:[%s6694_s1 + $0x598] sm:$0xff] }
  0x82   :  { %4515 = vmatprep.subr.bf16.mxu1 %v4975_v3  ;;  %v4567_v15 = vpack.c.bf16 %v2658_v13, %v2657_v12  ;;  %v2695_v12 = vld [vmem:[%s6694_s1 + $0x6b0] sm:$0xff]  ;;  %v2696_v13 = vld [vmem:[%s6694_s1 + $0x6b8] sm:$0xff] }
  0x83   :  { %3597 = vmatmul.mubr.f32.vlgmr.msra.gmra.mrb[6].mxu0 %v2569_v18  ;;  %v2659_v18 = vld [vmem:[%s6694_s1 + $0x5a0] sm:$0xff] }
  0x84   :  { %4493 = vmatpush3.bf16.msra.mxu0 %v4492_v19  ;;  %3632 = vmatmul.mubr.f32.vlgmr.msra.gmra.mrb[6].mxu1 %v2586_v20  ;;  %v2660_v19 = vld [vmem:[%s6694_s1 + $0x5a8] sm:$0xff]  ;;  %v4546_v20 = vpack.c.bf16 %v2643_v17, %v2642_v16  ;;  %v2680_v16 = vld [vmem:[%s6694_s1 + $0x640] sm:$0xff] }
  0x85   :  { %4517 = vmatpush3.bf16.msra.mxu1 %v4516_v21  ;;  %4494 = vmatprep.subr.bf16.mxu0 %v4975_v3  ;;  %v4570_v21 = vpack.c.bf16 %v2660_v19, %v2659_v18  ;;  %v2681_v17 = vld [vmem:[%s6694_s1 + $0x648] sm:$0xff]  ;;  %v2697_v18 = vld [vmem:[%s6694_s1 + $0x6c0] sm:$0xff] }
  0x86   :  { %4518 = vmatprep.subr.bf16.mxu1 %v4975_v3  ;;  %3666 = vmatprep.mubr.msk.f32.mxu0 %vm4976_vm0, %v4977_v11  ;;  %v2698_v19 = vld [vmem:[%s6694_s1 + $0x6c8] sm:$0xff] }
  0x87   :  { %3701 = vmatprep.mubr.msk.f32.mxu1 %vm4976_vm0, %v4977_v11 }
  0x88   :  { %4496 = vmatpush3.bf16.msra.mxu0 %v4495_v26  ;;  %v4549_v26 = vpack.c.bf16 %v2645_v23, %v2644_v22  ;;  %v2682_v22 = vld [vmem:[%s6694_s1 + $0x650] sm:$0xff]  ;;  %v2683_v23 = vld [vmem:[%s6694_s1 + $0x658] sm:$0xff] }
  0x89   :  { %4520 = vmatpush3.bf16.msra.mxu1 %v4519_v27  ;;  %4497 = vmatprep.subr.bf16.mxu0 %v4975_v3  ;;  %v4573_v27 = vpack.c.bf16 %v2662_v25, %v2661_v24  ;;  %v2699_v24 = vld [vmem:[%s6694_s1 + $0x6d0] sm:$0xff]  ;;  %v2700_v25 = vld [vmem:[%s6694_s1 + $0x6d8] sm:$0xff] }
  0x8a   :  { %4521 = vmatprep.subr.bf16.mxu1 %v4975_v3 }
  0x8c   :  { %4499 = vmatpush3.bf16.msra.mxu0 %v4498_v32  ;;  %v4552_v32 = vpack.c.bf16 %v2647_v29, %v2646_v28  ;;  %v2684_v28 = vld [vmem:[%s6694_s1 + $0x660] sm:$0xff]  ;;  %v2685_v29 = vld [vmem:[%s6694_s1 + $0x668] sm:$0xff] }
  0x8d   :  { %4523 = vmatpush3.bf16.msra.mxu1 %v4522_v33  ;;  %4500 = vmatprep.subr.bf16.mxu0 %v4975_v3  ;;  %v4576_v33 = vpack.c.bf16 %v2664_v31, %v2663_v30  ;;  %v2701_v30 = vld [vmem:[%s6694_s1 + $0x6e0] sm:$0xff]  ;;  %v2702_v31 = vld [vmem:[%s6694_s1 + $0x6e8] sm:$0xff] }
  0x8e   :  { %4524 = vmatprep.subr.bf16.mxu1 %v4975_v3 }
  0x90   :  { %4502 = vmatpush3.bf16.msra.mxu0 %v4501_v38  ;;  %v4555_v38 = vpack.c.bf16 %v2649_v35, %v2648_v34  ;;  %v2686_v34 = vld [vmem:[%s6694_s1 + $0x670] sm:$0xff]  ;;  %v2687_v35 = vld [vmem:[%s6694_s1 + $0x678] sm:$0xff] }
  0x91   :  { %4526 = vmatpush3.bf16.msra.mxu1 %v4525_v39  ;;  %4503 = vmatprep.subr.bf16.mxu0 %v4975_v3  ;;  %v4579_v39 = vpack.c.bf16 %v2666_v37, %v2665_v36  ;;  %v2703_v36 = vld [vmem:[%s6694_s1 + $0x6f0] sm:$0xff]  ;;  %v2704_v37 = vld [vmem:[%s6694_s1 + $0x6f8] sm:$0xff] }
  0x92   :  { %4527 = vmatprep.subr.bf16.mxu1 %v4975_v3 }
  0x94   :  { %4505 = vmatpush3.bf16.msra.mxu0 %v4504_v44  ;;  %v4558_v44 = vpack.c.bf16 %v2651_v41, %v2650_v40  ;;  %v2706_v40 = vld [vmem:[%s6694_s1 + $0x700] sm:$0xff]  ;;  %v2707_v41 = vld [vmem:[%s6694_s1 + $0x708] sm:$0xff] }
  0x95   :  { %4529 = vmatpush3.bf16.msra.mxu1 %v4528_v45  ;;  %4506 = vmatprep.subr.bf16.mxu0 %v4975_v3  ;;  %v4582_v45 = vpack.c.bf16 %v2668_v43, %v2667_v42  ;;  %v2723_v42 = vld [vmem:[%s6694_s1 + $0x780] sm:$0xff]  ;;  %v2724_v43 = vld [vmem:[%s6694_s1 + $0x788] sm:$0xff] }
  0x96   :  { %4530 = vmatprep.subr.bf16.mxu1 %v4975_v3 }
  0x98   :  { %4508 = vmatpush3.bf16.msra.mxu0 %v4507_v50  ;;  %v4561_v50 = vpack.c.bf16 %v2653_v47, %v2652_v46  ;;  %v2688_v46 = vld [vmem:[%s6693_s0 + $0x1a] sm:$0x3]  ;;  %v4660_v47 = vpack.c.bf16 %v2724_v43, %v2723_v42  ;;  %v2759_v43 = vld [vmem:[%s6694_s1 + $0x890] sm:$0xff] }
  0x99   :  { %4532 = vmatpush3.bf16.msra.mxu1 %v4531_v51  ;;  %4509 = vmatprep.subr.bf16.mxu0 %v4975_v3  ;;  %v4585_v51 = vpack.c.bf16 %v2670_v49, %v2669_v48  ;;  %v2708_v48 = vld [vmem:[%s6694_s1 + $0x710] sm:$0xff]  ;;  %v2709_v49 = vld [vmem:[%s6694_s1 + $0x718] sm:$0xff] }
  0x9a   :  { %4533 = vmatprep.subr.bf16.mxu1 %v4975_v3  ;;  %v2743_v42 = vld [vmem:[%s6694_s1 + $0x818] sm:$0xff] }
  0x9c   :  { %4511 = vmatpush3.bf16.msra.mxu0 %v4510_v56  ;;  %v2637_v56 = vld [vmem:[%s6693_s0 + $0x14] sm:$0x3] }
  0x9d   :  { %4535 = vmatpush3.bf16.msra.mxu1 %v4534_v57  ;;  %4512 = vmatprep.subr.bf16.mxu0 %v4975_v3  ;;  %v4588_v57 = vpack.c.bf16 %v2673_v53, %v2672_v52  ;;  %v4639_v52 = vpack.c.bf16 %v2709_v49, %v2708_v48  ;;  %v2745_v48 = vld [vmem:[%s6694_s1 + $0x828] sm:$0xff]  ;;  %v2761_v49 = vld [vmem:[%s6694_s1 + $0x8a0] sm:$0xff] }
  0x9e   :  { %4536 = vmatprep.subr.bf16.mxu1 %v4975_v3 }
  0xa0   :  { %4514 = vmatpush3.bf16.msra.mxu0 %v4513_v62  ;;  %v2691_v62 = vld [vmem:[%s6694_s1 + $0x690] sm:$0xff] }
  0xa1   :  { %4538 = vmatpush3.bf16.msra.mxu1 %v4537_v63  ;;  %4539 = vmatprep.subr.bf16.mxu0 %v4975_v3  ;;  %v2692_v63 = vld [vmem:[%s6694_s1 + $0x698] sm:$0xff] }
  0xa2   :  { %4563 = vmatprep.subr.bf16.mxu1 %v4975_v3  ;;  %v4615_v1 = vpack.c.bf16 %v2692_v63, %v2691_v62  ;;  %v2729_v62 = vld [vmem:[%s6694_s1 + $0x7b0] sm:$0xff]  ;;  %v2730_v63 = vld [vmem:[%s6694_s1 + $0x7b8] sm:$0xff] }
  0xa3   :  { %3667 = vmatmul.mubr.f32.vlgmr.msra.gmra.mrb[8].mxu0 %v2603_v5  ;;  %v2693_v5 = vld [vmem:[%s6694_s1 + $0x6a0] sm:$0xff] }
  0xa4   :  { %4541 = vmatpush3.bf16.msra.mxu0 %v4540_v6  ;;  %3702 = vmatmul.mubr.f32.vlgmr.msra.gmra.mrb[8].mxu1 %v2620_v7  ;;  %v2694_v6 = vld [vmem:[%s6694_s1 + $0x6a8] sm:$0xff]  ;;  %v4594_v7 = vpack.c.bf16 %v2677_v4, %v2676_v2  ;;  %v2714_v2 = vld [vmem:[%s6694_s1 + $0x740] sm:$0xff] }
  0xa5   :  { %4565 = vmatpush3.bf16.msra.mxu1 %v4564_v8  ;;  %4542 = vmatprep.subr.bf16.mxu0 %v4975_v3  ;;  %v4618_v8 = vpack.c.bf16 %v2694_v6, %v2693_v5  ;;  %v2715_v4 = vld [vmem:[%s6694_s1 + $0x748] sm:$0xff]  ;;  %v2731_v5 = vld [vmem:[%s6694_s1 + $0x7c0] sm:$0xff] }
  0xa6   :  { %4566 = vmatprep.subr.bf16.mxu1 %v4975_v3  ;;  %3736 = vmatprep.mubr.msk.f32.mxu0 %vm4976_vm0, %v4977_v11  ;;  %v2732_v6 = vld [vmem:[%s6694_s1 + $0x7c8] sm:$0xff] }
  0xa7   :  { %3771 = vmatprep.mubr.msk.f32.mxu1 %vm4976_vm0, %v4977_v11 }
  0xa8   :  { %4544 = vmatpush3.bf16.msra.mxu0 %v4543_v14  ;;  %v4597_v14 = vpack.c.bf16 %v2679_v10, %v2678_v9  ;;  %v2716_v9 = vld [vmem:[%s6694_s1 + $0x750] sm:$0xff]  ;;  %v2717_v10 = vld [vmem:[%s6694_s1 + $0x758] sm:$0xff] }
  0xa9   :  { %4568 = vmatpush3.bf16.msra.mxu1 %v4567_v15  ;;  %4545 = vmatprep.subr.bf16.mxu0 %v4975_v3  ;;  %v4621_v15 = vpack.c.bf16 %v2696_v13, %v2695_v12  ;;  %v2733_v12 = vld [vmem:[%s6694_s1 + $0x7d0] sm:$0xff]  ;;  %v2734_v13 = vld [vmem:[%s6694_s1 + $0x7d8] sm:$0xff] }
  0xaa   :  { %4569 = vmatprep.subr.bf16.mxu1 %v4975_v3 }
  0xac   :  { %4547 = vmatpush3.bf16.msra.mxu0 %v4546_v20  ;;  %v4600_v20 = vpack.c.bf16 %v2681_v17, %v2680_v16  ;;  %v2718_v16 = vld [vmem:[%s6694_s1 + $0x760] sm:$0xff]  ;;  %v2719_v17 = vld [vmem:[%s6694_s1 + $0x768] sm:$0xff] }
  0xad   :  { %4571 = vmatpush3.bf16.msra.mxu1 %v4570_v21  ;;  %4548 = vmatprep.subr.bf16.mxu0 %v4975_v3  ;;  %v4624_v21 = vpack.c.bf16 %v2698_v19, %v2697_v18  ;;  %v2735_v19 = vld [vmem:[%s6694_s1 + $0x7e0] sm:$0xff] }
  0xae   :  { %4572 = vmatprep.subr.bf16.mxu1 %v4975_v3 }
  0xb0   :  { %4550 = vmatpush3.bf16.msra.mxu0 %v4549_v26  ;;  %v4603_v26 = vpack.c.bf16 %v2683_v23, %v2682_v22 }
  0xb1   :  { %4574 = vmatpush3.bf16.msra.mxu1 %v4573_v27  ;;  %4551 = vmatprep.subr.bf16.mxu0 %v4975_v3  ;;  %v4627_v27 = vpack.c.bf16 %v2700_v25, %v2699_v24  ;;  %v4654_v24 = vpack.c.bf16 %v2719_v17, %v2718_v16 }
  0xb2   :  { %4575 = vmatprep.subr.bf16.mxu1 %v4975_v3 }
  0xb4   :  { %4553 = vmatpush3.bf16.msra.mxu0 %v4552_v32  ;;  %v4606_v32 = vpack.c.bf16 %v2685_v29, %v2684_v28  ;;  %v2721_v28 = vld [vmem:[%s6694_s1 + $0x778] sm:$0xff]  ;;  %v2737_v29 = vld [vmem:[%s6694_s1 + $0x7f0] sm:$0xff] }
  0xb5   :  { %4577 = vmatpush3.bf16.msra.mxu1 %v4576_v33  ;;  %4554 = vmatprep.subr.bf16.mxu0 %v4975_v3  ;;  %v4630_v33 = vpack.c.bf16 %v2702_v31, %v2701_v30  ;;  %v2738_v30 = vld [vmem:[%s6694_s1 + $0x7f8] sm:$0xff] }
  0xb6   :  { %4578 = vmatprep.subr.bf16.mxu1 %v4975_v3 }
  0xb8   :  { %4556 = vmatpush3.bf16.msra.mxu0 %v4555_v38  ;;  %v4609_v38 = vpack.c.bf16 %v2687_v35, %v2686_v34  ;;  %v2741_v34 = vld [vmem:[%s6694_s1 + $0x808] sm:$0xff]  ;;  %v2757_v35 = vld [vmem:[%s6694_s1 + $0x880] sm:$0xff] }
  0xb9   :  { %4580 = vmatpush3.bf16.msra.mxu1 %v4579_v39  ;;  %4557 = vmatprep.subr.bf16.mxu0 %v4975_v3  ;;  %v4633_v39 = vpack.c.bf16 %v2704_v37, %v2703_v36  ;;  %v2758_v36 = vld [vmem:[%s6694_s1 + $0x888] sm:$0xff]  ;;  %v2705_v37 = vld [vmem:[%s6693_s0 + $0x1c] sm:$0x3] }
  0xba   :  { %4581 = vmatprep.subr.bf16.mxu1 %v4975_v3 }
  0xbc   :  { %4559 = vmatpush3.bf16.msra.mxu0 %v4558_v44  ;;  %v2671_v44 = vld [vmem:[%s6693_s0 + $0x18] sm:$0x3] }
  0xbd   :  { %4583 = vmatpush3.bf16.msra.mxu1 %v4582_v45  ;;  %4560 = vmatprep.subr.bf16.mxu0 %v4975_v3  ;;  %v4636_v45 = vpack.c.bf16 %v2707_v41, %v2706_v40  ;;  %v4708_v40 = vpack.c.bf16 %v2758_v36, %v2757_v35  ;;  %v2742_v41 = vld [vmem:[%s6694_s1 + $0x810] sm:$0xff]  ;;  %v2777_v36 = vld [vmem:[%s6694_s1 + $0x918] sm:$0xff] }
  0xbe   :  { %4584 = vmatprep.subr.bf16.mxu1 %v4975_v3  ;;  %v2776_v35 = vld [vmem:[%s6694_s1 + $0x910] sm:$0xff] }
  0xc0   :  { %4562 = vmatpush3.bf16.msra.mxu0 %v4561_v50  ;;  %v2725_v50 = vld [vmem:[%s6694_s1 + $0x790] sm:$0xff] }
  0xc1   :  { %4586 = vmatpush3.bf16.msra.mxu1 %v4585_v51  ;;  %4587 = vmatprep.subr.bf16.mxu0 %v4975_v3  ;;  %v2726_v51 = vld [vmem:[%s6694_s1 + $0x798] sm:$0xff] }
  0xc2   :  { %4611 = vmatprep.subr.bf16.mxu1 %v4975_v3  ;;  %v4663_v53 = vpack.c.bf16 %v2726_v51, %v2725_v50  ;;  %v2762_v50 = vld [vmem:[%s6694_s1 + $0x8a8] sm:$0xff] }
  0xc3   :  { %3737 = vmatmul.mubr.f32.vlgmr.msra.gmra.mrb[10].mxu0 %v2637_v56  ;;  %v2727_v56 = vld [vmem:[%s6694_s1 + $0x7a0] sm:$0xff] }
  0xc4   :  { %4589 = vmatpush3.bf16.msra.mxu0 %v4588_v57  ;;  %3772 = vmatmul.mubr.f32.vlgmr.msra.gmra.mrb[10].mxu1 %v2654_v58  ;;  %v2728_v57 = vld [vmem:[%s6694_s1 + $0x7a8] sm:$0xff]  ;;  %v4642_v58 = vpack.c.bf16 %v2711_v55, %v2710_v54  ;;  %v2747_v54 = vld [vmem:[%s6694_s1 + $0x838] sm:$0xff]  ;;  %v2763_v55 = vld [vmem:[%s6694_s1 + $0x8b0] sm:$0xff] }
  0xc5   :  { %4613 = vmatpush3.bf16.msra.mxu1 %v4612_v59  ;;  %4590 = vmatprep.subr.bf16.mxu0 %v4975_v3  ;;  %v4666_v59 = vpack.c.bf16 %v2728_v57, %v2727_v56  ;;  %v2764_v56 = vld [vmem:[%s6694_s1 + $0x8b8] sm:$0xff] }
  0xc6   :  { %4614 = vmatprep.subr.bf16.mxu1 %v4975_v3  ;;  %3806 = vmatprep.mubr.msk.f32.mxu0 %vm4976_vm0, %v4977_v11 }
  0xc7   :  { %3841 = vmatprep.mubr.msk.f32.mxu1 %vm4976_vm0, %v4977_v11 }
  0xc8   :  { %4592 = vmatpush3.bf16.msra.mxu0 %v4591_v0  ;;  %v4645_v0 = vpack.c.bf16 %v2713_v61, %v2712_v60  ;;  %v2749_v60 = vld [vmem:[%s6694_s1 + $0x848] sm:$0xff]  ;;  %v2765_v61 = vld [vmem:[%s6694_s1 + $0x8c0] sm:$0xff] }
  0xc9   :  { %4616 = vmatpush3.bf16.msra.mxu1 %v4615_v1  ;;  %4593 = vmatprep.subr.bf16.mxu0 %v4975_v3  ;;  %v4669_v1 = vpack.c.bf16 %v2730_v63, %v2729_v62  ;;  %v2766_v62 = vld [vmem:[%s6694_s1 + $0x8c8] sm:$0xff] }
  0xca   :  { %4617 = vmatprep.subr.bf16.mxu1 %v4975_v3 }
  0xcc   :  { %4595 = vmatpush3.bf16.msra.mxu0 %v4594_v7  ;;  %v4648_v7 = vpack.c.bf16 %v2715_v4, %v2714_v2  ;;  %v2751_v2 = vld [vmem:[%s6694_s1 + $0x858] sm:$0xff]  ;;  %v2767_v4 = vld [vmem:[%s6694_s1 + $0x8d0] sm:$0xff] }
  0xcd   :  { %4619 = vmatpush3.bf16.msra.mxu1 %v4618_v8  ;;  %4596 = vmatprep.subr.bf16.mxu0 %v4975_v3  ;;  %v4672_v8 = vpack.c.bf16 %v2732_v6, %v2731_v5  ;;  %v2768_v5 = vld [vmem:[%s6694_s1 + $0x8d8] sm:$0xff] }
  0xce   :  { %4620 = vmatprep.subr.bf16.mxu1 %v4975_v3 }
  0xd0   :  { %4598 = vmatpush3.bf16.msra.mxu0 %v4597_v14  ;;  %v4651_v14 = vpack.c.bf16 %v2717_v10, %v2716_v9  ;;  %v2753_v9 = vld [vmem:[%s6694_s1 + $0x868] sm:$0xff] }
  0xd1   :  { %4622 = vmatpush3.bf16.msra.mxu1 %v4621_v15  ;;  %4599 = vmatprep.subr.bf16.mxu0 %v4975_v3  ;;  %v4675_v15 = vpack.c.bf16 %v2734_v13, %v2733_v12  ;;  %v2769_v12 = vld [vmem:[%s6694_s1 + $0x8e0] sm:$0xff]  ;;  %v2770_v13 = vld [vmem:[%s6694_s1 + $0x8e8] sm:$0xff] }
  0xd2   :  { %4623 = vmatprep.subr.bf16.mxu1 %v4975_v3 }
  0xd4   :  { %4601 = vmatpush3.bf16.msra.mxu0 %v4600_v20  ;;  %v2736_v20 = vld [vmem:[%s6694_s1 + $0x7e8] sm:$0xff] }
  0xd5   :  { %4625 = vmatpush3.bf16.msra.mxu1 %v4624_v21  ;;  %4602 = vmatprep.subr.bf16.mxu0 %v4975_v3 }
  0xd6   :  { %4626 = vmatprep.subr.bf16.mxu1 %v4975_v3 }
  0xd8   :  { %4604 = vmatpush3.bf16.msra.mxu0 %v4603_v26  ;;  %v4678_v26 = vpack.c.bf16 %v2736_v20, %v2735_v19  ;;  %v4726_v20 = vpack.c.bf16 %v2770_v13, %v2769_v12 }
  0xd9   :  { %4628 = vmatpush3.bf16.msra.mxu1 %v4627_v27  ;;  %4605 = vmatprep.subr.bf16.mxu0 %v4975_v3  ;;  %v2720_v27 = vld [vmem:[%s6694_s1 + $0x770] sm:$0xff] }
  0xda   :  { %4629 = vmatprep.subr.bf16.mxu1 %v4975_v3  ;;  %v4657_v31 = vpack.c.bf16 %v2721_v28, %v2720_v27  ;;  %v2774_v27 = vld [vmem:[%s6694_s1 + $0x900] sm:$0xff]  ;;  %v2775_v28 = vld [vmem:[%s6694_s1 + $0x908] sm:$0xff] }
  0xdc   :  { %4607 = vmatpush3.bf16.msra.mxu0 %v4606_v32  ;;  %v4681_v32 = vpack.c.bf16 %v2738_v30, %v2737_v29  ;;  %v2791_v29 = vld [vmem:[%s6694_s1 + $0x980] sm:$0xff]  ;;  %v2792_v30 = vld [vmem:[%s6694_s1 + $0x988] sm:$0xff] }
  0xdd   :  { %4631 = vmatpush3.bf16.msra.mxu1 %v4630_v33  ;;  %4608 = vmatprep.subr.bf16.mxu0 %v4975_v3  ;;  %v2740_v33 = vld [vmem:[%s6694_s1 + $0x800] sm:$0xff] }
  0xde   :  { %4632 = vmatprep.subr.bf16.mxu1 %v4975_v3 }
  0xe0   :  { %4610 = vmatpush3.bf16.msra.mxu0 %v4609_v38  ;;  %v4684_v38 = vpack.c.bf16 %v2741_v34, %v2740_v33  ;;  %v2756_v33 = vld [vmem:[%s6693_s0 + $0x22] sm:$0x3]  ;;  %v4756_v34 = vpack.c.bf16 %v2792_v30, %v2791_v29  ;;  %v2810_v29 = vld [vmem:[%s6694_s1 + $0xa10] sm:$0xff]  ;;  %v2811_v30 = vld [vmem:[%s6694_s1 + $0xa18] sm:$0xff] }
  0xe1   :  { %4634 = vmatpush3.bf16.msra.mxu1 %v4633_v39  ;;  %4635 = vmatprep.subr.bf16.mxu0 %v4975_v3  ;;  %v2722_v39 = vld [vmem:[%s6693_s0 + $0x1e] sm:$0x3] }
  0xe2   :  { %4659 = vmatprep.subr.bf16.mxu1 %v4975_v3 }
  0xe3   :  { %3807 = vmatmul.mubr.f32.vlgmr.msra.gmra.mrb[12].mxu0 %v2671_v44  ;;  %v2760_v44 = vld [vmem:[%s6694_s1 + $0x898] sm:$0xff] }
  0xe4   :  { %4637 = vmatpush3.bf16.msra.mxu0 %v4636_v45  ;;  %3842 = vmatmul.mubr.f32.vlgmr.msra.gmra.mrb[12].mxu1 %v2688_v46  ;;  %v4687_v45 = vpack.c.bf16 %v2743_v42, %v2742_v41  ;;  %v4711_v46 = vpack.c.bf16 %v2760_v44, %v2759_v43  ;;  %v2778_v41 = vld [vmem:[%s6694_s1 + $0x920] sm:$0xff]  ;;  %v2779_v42 = vld [vmem:[%s6694_s1 + $0x928] sm:$0xff] }
  0xe5   :  { %4661 = vmatpush3.bf16.msra.mxu1 %v4660_v47  ;;  %4638 = vmatprep.subr.bf16.mxu0 %v4975_v3  ;;  %v2744_v47 = vld [vmem:[%s6694_s1 + $0x820] sm:$0xff]  ;;  %v2796_v44 = vld [vmem:[%s6694_s1 + $0x9a8] sm:$0xff] }
  0xe6   :  { %4662 = vmatprep.subr.bf16.mxu1 %v4975_v3  ;;  %3876 = vmatprep.mubr.msk.f32.mxu0 %vm4976_vm0, %v4977_v11  ;;  %v4690_v51 = vpack.c.bf16 %v2745_v48, %v2744_v47  ;;  %v2795_v43 = vld [vmem:[%s6694_s1 + $0x9a0] sm:$0xff]  ;;  %v2780_v47 = vld [vmem:[%s6694_s1 + $0x930] sm:$0xff]  ;;  %v2781_v48 = vld [vmem:[%s6694_s1 + $0x938] sm:$0xff] }
  0xe7   :  { %3911 = vmatprep.mubr.msk.f32.mxu1 %vm4976_vm0, %v4977_v11 }
  0xe8   :  { %4640 = vmatpush3.bf16.msra.mxu0 %v4639_v52  ;;  %v4714_v52 = vpack.c.bf16 %v2762_v50, %v2761_v49  ;;  %v2797_v49 = vld [vmem:[%s6694_s1 + $0x9b0] sm:$0xff]  ;;  %v2798_v50 = vld [vmem:[%s6694_s1 + $0x9b8] sm:$0xff] }
  0xe9   :  { %4664 = vmatpush3.bf16.msra.mxu1 %v4663_v53  ;;  %4641 = vmatprep.subr.bf16.mxu0 %v4975_v3  ;;  %v2746_v53 = vld [vmem:[%s6694_s1 + $0x830] sm:$0xff] }
  0xea   :  { %4665 = vmatprep.subr.bf16.mxu1 %v4975_v3  ;;  %v4693_v57 = vpack.c.bf16 %v2747_v54, %v2746_v53  ;;  %v2782_v53 = vld [vmem:[%s6694_s1 + $0x940] sm:$0xff]  ;;  %v2783_v54 = vld [vmem:[%s6694_s1 + $0x948] sm:$0xff] }
  0xec   :  { %4643 = vmatpush3.bf16.msra.mxu0 %v4642_v58  ;;  %v4717_v58 = vpack.c.bf16 %v2764_v56, %v2763_v55  ;;  %v2799_v55 = vld [vmem:[%s6694_s1 + $0x9c0] sm:$0xff]  ;;  %v2800_v56 = vld [vmem:[%s6694_s1 + $0x9c8] sm:$0xff] }
  0xed   :  { %4667 = vmatpush3.bf16.msra.mxu1 %v4666_v59  ;;  %4644 = vmatprep.subr.bf16.mxu0 %v4975_v3  ;;  %v2748_v59 = vld [vmem:[%s6694_s1 + $0x840] sm:$0xff] }
  0xee   :  { %4668 = vmatprep.subr.bf16.mxu1 %v4975_v3  ;;  %v4696_v63 = vpack.c.bf16 %v2749_v60, %v2748_v59  ;;  %v2784_v59 = vld [vmem:[%s6694_s1 + $0x950] sm:$0xff]  ;;  %v2785_v60 = vld [vmem:[%s6694_s1 + $0x958] sm:$0xff] }
  0xf0   :  { %4646 = vmatpush3.bf16.msra.mxu0 %v4645_v0  ;;  %v4720_v0 = vpack.c.bf16 %v2766_v62, %v2765_v61  ;;  %v2801_v61 = vld [vmem:[%s6694_s1 + $0x9d0] sm:$0xff]  ;;  %v2802_v62 = vld [vmem:[%s6694_s1 + $0x9d8] sm:$0xff] }
  0xf1   :  { %4670 = vmatpush3.bf16.msra.mxu1 %v4669_v1  ;;  %4647 = vmatprep.subr.bf16.mxu0 %v4975_v3  ;;  %v2750_v1 = vld [vmem:[%s6694_s1 + $0x850] sm:$0xff] }
  0xf2   :  { %4671 = vmatprep.subr.bf16.mxu1 %v4975_v3  ;;  %v4699_v6 = vpack.c.bf16 %v2751_v2, %v2750_v1  ;;  %v2786_v1 = vld [vmem:[%s6694_s1 + $0x960] sm:$0xff]  ;;  %v2787_v2 = vld [vmem:[%s6694_s1 + $0x968] sm:$0xff] }
  0xf4   :  { %4649 = vmatpush3.bf16.msra.mxu0 %v4648_v7  ;;  %v4723_v7 = vpack.c.bf16 %v2768_v5, %v2767_v4  ;;  %v2803_v5 = vld [vmem:[%s6694_s1 + $0x9e0] sm:$0xff] }
  0xf5   :  { %4673 = vmatpush3.bf16.msra.mxu1 %v4672_v8  ;;  %4650 = vmatprep.subr.bf16.mxu0 %v4975_v3  ;;  %v2752_v8 = vld [vmem:[%s6694_s1 + $0x860] sm:$0xff] }
  0xf6   :  { %v129_v18 = vpop.f32.mrb[0].mxu0  ;;  %4674 = vmatprep.subr.bf16.mxu1 %v4975_v3  ;;  %v4702_v17 = vpack.c.bf16 %v2753_v9, %v2752_v8 }
  0xf7   :  { %v3388_v21 = vpop.f32.mrb[1].mxu0  ;;  %v199_v22 = vpop.f32.mrb[0].mxu1 }
  0xf8   :  { %v5973_v23 = vadd.f32 %v199_v22, %v129_v18  ;;  %4652 = vmatpush3.bf16.msra.mxu0 %v4651_v14  ;;  %v3423_v25 = vpop.f32.mrb[1].mxu1  ;;  %v2754_v21 = vld [vmem:[%s6694_s1 + $0x870] sm:$0xff]  ;;  %v2755_v22 = vld [vmem:[%s6694_s1 + $0x878] sm:$0xff] }
  0xf9   :  { %4676 = vmatpush3.bf16.msra.mxu1 %v4675_v15  ;;  %4653 = vmatprep.subr.bf16.mxu0 %v4975_v3  ;;  %v4705_v25 = vpack.c.bf16 %v2755_v22, %v2754_v21  ;;  %v2808_v21 = vld [vmem:[%s6694_s1 + $0xa00] sm:$0xff]  ;;  %v2809_v22 = vld [vmem:[%s6694_s1 + $0xa08] sm:$0xff] }
  0xfa   :  { %4677 = vmatprep.subr.bf16.mxu1 %v4975_v3 }
  0xfc   :  { %4655 = vmatpush3.bf16.msra.mxu0 %v4654_v24  ;;  %v2772_v24 = vld [vmem:[%s6694_s1 + $0x8f8] sm:$0xff] }
  0xfd   :  { %4679 = vmatpush3.bf16.msra.mxu1 %v4678_v26  ;;  %4656 = vmatprep.subr.bf16.mxu0 %v4975_v3 }
  0xfe   :  { %4680 = vmatprep.subr.bf16.mxu1 %v4975_v3 }
 0x100   :  { %4658 = vmatpush3.bf16.msra.mxu0 %v4657_v31  ;;  %v2739_v31 = vld [vmem:[%s6693_s0 + $0x20] sm:$0x3] }
 0x101   :  { %4682 = vmatpush3.bf16.msra.mxu1 %v4681_v32  ;;  %4683 = vmatprep.subr.bf16.mxu0 %v4975_v3  ;;  %v4732_v32 = vpack.c.bf16 %v2775_v28, %v2774_v27  ;;  %v2790_v27 = vld [vmem:[%s6693_s0 + $0x26] sm:$0x3] }
 0x102   :  { %4707 = vmatprep.subr.bf16.mxu1 %v4975_v3 }
 0x103   :  { %3877 = vmatmul.mubr.f32.vlgmr.msra.gmra.mrb[14].mxu0 %v2705_v37  ;;  %v2793_v37 = vld [vmem:[%s6694_s1 + $0x990] sm:$0xff] }
 0x104   :  { %4685 = vmatpush3.bf16.msra.mxu0 %v4684_v38  ;;  %3912 = vmatmul.mubr.f32.vlgmr.msra.gmra.mrb[14].mxu1 %v2722_v39  ;;  %v2794_v38 = vld [vmem:[%s6694_s1 + $0x998] sm:$0xff]  ;;  %v4735_v39 = vpack.c.bf16 %v2777_v36, %v2776_v35  ;;  %v2812_v35 = vld [vmem:[%s6694_s1 + $0xa20] sm:$0xff]  ;;  %v2813_v36 = vld [vmem:[%s6694_s1 + $0xa28] sm:$0xff] }
 0x105   :  { %4709 = vmatpush3.bf16.msra.mxu1 %v4708_v40  ;;  %4686 = vmatprep.subr.bf16.mxu0 %v4975_v3  ;;  %v4759_v40 = vpack.c.bf16 %v2794_v38, %v2793_v37  ;;  %v2829_v37 = vld [vmem:[%s6694_s1 + $0xaa0] sm:$0xff]  ;;  %v2830_v38 = vld [vmem:[%s6694_s1 + $0xaa8] sm:$0xff] }
 0x106   :  { %4710 = vmatprep.subr.bf16.mxu1 %v4975_v3  ;;  %3946 = vmatprep.mubr.msk.f32.mxu0 %vm4976_vm0, %v4977_v11 }
 0x107   :  { %3981 = vmatprep.mubr.msk.f32.mxu1 %vm4976_vm0, %v4977_v11 }
 0x108   :  { %4688 = vmatpush3.bf16.msra.mxu0 %v4687_v45  ;;  %v4738_v45 = vpack.c.bf16 %v2779_v42, %v2778_v41  ;;  %v2814_v41 = vld [vmem:[%s6694_s1 + $0xa30] sm:$0xff]  ;;  %v2815_v42 = vld [vmem:[%s6694_s1 + $0xa38] sm:$0xff] }
 0x109   :  { %4712 = vmatpush3.bf16.msra.mxu1 %v4711_v46  ;;  %4689 = vmatprep.subr.bf16.mxu0 %v4975_v3  ;;  %v4762_v46 = vpack.c.bf16 %v2796_v44, %v2795_v43  ;;  %v2831_v43 = vld [vmem:[%s6694_s1 + $0xab0] sm:$0xff]  ;;  %v2832_v44 = vld [vmem:[%s6694_s1 + $0xab8] sm:$0xff] }
 0x10a   :  { %4713 = vmatprep.subr.bf16.mxu1 %v4975_v3 }
 0x10c   :  { %4691 = vmatpush3.bf16.msra.mxu0 %v4690_v51  ;;  %v4741_v51 = vpack.c.bf16 %v2781_v48, %v2780_v47  ;;  %v2816_v47 = vld [vmem:[%s6694_s1 + $0xa40] sm:$0xff]  ;;  %v2817_v48 = vld [vmem:[%s6694_s1 + $0xa48] sm:$0xff] }
 0x10d   :  { %4715 = vmatpush3.bf16.msra.mxu1 %v4714_v52  ;;  %4692 = vmatprep.subr.bf16.mxu0 %v4975_v3  ;;  %v4765_v52 = vpack.c.bf16 %v2798_v50, %v2797_v49  ;;  %v2833_v49 = vld [vmem:[%s6694_s1 + $0xac0] sm:$0xff]  ;;  %v2834_v50 = vld [vmem:[%s6694_s1 + $0xac8] sm:$0xff] }
 0x10e   :  { %4716 = vmatprep.subr.bf16.mxu1 %v4975_v3 }
 0x110   :  { %4694 = vmatpush3.bf16.msra.mxu0 %v4693_v57  ;;  %v4744_v57 = vpack.c.bf16 %v2783_v54, %v2782_v53  ;;  %v2818_v53 = vld [vmem:[%s6694_s1 + $0xa50] sm:$0xff]  ;;  %v2819_v54 = vld [vmem:[%s6694_s1 + $0xa58] sm:$0xff] }
 0x111   :  { %4718 = vmatpush3.bf16.msra.mxu1 %v4717_v58  ;;  %4695 = vmatprep.subr.bf16.mxu0 %v4975_v3  ;;  %v4768_v58 = vpack.c.bf16 %v2800_v56, %v2799_v55  ;;  %v2835_v55 = vld [vmem:[%s6694_s1 + $0xad0] sm:$0xff]  ;;  %v2836_v56 = vld [vmem:[%s6694_s1 + $0xad8] sm:$0xff] }
 0x112   :  { %4719 = vmatprep.subr.bf16.mxu1 %v4975_v3 }
 0x114   :  { %4697 = vmatpush3.bf16.msra.mxu0 %v4696_v63  ;;  %v4747_v63 = vpack.c.bf16 %v2785_v60, %v2784_v59  ;;  %v2820_v59 = vld [vmem:[%s6694_s1 + $0xa60] sm:$0xff]  ;;  %v2821_v60 = vld [vmem:[%s6694_s1 + $0xa68] sm:$0xff] }
 0x115   :  { %4721 = vmatpush3.bf16.msra.mxu1 %v4720_v0  ;;  %4698 = vmatprep.subr.bf16.mxu0 %v4975_v3  ;;  %v4771_v0 = vpack.c.bf16 %v2802_v62, %v2801_v61  ;;  %v2837_v62 = vld [vmem:[%s6694_s1 + $0xae0] sm:$0xff] }
 0x116   :  { %v288_v10 = vpop.f32.mrb[2].mxu0  ;;  %4722 = vmatprep.subr.bf16.mxu1 %v4975_v3 }
 0x117   :  { %v292_v14 = vadd.f32 %v288_v10, %v5973_v23  ;;  %v3458_v15 = vpop.f32.mrb[3].mxu0  ;;  %v378_v16 = vpop.f32.mrb[2].mxu1  ;;  %v2771_v23 = vld [vmem:[%s6694_s1 + $0x8f0] sm:$0xff]  ;;  %v4750_v10 = vpack.c.bf16 %v2787_v2, %v2786_v1 }
 0x118   :  { %4700 = vmatpush3.bf16.msra.mxu0 %v4699_v6  ;;  %v3493_v18 = vpop.f32.mrb[3].mxu1  ;;  %v4729_v26 = vpack.c.bf16 %v2772_v24, %v2771_v23  ;;  %v2804_v6 = vld [vmem:[%s6694_s1 + $0x9e8] sm:$0xff]  ;;  %v2788_v15 = vld [vmem:[%s6694_s1 + $0x970] sm:$0xff]  ;;  %v2825_v23 = vld [vmem:[%s6694_s1 + $0xa80] sm:$0xff] }
 0x119   :  { %v6098_v19 = vadd.f32 %v378_v16, %v292_v14  ;;  %4724 = vmatpush3.bf16.msra.mxu1 %v4723_v7  ;;  %4701 = vmatprep.subr.bf16.mxu0 %v4975_v3  ;;  %v4774_v14 = vpack.c.bf16 %v2804_v6, %v2803_v5  ;;  %v2789_v16 = vld [vmem:[%s6694_s1 + $0x978] sm:$0xff]  ;;  %v2826_v24 = vld [vmem:[%s6694_s1 + $0xa88] sm:$0xff] }
 0x11a   :  { %4725 = vmatprep.subr.bf16.mxu1 %v4975_v3  ;;  %v2806_v18 = vld [vmem:[%s6694_s1 + $0x9f8] sm:$0xff]  ;;  %v4804_v28 = vpack.c.bf16 %v2826_v24, %v2825_v23  ;;  %v2844_v23 = vld [vmem:[%s6694_s1 + $0xb10] sm:$0xff] }
 0x11b   :  { %v2845_v24 = vld [vmem:[%s6694_s1 + $0xb18] sm:$0xff] }
 0x11c   :  { %4703 = vmatpush3.bf16.msra.mxu0 %v4702_v17  ;;  %v2805_v17 = vld [vmem:[%s6694_s1 + $0x9f0] sm:$0xff] }
 0x11d   :  { %4727 = vmatpush3.bf16.msra.mxu1 %v4726_v20  ;;  %4704 = vmatprep.subr.bf16.mxu0 %v4975_v3  ;;  %v4777_v20 = vpack.c.bf16 %v2806_v18, %v2805_v17  ;;  %v2859_v17 = vld [vmem:[%s6694_s1 + $0xb80] sm:$0xff]  ;;  %v2860_v18 = vld [vmem:[%s6694_s1 + $0xb88] sm:$0xff] }
 0x11e   :  { %4728 = vmatprep.subr.bf16.mxu1 %v4975_v3 }
 0x120   :  { %4706 = vmatpush3.bf16.msra.mxu0 %v4705_v25  ;;  %v2773_v25 = vld [vmem:[%s6693_s0 + $0x24] sm:$0x3] }
 0x121   :  { %4730 = vmatpush3.bf16.msra.mxu1 %v4729_v26  ;;  %4731 = vmatprep.subr.bf16.mxu0 %v4975_v3  ;;  %v4780_v26 = vpack.c.bf16 %v2809_v22, %v2808_v21  ;;  %v2824_v21 = vld [vmem:[%s6693_s0 + $0x2a] sm:$0x3]  ;;  %v4852_v22 = vpack.c.bf16 %v2860_v18, %v2859_v17  ;;  %v2880_v17 = vld [vmem:[%s6694_s1 + $0xc20] sm:$0xff] }
 0x122   :  { %4755 = vmatprep.subr.bf16.mxu1 %v4975_v3  ;;  %v2881_v18 = vld [vmem:[%s6694_s1 + $0xc28] sm:$0xff] }
 0x123   :  { %3947 = vmatmul.mubr.f32.vlgmr.msra.gmra.mrb[16].mxu0 %v2739_v31  ;;  %v2827_v31 = vld [vmem:[%s6694_s1 + $0xa90] sm:$0xff] }
 0x124   :  { %4733 = vmatpush3.bf16.msra.mxu0 %v4732_v32  ;;  %3982 = vmatmul.mubr.f32.vlgmr.msra.gmra.mrb[16].mxu1 %v2756_v33  ;;  %v2828_v32 = vld [vmem:[%s6694_s1 + $0xa98] sm:$0xff]  ;;  %v4783_v33 = vpack.c.bf16 %v2811_v30, %v2810_v29  ;;  %v2846_v29 = vld [vmem:[%s6694_s1 + $0xb20] sm:$0xff]  ;;  %v2847_v30 = vld [vmem:[%s6694_s1 + $0xb28] sm:$0xff] }
 0x125   :  { %4757 = vmatpush3.bf16.msra.mxu1 %v4756_v34  ;;  %4734 = vmatprep.subr.bf16.mxu0 %v4975_v3  ;;  %v4807_v34 = vpack.c.bf16 %v2828_v32, %v2827_v31  ;;  %v2863_v31 = vld [vmem:[%s6694_s1 + $0xba0] sm:$0xff]  ;;  %v2864_v32 = vld [vmem:[%s6694_s1 + $0xba8] sm:$0xff] }
 0x126   :  { %4758 = vmatprep.subr.bf16.mxu1 %v4975_v3  ;;  %4016 = vmatprep.mubr.msk.f32.mxu0 %vm4976_vm0, %v4977_v11 }
 0x127   :  { %4051 = vmatprep.mubr.msk.f32.mxu1 %vm4976_vm0, %v4977_v11 }
 0x128   :  { %4736 = vmatpush3.bf16.msra.mxu0 %v4735_v39  ;;  %v4786_v39 = vpack.c.bf16 %v2813_v36, %v2812_v35  ;;  %v2848_v35 = vld [vmem:[%s6694_s1 + $0xb30] sm:$0xff]  ;;  %v2849_v36 = vld [vmem:[%s6694_s1 + $0xb38] sm:$0xff] }
 0x129   :  { %4760 = vmatpush3.bf16.msra.mxu1 %v4759_v40  ;;  %4737 = vmatprep.subr.bf16.mxu0 %v4975_v3  ;;  %v4810_v40 = vpack.c.bf16 %v2830_v38, %v2829_v37  ;;  %v2865_v37 = vld [vmem:[%s6694_s1 + $0xbb0] sm:$0xff]  ;;  %v2866_v38 = vld [vmem:[%s6694_s1 + $0xbb8] sm:$0xff] }
 0x12a   :  { %4761 = vmatprep.subr.bf16.mxu1 %v4975_v3 }
 0x12c   :  { %4739 = vmatpush3.bf16.msra.mxu0 %v4738_v45  ;;  %v4789_v45 = vpack.c.bf16 %v2815_v42, %v2814_v41  ;;  %v2850_v41 = vld [vmem:[%s6694_s1 + $0xb40] sm:$0xff]  ;;  %v2851_v42 = vld [vmem:[%s6694_s1 + $0xb48] sm:$0xff] }
 0x12d   :  { %4763 = vmatpush3.bf16.msra.mxu1 %v4762_v46  ;;  %4740 = vmatprep.subr.bf16.mxu0 %v4975_v3  ;;  %v4813_v46 = vpack.c.bf16 %v2832_v44, %v2831_v43  ;;  %v2867_v43 = vld [vmem:[%s6694_s1 + $0xbc0] sm:$0xff]  ;;  %v2868_v44 = vld [vmem:[%s6694_s1 + $0xbc8] sm:$0xff] }
 0x12e   :  { %4764 = vmatprep.subr.bf16.mxu1 %v4975_v3 }
 0x130   :  { %4742 = vmatpush3.bf16.msra.mxu0 %v4741_v51  ;;  %v4792_v51 = vpack.c.bf16 %v2817_v48, %v2816_v47  ;;  %v2852_v47 = vld [vmem:[%s6694_s1 + $0xb50] sm:$0xff]  ;;  %v2853_v48 = vld [vmem:[%s6694_s1 + $0xb58] sm:$0xff] }
 0x131   :  { %4766 = vmatpush3.bf16.msra.mxu1 %v4765_v52  ;;  %4743 = vmatprep.subr.bf16.mxu0 %v4975_v3  ;;  %v4816_v52 = vpack.c.bf16 %v2834_v50, %v2833_v49  ;;  %v2869_v49 = vld [vmem:[%s6694_s1 + $0xbd0] sm:$0xff]  ;;  %v2870_v50 = vld [vmem:[%s6694_s1 + $0xbd8] sm:$0xff] }
 0x132   :  { %4767 = vmatprep.subr.bf16.mxu1 %v4975_v3 }
 0x134   :  { %4745 = vmatpush3.bf16.msra.mxu0 %v4744_v57  ;;  %v4795_v57 = vpack.c.bf16 %v2819_v54, %v2818_v53  ;;  %v2854_v53 = vld [vmem:[%s6694_s1 + $0xb60] sm:$0xff]  ;;  %v2855_v54 = vld [vmem:[%s6694_s1 + $0xb68] sm:$0xff] }
 0x135   :  { %4769 = vmatpush3.bf16.msra.mxu1 %v4768_v58  ;;  %4746 = vmatprep.subr.bf16.mxu0 %v4975_v3  ;;  %v4819_v58 = vpack.c.bf16 %v2836_v56, %v2835_v55  ;;  %v2871_v56 = vld [vmem:[%s6694_s1 + $0xbe0] sm:$0xff] }
 0x136   :  { %v468_v4 = vpop.f32.mrb[4].mxu0  ;;  %4770 = vmatprep.subr.bf16.mxu1 %v4975_v3 }
 0x137   :  { %v472_v7 = vadd.f32 %v468_v4, %v6098_v19  ;;  %v3528_v8 = vpop.f32.mrb[5].mxu0  ;;  %v558_v9 = vpop.f32.mrb[4].mxu1  ;;  %v4753_v19 = vpack.c.bf16 %v2789_v16, %v2788_v15  ;;  %v4798_v4 = vpack.c.bf16 %v2821_v60, %v2820_v59  ;;  %v2842_v15 = vld [vmem:[%s6694_s1 + $0xb00] sm:$0xff]  ;;  %v2843_v16 = vld [vmem:[%s6694_s1 + $0xb08] sm:$0xff] }
 0x138   :  { %4748 = vmatpush3.bf16.msra.mxu0 %v4747_v63  ;;  %v3563_v12 = vpop.f32.mrb[5].mxu1  ;;  %v2838_v63 = vld [vmem:[%s6694_s1 + $0xae8] sm:$0xff]  ;;  %v2822_v8 = vld [vmem:[%s6694_s1 + $0xa70] sm:$0xff] }
 0x139   :  { %v6223_v13 = vadd.f32 %v558_v9, %v472_v7  ;;  %4772 = vmatpush3.bf16.msra.mxu1 %v4771_v0  ;;  %4749 = vmatprep.subr.bf16.mxu0 %v4975_v3  ;;  %v4822_v7 = vpack.c.bf16 %v2838_v63, %v2837_v62  ;;  %v2823_v9 = vld [vmem:[%s6694_s1 + $0xa78] sm:$0xff] }
 0x13a   :  { %4773 = vmatprep.subr.bf16.mxu1 %v4975_v3  ;;  %v2840_v12 = vld [vmem:[%s6694_s1 + $0xaf8] sm:$0xff] }
 0x13c   :  { %4751 = vmatpush3.bf16.msra.mxu0 %v4750_v10  ;;  %v2839_v10 = vld [vmem:[%s6694_s1 + $0xaf0] sm:$0xff] }
 0x13d   :  { %4775 = vmatpush3.bf16.msra.mxu1 %v4774_v14  ;;  %4752 = vmatprep.subr.bf16.mxu0 %v4975_v3  ;;  %v4825_v14 = vpack.c.bf16 %v2840_v12, %v2839_v10  ;;  %v2841_v10 = vld [vmem:[%s6693_s0 + $0x2c] sm:$0x3] }
 0x13e   :  { %4776 = vmatprep.subr.bf16.mxu1 %v4975_v3 }
 0x140   :  { %4754 = vmatpush3.bf16.msra.mxu0 %v4753_v19  ;;  %v2807_v19 = vld [vmem:[%s6693_s0 + $0x28] sm:$0x3] }
 0x141   :  { %4778 = vmatpush3.bf16.msra.mxu1 %v4777_v20  ;;  %4779 = vmatprep.subr.bf16.mxu0 %v4975_v3  ;;  %v4828_v20 = vpack.c.bf16 %v2843_v16, %v2842_v15  ;;  %v2879_v15 = vld [vmem:[%s6694_s1 + $0xc18] sm:$0xff] }
 0x142   :  { %4803 = vmatprep.subr.bf16.mxu1 %v4975_v3 }
 0x143   :  { %4017 = vmatmul.mubr.f32.vlgmr.msra.gmra.mrb[18].mxu0 %v2773_v25  ;;  %v2861_v25 = vld [vmem:[%s6694_s1 + $0xb90] sm:$0xff] }
 0x144   :  { %4781 = vmatpush3.bf16.msra.mxu0 %v4780_v26  ;;  %4052 = vmatmul.mubr.f32.vlgmr.msra.gmra.mrb[18].mxu1 %v2790_v27  ;;  %v2862_v26 = vld [vmem:[%s6694_s1 + $0xb98] sm:$0xff]  ;;  %v4831_v27 = vpack.c.bf16 %v2845_v24, %v2844_v23  ;;  %v2884_v23 = vld [vmem:[%s6694_s1 + $0xc40] sm:$0xff]  ;;  %v2885_v24 = vld [vmem:[%s6694_s1 + $0xc48] sm:$0xff] }
 0x145   :  { %4805 = vmatpush3.bf16.msra.mxu1 %v4804_v28  ;;  %4782 = vmatprep.subr.bf16.mxu0 %v4975_v3  ;;  %v4855_v28 = vpack.c.bf16 %v2862_v26, %v2861_v25  ;;  %v4888_v25 = vpack.c.bf16 %v2885_v24, %v2884_v23  ;;  %v2886_v26 = vld [vmem:[%s6694_s1 + $0xc50] sm:$0xff] }
 0x146   :  { %4806 = vmatprep.subr.bf16.mxu1 %v4975_v3  ;;  %4086 = vmatprep.mubr.msk.f32.mxu0 %vm4976_vm0, %v4977_v11  ;;  %v2378_v23 = vld [vmem:[%s6698_s5 + $0x10] sm:$0xff] }
 0x147   :  { %4121 = vmatprep.mubr.msk.f32.mxu1 %vm4976_vm0, %v4977_v11 }
 0x148   :  { %4784 = vmatpush3.bf16.msra.mxu0 %v4783_v33  ;;  %v4834_v33 = vpack.c.bf16 %v2847_v30, %v2846_v29  ;;  %v2888_v29 = vld [vmem:[%s6694_s1 + $0xc60] sm:$0xff]  ;;  %v2889_v30 = vld [vmem:[%s6694_s1 + $0xc68] sm:$0xff] }
 0x149   :  { %4808 = vmatpush3.bf16.msra.mxu1 %v4807_v34  ;;  %4785 = vmatprep.subr.bf16.mxu0 %v4975_v3  ;;  %v4858_v34 = vpack.c.bf16 %v2864_v32, %v2863_v31 }
 0x14a   :  { %4809 = vmatprep.subr.bf16.mxu1 %v4975_v3 }
 0x14c   :  { %4787 = vmatpush3.bf16.msra.mxu0 %v4786_v39  ;;  %v4837_v39 = vpack.c.bf16 %v2849_v36, %v2848_v35  ;;  %v4894_v35 = vpack.c.bf16 %v2889_v30, %v2888_v29  ;;  %v2382_v30 = vld [vmem:[%s6698_s5 + $0x30] sm:$0xff] }
 0x14d   :  { %4811 = vmatpush3.bf16.msra.mxu1 %v4810_v40  ;;  %4788 = vmatprep.subr.bf16.mxu0 %v4975_v3  ;;  %v4861_v40 = vpack.c.bf16 %v2866_v38, %v2865_v37  ;;  %v2890_v38 = vld [vmem:[%s6694_s1 + $0xc70] sm:$0xff] }
 0x14e   :  { %4812 = vmatprep.subr.bf16.mxu1 %v4975_v3 }
 0x150   :  { %4790 = vmatpush3.bf16.msra.mxu0 %v4789_v45  ;;  %v4840_v45 = vpack.c.bf16 %v2851_v42, %v2850_v41  ;;  %v2875_v41 = vld [vmem:[%s6693_s0 + $0x30] sm:$0x3] }
 0x151   :  { %4814 = vmatpush3.bf16.msra.mxu1 %v4813_v46  ;;  %4791 = vmatprep.subr.bf16.mxu0 %v4975_v3  ;;  %v4864_v46 = vpack.c.bf16 %v2868_v44, %v2867_v43 }
 0x152   :  { %4815 = vmatprep.subr.bf16.mxu1 %v4975_v3 }
 0x154   :  { %4793 = vmatpush3.bf16.msra.mxu0 %v4792_v51  ;;  %v4843_v51 = vpack.c.bf16 %v2853_v48, %v2852_v47 }
 0x155   :  { %4817 = vmatpush3.bf16.msra.mxu1 %v4816_v52  ;;  %4794 = vmatprep.subr.bf16.mxu0 %v4975_v3  ;;  %v4867_v52 = vpack.c.bf16 %v2870_v50, %v2869_v49 }
 0x156   :  { %v648_v61 = vpop.f32.mrb[6].mxu0  ;;  %4818 = vmatprep.subr.bf16.mxu1 %v4975_v3 }
 0x157   :  { %v652_v0 = vadd.f32 %v648_v61, %v6223_v13  ;;  %v3598_v1 = vpop.f32.mrb[7].mxu0  ;;  %v738_v2 = vpop.f32.mrb[6].mxu1  ;;  %v4801_v13 = vpack.c.bf16 %v2823_v9, %v2822_v8  ;;  %v4846_v61 = vpack.c.bf16 %v2855_v54, %v2854_v53  ;;  %v2876_v8 = vld [vmem:[%s6694_s1 + $0xc00] sm:$0xff]  ;;  %v2877_v9 = vld [vmem:[%s6694_s1 + $0xc08] sm:$0xff] }
 0x158   :  { %4796 = vmatpush3.bf16.msra.mxu0 %v4795_v57  ;;  %v3633_v5 = vpop.f32.mrb[7].mxu1  ;;  %v2872_v57 = vld [vmem:[%s6694_s1 + $0xbe8] sm:$0xff]  ;;  %v2856_v1 = vld [vmem:[%s6694_s1 + $0xb70] sm:$0xff]  ;;  %v4876_v12 = vpack.c.bf16 %v2877_v9, %v2876_v8  ;;  %v2282_v54 = vld [vmem:[%s6696_s3] sm:$0xff] }
 0x159   :  { %v6348_v6 = vadd.f32 %v738_v2, %v652_v0  ;;  %4820 = vmatpush3.bf16.msra.mxu1 %v4819_v58  ;;  %4797 = vmatprep.subr.bf16.mxu0 %v4975_v3  ;;  %v4870_v0 = vpack.c.bf16 %v2872_v57, %v2871_v56  ;;  %v2857_v2 = vld [vmem:[%s6694_s1 + $0xb78] sm:$0xff]  ;;  %v2294_v8 = vld [vmem:[%s6696_s3 + $0x60] sm:$0xff]  ;;  %v2295_v9 = vld [vmem:[%s6696_s3 + $0x68] sm:$0xff] }
 0x15a   :  { %4821 = vmatprep.subr.bf16.mxu1 %v4975_v3  ;;  %v2874_v5 = vld [vmem:[%s6694_s1 + $0xbf8] sm:$0xff] }
 0x15b   :  { %v2285_v57 = vld [vmem:[%s6696_s3 + $0x18] sm:$0xff] }
 0x15c   :  { %4799 = vmatpush3.bf16.msra.mxu0 %v4798_v4  ;;  %v2873_v4 = vld [vmem:[%s6694_s1 + $0xbf0] sm:$0xff] }
 0x15d   :  { %4823 = vmatpush3.bf16.msra.mxu1 %v4822_v7  ;;  %4800 = vmatprep.subr.bf16.mxu0 %v4975_v3  ;;  %v4873_v7 = vpack.c.bf16 %v2874_v5, %v2873_v4  ;;  %v2292_v5 = vld [vmem:[%s6696_s3 + $0x50] sm:$0xff] }
 0x15e   :  { %4824 = vmatprep.subr.bf16.mxu1 %v4975_v3 }
 0x160   :  { %4802 = vmatpush3.bf16.msra.mxu0 %v4801_v13  ;;  %v2858_v13 = vld [vmem:[%s6693_s0 + $0x2e] sm:$0x3] }
 0x161   :  { %4826 = vmatpush3.bf16.msra.mxu1 %v4825_v14  ;;  %4827 = vmatprep.subr.bf16.mxu0 %v4975_v3  ;;  %v2878_v14 = vld [vmem:[%s6694_s1 + $0xc10] sm:$0xff] }
 0x162   :  { %4851 = vmatprep.subr.bf16.mxu1 %v4975_v3  ;;  %v4879_v16 = vpack.c.bf16 %v2879_v15, %v2878_v14 }
 0x163   :  { %4087 = vmatmul.mubr.f32.vlgmr.msra.gmra.mrb[20].mxu0 %v2807_v19  ;;  %v4882_v19 = vpack.c.bf16 %v2881_v18, %v2880_v17  ;;  %v2297_v17 = vld [vmem:[%s6696_s3 + $0x78] sm:$0xff] }
 0x164   :  { %4829 = vmatpush3.bf16.msra.mxu0 %v4828_v20  ;;  %4122 = vmatmul.mubr.f32.vlgmr.msra.gmra.mrb[20].mxu1 %v2824_v21  ;;  %v2882_v20 = vld [vmem:[%s6694_s1 + $0xc30] sm:$0xff]  ;;  %v2883_v21 = vld [vmem:[%s6694_s1 + $0xc38] sm:$0xff] }
 0x165   :  { %4853 = vmatpush3.bf16.msra.mxu1 %v4852_v22  ;;  %4830 = vmatprep.subr.bf16.mxu0 %v4975_v3  ;;  %v4885_v22 = vpack.c.bf16 %v2883_v21, %v2882_v20  ;;  %v2376_v21 = vld [vmem:[%s6698_s5] sm:$0xff] }
 0x166   :  { %4854 = vmatprep.subr.bf16.mxu1 %v4975_v3  ;;  %4156 = vmatprep.mubr.msk.f32.mxu0 %vm4976_vm0, %v4977_v11 }
 0x167   :  { %4191 = vmatprep.mubr.msk.f32.mxu1 %vm4976_vm0, %v4977_v11 }
 0x168   :  { %4832 = vmatpush3.bf16.msra.mxu0 %v4831_v27  ;;  %v2887_v27 = vld [vmem:[%s6694_s1 + $0xc58] sm:$0xff] }
 0x169   :  { %4856 = vmatpush3.bf16.msra.mxu1 %v4855_v28  ;;  %4833 = vmatprep.subr.bf16.mxu0 %v4975_v3  ;;  %v4891_v28 = vpack.c.bf16 %v2887_v27, %v2886_v26  ;;  %v2380_v27 = vld [vmem:[%s6698_s5 + $0x20] sm:$0xff] }
 0x16a   :  { %4857 = vmatprep.subr.bf16.mxu1 %v4975_v3 }
 0x16c   :  { %4835 = vmatpush3.bf16.msra.mxu0 %v4834_v33 }
 0x16d   :  { %4859 = vmatpush3.bf16.msra.mxu1 %v4858_v34  ;;  %4836 = vmatprep.subr.bf16.mxu0 %v4975_v3 }
 0x16e   :  { %4860 = vmatprep.subr.bf16.mxu1 %v4975_v3 }
 0x170   :  { %4838 = vmatpush3.bf16.msra.mxu0 %v4837_v39  ;;  %v2891_v39 = vld [vmem:[%s6694_s1 + $0xc78] sm:$0xff] }
 0x171   :  { %4862 = vmatpush3.bf16.msra.mxu1 %v4861_v40  ;;  %4839 = vmatprep.subr.bf16.mxu0 %v4975_v3  ;;  %v4897_v40 = vpack.c.bf16 %v2891_v39, %v2890_v38  ;;  %v2388_v39 = vld [vmem:[%s6698_s5 + $0x60] sm:$0xff] }
 0x172   :  { %4863 = vmatprep.subr.bf16.mxu1 %v4975_v3 }
 0x174   :  { %4841 = vmatpush3.bf16.msra.mxu0 %v4840_v45 }
 0x175   :  { %4865 = vmatpush3.bf16.msra.mxu1 %v4864_v46  ;;  %4842 = vmatprep.subr.bf16.mxu0 %v4975_v3 }
 0x176   :  { %v828_v55 = vpop.f32.mrb[8].mxu0  ;;  %4866 = vmatprep.subr.bf16.mxu1 %v4975_v3 }
 0x177   :  { %v832_v58 = vadd.f32 %v828_v55, %v6348_v6  ;;  %v3668_v59 = vpop.f32.mrb[9].mxu0  ;;  %v918_v60 = vpop.f32.mrb[8].mxu1  ;;  %v4849_v6 = vpack.c.bf16 %v2857_v2, %v2856_v1  ;;  %v2284_v55 = vld [vmem:[%s6696_s3 + $0x10] sm:$0xff]  ;;  %v2290_v1 = vld [vmem:[%s6696_s3 + $0x40] sm:$0xff]  ;;  %v2291_v2 = vld [vmem:[%s6696_s3 + $0x48] sm:$0xff] }
 0x178   :  { %4844 = vmatpush3.bf16.msra.mxu0 %v4843_v51  ;;  %v3703_v62 = vpop.f32.mrb[9].mxu1  ;;  %v2286_v59 = vld [vmem:[%s6696_s3 + $0x20] sm:$0xff]  ;;  %v4912_v4 = vpack.c.bf16 %v2291_v2, %v2290_v1  ;;  %v2391_v1 = vld [vmem:[%s6698_s5 + $0x78] sm:$0xff] }
 0x179   :  { %v922_v63 = vadd.f32 %v918_v60, %v832_v58  ;;  %4868 = vmatpush3.bf16.msra.mxu1 %v4867_v52  ;;  %4845 = vmatprep.subr.bf16.mxu0 %v4975_v3  ;;  %v4903_v58 = vpack.c.bf16 %v2285_v57, %v2284_v55  ;;  %v2287_v60 = vld [vmem:[%s6696_s3 + $0x28] sm:$0xff]  ;;  %v2288_v62 = vld [vmem:[%s6696_s3 + $0x30] sm:$0xff] }
 0x17a   :  { %4869 = vmatprep.subr.bf16.mxu1 %v4975_v3 }
 0x17c   :  { %4847 = vmatpush3.bf16.msra.mxu0 %v4846_v61  ;;  %v4906_v61 = vpack.c.bf16 %v2287_v60, %v2286_v59  ;;  %v2892_v60 = vld [vmem:[%s6695_s2] ss:$0 sm:$0xff] }
 0x17d   :  { %4871 = vmatpush3.bf16.msra.mxu1 %v4870_v0  ;;  %4848 = vmatprep.subr.bf16.mxu0 %v4975_v3 }
 0x17e   :  { %4872 = vmatprep.subr.bf16.mxu1 %v4975_v3 }
 0x180   :  { %4850 = vmatpush3.bf16.msra.mxu0 %v4849_v6  ;;  %v2293_v6 = vld [vmem:[%s6696_s3 + $0x58] sm:$0xff] }
 0x181   :  { %4874 = vmatpush3.bf16.msra.mxu1 %v4873_v7  ;;  %4875 = vmatprep.subr.bf16.mxu0 %v4975_v3  ;;  %v4915_v7 = vpack.c.bf16 %v2293_v6, %v2292_v5 }
 0x182   :  { %4899 = vmatprep.subr.bf16.mxu1 %v4975_v3 }
 0x183   :  { %4157 = vmatmul.mubr.f32.vlgmr.msra.gmra.mrb[22].mxu0 %v2841_v10  ;;  %v4918_v10 = vpack.c.bf16 %v2295_v9, %v2294_v8  ;;  %v2894_v9 = vld [vmem:[%s6699_s6] ss:$0 sm:$0xff] }
 0x184   :  { %4877 = vmatpush3.bf16.msra.mxu0 %v4876_v12  ;;  %4192 = vmatmul.mubr.f32.vlgmr.msra.gmra.mrb[22].mxu1 %v2858_v13 }
 0x185   :  { %4878 = vmatprep.subr.bf16.mxu0 %v4975_v3  ;;  %4226 = vmatprep.mubr.msk.f32.mxu0 %vm4976_vm0, %v4977_v11 }
 0x186   :  { %4261 = vmatprep.mubr.msk.f32.mxu1 %vm4976_vm0, %v4977_v11 }
 0x188   :  { %4880 = vmatpush3.bf16.msra.mxu0 %v4879_v16  ;;  %v2296_v16 = vld [vmem:[%s6696_s3 + $0x70] sm:$0xff] }
 0x189   :  { %4881 = vmatprep.subr.bf16.mxu0 %v4975_v3 }
 0x18c   :  { %4883 = vmatpush3.bf16.msra.mxu0 %v4882_v19  ;;  %v4921_v19 = vpack.c.bf16 %v2297_v17, %v2296_v16 }
 0x18d   :  { %4884 = vmatprep.subr.bf16.mxu0 %v4975_v3 }
 0x190   :  { %4886 = vmatpush3.bf16.msra.mxu0 %v4885_v22  ;;  %v2377_v22 = vld [vmem:[%s6698_s5 + $0x8] sm:$0xff] }
 0x191   :  { %4887 = vmatprep.subr.bf16.mxu0 %v4975_v3  ;;  %v4924_v24 = vpack.c.bf16 %v2377_v22, %v2376_v21 }
 0x194   :  { %4889 = vmatpush3.bf16.msra.mxu0 %v4888_v25  ;;  %v2379_v25 = vld [vmem:[%s6698_s5 + $0x18] sm:$0xff] }
 0x195   :  { %4890 = vmatprep.subr.bf16.mxu0 %v4975_v3  ;;  %v4927_v26 = vpack.c.bf16 %v2379_v25, %v2378_v23 }
 0x196   :  { %v1008_v31 = vpop.f32.mrb[10].mxu0 }
 0x197   :  { %v1012_v32 = vadd.f32 %v1008_v31, %v922_v63  ;;  %v3738_v33 = vpop.f32.mrb[11].mxu0  ;;  %v1098_v34 = vpop.f32.mrb[10].mxu1  ;;  %v2289_v63 = vld [vmem:[%s6696_s3 + $0x38] sm:$0xff] }
 0x198   :  { %4892 = vmatpush3.bf16.msra.mxu0 %v4891_v28  ;;  %v3773_v36 = vpop.f32.mrb[11].mxu1  ;;  %v4909_v0 = vpack.c.bf16 %v2289_v63, %v2288_v62  ;;  %v2381_v28 = vld [vmem:[%s6698_s5 + $0x28] sm:$0xff]  ;;  %v2383_v31 = vld [vmem:[%s6698_s5 + $0x38] sm:$0xff]  ;;  %v2384_v33 = vld [vmem:[%s6698_s5 + $0x40] sm:$0xff] }
 0x199   :  { %v1102_v37 = vadd.f32 %v1098_v34, %v1012_v32  ;;  %4893 = vmatprep.subr.bf16.mxu0 %v4975_v3  ;;  %v4930_v29 = vpack.c.bf16 %v2381_v28, %v2380_v27  ;;  %v4933_v32 = vpack.c.bf16 %v2383_v31, %v2382_v30  ;;  %v2385_v34 = vld [vmem:[%s6698_s5 + $0x48] sm:$0xff]  ;;  %v2386_v36 = vld [vmem:[%s6698_s5 + $0x50] sm:$0xff] }
 0x19c   :  { %4895 = vmatpush3.bf16.msra.mxu0 %v4894_v35  ;;  %v4936_v35 = vpack.c.bf16 %v2385_v34, %v2384_v33 }
 0x19d   :  { %4896 = vmatprep.subr.bf16.mxu0 %v4975_v3 }
 0x1a0   :  { %4898 = vmatpush3.bf16.msra.mxu0 %v4897_v40  ;;  %v2389_v40 = vld [vmem:[%s6698_s5 + $0x68] sm:$0xff] }
 0x1a1   :  { %4923 = vmatprep.subr.bf16.mxu0 %v4975_v3 }
 0x1a3   :  { %4227 = vmatmul.mubr.f32.vlgmr.msra.gmra.mrb[24].mxu0 %v2875_v41  ;;  %v4942_v41 = vpack.c.bf16 %v2389_v40, %v2388_v39 }
 0x1a4   :  { %4296 = vmatprep.mubr.msk.f32.mxu0 %vm4976_vm0, %v4977_v11  ;;  %v2283_v11 = vld [vmem:[%s6696_s3 + $0x8] sm:$0xff]  ;;  %4925 = vmatpush3.bf16.msra.mxu0 %v4924_v24 }
 0x1a5   :  { %v4900_v56 = vpack.c.bf16 %v2283_v11, %v2282_v54  ;;  %4926 = vmatprep.subr.bf16.mxu0 %v4975_v3 }
 0x1a7   :  { %4901 = vmatpush3.bf16.msra.mxu1 %v4900_v56 }
 0x1a8   :  { %4902 = vmatprep.subr.bf16.mxu1 %v4975_v3  ;;  %4928 = vmatpush3.bf16.msra.mxu0 %v4927_v26 }
 0x1a9   :  { %4929 = vmatprep.subr.bf16.mxu0 %v4975_v3 }
 0x1ab   :  { %4904 = vmatpush3.bf16.msra.mxu1 %v4903_v58 }
 0x1ac   :  { %4905 = vmatprep.subr.bf16.mxu1 %v4975_v3  ;;  %4931 = vmatpush3.bf16.msra.mxu0 %v4930_v29 }
 0x1ad   :  { %4932 = vmatprep.subr.bf16.mxu0 %v4975_v3 }
 0x1af   :  { %4907 = vmatpush3.bf16.msra.mxu1 %v4906_v61 }
 0x1b0   :  { %4908 = vmatprep.subr.bf16.mxu1 %v4975_v3  ;;  %4934 = vmatpush3.bf16.msra.mxu0 %v4933_v32 }
 0x1b1   :  { %4935 = vmatprep.subr.bf16.mxu0 %v4975_v3 }
 0x1b3   :  { %4910 = vmatpush3.bf16.msra.mxu1 %v4909_v0  ;;  %v2390_v0 = vld [vmem:[%s6698_s5 + $0x70] sm:$0xff] }
 0x1b4   :  { %4911 = vmatprep.subr.bf16.mxu1 %v4975_v3  ;;  %4937 = vmatpush3.bf16.msra.mxu0 %v4936_v35  ;;  %v4945_v2 = vpack.c.bf16 %v2391_v1, %v2390_v0 }
 0x1b5   :  { %4938 = vmatprep.subr.bf16.mxu0 %v4975_v3 }
 0x1b6   :  { %v1188_v42 = vpop.f32.mrb[12].mxu0 }
 0x1b7   :  { %v1192_v43 = vadd.f32 %v1188_v42, %v1102_v37  ;;  %v3808_v44 = vpop.f32.mrb[13].mxu0  ;;  %v1278_v45 = vpop.f32.mrb[12].mxu1  ;;  %4913 = vmatpush3.bf16.msra.mxu1 %v4912_v4  ;;  %v2387_v37 = vld [vmem:[%s6698_s5 + $0x58] sm:$0xff]  ;;  %v2893_v4 = vld [vmem:[%s6697_s4] ss:$0 sm:$0xff]  ;;  %s4951_s5 = scalar_lea.vmem %s2477_s16, 32 }
 0x1b8   :  { %v3843_v46 = vpop.f32.mrb[13].mxu1  ;;  %4914 = vmatprep.subr.bf16.mxu1 %v4975_v3  ;;  %v4939_v38 = vpack.c.bf16 %v2387_v37, %v2386_v36  ;;  %p4952_p0 = scmp.ne.s32.totalorder %s2477_s16, %s4951_s5  ;;  %p4957_p2 = scmp.lt.s32.totalorder %s4951_s5, %s4951_s5 }
 0x1b9   :  { %v1282_v47 = vadd.f32 %v1278_v45, %v1192_v43 }
 0x1ba   :  { %4940 = vmatpush3.bf16.msra.mxu0 %v4939_v38  ;;  %p4958_p3 = por %p4957_p2, %p4956_p1 }
 0x1bb   :  { %4916 = vmatpush3.bf16.msra.mxu1 %v4915_v7  ;;  %4941 = vmatprep.subr.bf16.mxu0 %v4975_v3 }
 0x1bc   :  { %4917 = vmatprep.subr.bf16.mxu1 %v4975_v3  ;;  %p4959_p4 = pnand %p4958_p3, %p4952_p0 }
 0x1be   :  { %4943 = vmatpush3.bf16.msra.mxu0 %v4942_v41 }
 0x1bf   :  { %4919 = vmatpush3.bf16.msra.mxu1 %v4918_v10  ;;  %4944 = vmatprep.subr.bf16.mxu0 %v4975_v3 }
 0x1c0   :  { %4920 = vmatprep.subr.bf16.mxu1 %v4975_v3 }
 0x1c2   :  { %4946 = vmatpush3.bf16.msra.mxu0 %v4945_v2 }
 0x1c3   :  { %4922 = vmatpush3.bf16.msra.mxu1 %v4921_v19 }
 0x1d6   :  { %v1368_v48 = vpop.f32.mrb[14].mxu0 }
 0x1d7   :  { %v1372_v49 = vadd.f32 %v1368_v48, %v1282_v47  ;;  %v3878_v50 = vpop.f32.mrb[15].mxu0  ;;  %v1458_v51 = vpop.f32.mrb[14].mxu1 }
 0x1d8   :  { %v3913_v52 = vpop.f32.mrb[15].mxu1 }
 0x1d9   :  { %v1462_v53 = vadd.f32 %v1458_v51, %v1372_v49 }
 0x1f6   :  { %v1548_v12 = vpop.f32.mrb[16].mxu0 }
 0x1f7   :  { %v1552_v13 = vadd.f32 %v1548_v12, %v1462_v53  ;;  %v3948_v14 = vpop.f32.mrb[17].mxu0  ;;  %v1638_v15 = vpop.f32.mrb[16].mxu1 }
 0x1f8   :  { %v3983_v18 = vpop.f32.mrb[17].mxu1 }
 0x1f9   :  { %v1642_v20 = vadd.f32 %v1638_v15, %v1552_v13 }
 0x216   :  { %v1728_v42 = vpop.f32.mrb[18].mxu0 }
 0x217   :  { %v1732_v43 = vadd.f32 %v1728_v42, %v1642_v20  ;;  %v4018_v44 = vpop.f32.mrb[19].mxu0  ;;  %v1818_v45 = vpop.f32.mrb[18].mxu1 }
 0x218   :  { %v4053_v46 = vpop.f32.mrb[19].mxu1 }
 0x219   :  { %v1822_v47 = vadd.f32 %v1818_v45, %v1732_v43 }
 0x236   :  { %v1908_v48 = vpop.f32.mrb[20].mxu0 }
 0x237   :  { %v1912_v49 = vadd.f32 %v1908_v48, %v1822_v47  ;;  %v4088_v50 = vpop.f32.mrb[21].mxu0  ;;  %v1998_v51 = vpop.f32.mrb[20].mxu1 }
 0x238   :  { %v4123_v52 = vpop.f32.mrb[21].mxu1 }
 0x239   :  { %v2002_v53 = vadd.f32 %v1998_v51, %v1912_v49 }
 0x256   :  { %v2088_v54 = vpop.f32.mrb[22].mxu0 }
 0x257   :  { %v2092_v11 = vadd.f32 %v2088_v54, %v2002_v53  ;;  %v4158_v55 = vpop.f32.mrb[23].mxu0  ;;  %v2178_v56 = vpop.f32.mrb[22].mxu1 }
 0x258   :  { %v4193_v57 = vpop.f32.mrb[23].mxu1 }
 0x259   :  { %v2182_v58 = vadd.f32 %v2178_v56, %v2092_v11 }
 0x276   :  { %v2268_v59 = vpop.f32.mrb[24].mxu0 }
 0x277   :  { %v2272_v61 = vadd.f32 %v2268_v59, %v2182_v58  ;;  %v4228_v62 = vpop.f32.mrb[25].mxu0 }
 0x279   :  { %v2280_v3 = vadd.f32 %v2892_v60, %v2272_v61 }
 0x27b   :  { %v2281_v63 = vmax.f32 %v2280_v3, 0.0 }
 0x27d   :  { %4262 = vmatmul.mubr.f32.vlgmr.msra.gmra.mrb[24].mxu1 %v2281_v63 }
 0x350   :  { %v2371_v5 = vpop.f32.mrb[24].mxu1 }
 0x351   :  { %v2372_v6 = vadd.f32 %v2893_v4, %v2371_v5  ;;  %v4263_v7 = vpop.f32.mrb[25].mxu1 }
 0x353   :  { %v2375_v8 = vmax.f32 %v2372_v6, 0.0 }
 0x355   :  { %4297 = vmatmul.mubr.f32.vlgmr.msra.gmra.mrb[26].mxu0 %v2375_v8 }
 0x428   :  { %v2465_v10 = vpop.f32.mrb[26].mxu0 }
 0x429   :  { %v2466_v12 = vadd.f32 %v2894_v9, %v2465_v10  ;;  %v4298_v13 = vpop.f32.mrb[27].mxu0 }
 0x42b   :  { %2469 = vst [vmem:[#allocation2] sm:$0x3] %v2466_v12 }
 0x42c   :  { %4962 = shalt.err (!%p4959_p4)
}
 0x42d   :  { %s4963_s18 = scalar_lea.hbm %s6700_s7, 32 }
 0x42e   :  { %p4964_p5 = scmp.ne.s32.totalorder %s6700_s7, %s4963_s18  ;;  %p4967_p6 = scmp.lt.u32.totalorder %s4963_s18, %s6700_s7 }
 0x430   :  { %p4969_p7 = pnand %p4967_p6, %p4964_p5 }
 0x432   :  { %4972 = shalt.err (!%p4969_p7)
}
 0x433   :  { %2479 = dma.vmem_to_hbm [thread:$0]  %s2477_s16, 32, %s6700_s7, [#allocation3]  }
 0x434   :  { %4973 = dma.done.wait [#allocation3], 32  }
 0x435   :  { %4974 = vsyncadd [#allocation3], 4294967264 }
 0x436   :  { %2483 = vsyncpa [#allocation3], 1 }

</bundles_post_ra>
